<compile_context>
chip_gen: v7x
topology: tpu7x:2x2x1
jax: 0.10.0
libtpu: 0.0.40
codegen_flags: <defaults>
</compile_context>

<pallas_src>
import functools

import jax
import jax.numpy as jnp
from jax.experimental import pallas as pl
from jax.experimental.pallas import tpu as pltpu


# ---------------------------------------------------------------------------
# Hardware-aware budgets.
# ---------------------------------------------------------------------------
def _vmem_limit_bytes():
    """~3/4 of physical VMEM (v5e/v6e: 128 MiB, v7x: 64 MiB).  Falls back to
    the conservative v7x figure if the query is unavailable."""
    try:
        cap = int(pltpu.get_tpu_info().vmem_capacity_bytes)
    except Exception:
        cap = 64 * 1024 * 1024
    cap = min(cap, 128 * 1024 * 1024)
    return (cap * 3) // 4


def _pick_channel_tile(C, hw, isz, blk_budget):
    """Channel tile for the fallback path.

    Tc is a dtype-aware sublane multiple (8 f32 / 16 bf16 / 32 int8) or the
    full channel extent, sized so the larger of the reduce working set
    (2 bufs + f32 upcast) and the gate working set (4 bufs) stays under
    blk_budget.  Returns (Tc, needs_mask_for_last_tile)."""
    sub = max(8, 32 // max(1, isz))
    row_bytes = hw * max(4 * isz, 2 * isz + 4)
    max_tc = max(1, blk_budget // max(1, row_bytes))
    if max_tc >= C:
        return C, False
    tc = max(sub, (max_tc // sub) * sub)
    if tc >= C:
        return C, False
    return tc, (C % tc != 0)


# ---------------------------------------------------------------------------
# 7x7 'same' conv over the two pooled planes + sigmoid, in flat lane space.
# ---------------------------------------------------------------------------
def _conv_sigmoid_flat(w_ref, avg, mx, *, H, W, K):
    """w_ref: (2, K*K) f32 VMEM ref; avg, mx: (1, H*W) f32 values.
    Returns the (1, H*W) f32 attention map sigmoid(conv([avg, mx]))."""
    P = K // 2
    HW = H * W
    off = P * W + P                                   # flat-space halo per side

    planes = jnp.concatenate([avg, mx], axis=0)       # (2, HW) share vreg rows
    if off > 0:
        zpad = jnp.zeros((2, off), jnp.float32)
        padded = jnp.concatenate([zpad, planes, zpad], axis=1)   # (2, HW+2*off)
    else:
        padded = planes

    col = jax.lax.broadcasted_iota(jnp.int32, (1, HW), 1) % W
    acc = jnp.zeros((2, HW), jnp.float32)
    for di in range(K):
        for dj in range(K):
            t = di * K + dj
            dcol = dj - P
            start = off + (di - P) * W + dcol
            tap = padded[:, start:start + HW]          # (2, HW) lane-offset slice
            if dcol != 0:                              # kill row-wrap columns
                valid = (col + dcol >= 0) & (col + dcol < W)
                tap = jnp.where(valid, tap, 0.0)
            acc = acc + w_ref[:, t:t + 1] * tap        # per-plane FMA (VPU)
    return jax.nn.sigmoid(jnp.sum(acc, axis=0, keepdims=True))   # (1, HW)


# ---------------------------------------------------------------------------
# Fused kernel: reduce -> conv -> sigmoid -> gate for one batch element.
# ---------------------------------------------------------------------------
def _fused_kernel(w_ref, x_ref, o_ref, *, C, H, W, K):
    # x_ref / o_ref: (1, C, HW);  w_ref: (2, K*K) f32 VMEM.
    xf = x_ref[0].astype(jnp.float32)                 # (C, HW)
    avg = jnp.sum(xf, axis=0, keepdims=True) * (1.0 / C)
    mx = jnp.max(xf, axis=0, keepdims=True)
    attn = _conv_sigmoid_flat(w_ref, avg, mx, H=H, W=W, K=K)
    o_ref[0] = x_ref[0] * attn.astype(o_ref.dtype)    # broadcast over channels


# ---------------------------------------------------------------------------
# Fallback pass 1: channel-tiled mean/max with conv+sigmoid in the epilogue.
# ---------------------------------------------------------------------------
def _reduce_conv_kernel(w_ref, x_ref, attn_ref, sum_scr, max_scr,
                        *, C, H, W, K, mask_last):
    # x_ref: (1, Tc, HW); attn_ref: (1, 1, HW) in x.dtype; scr: (1, HW) f32.
    c = pl.program_id(1)
    tc = x_ref.shape[1]

    @pl.when(c == 0)
    def _():
        sum_scr[...] = jnp.zeros(sum_scr.shape, sum_scr.dtype)
        max_scr[...] = jnp.full(max_scr.shape, -jnp.inf, max_scr.dtype)

    xf = x_ref[0].astype(jnp.float32)                 # only a (Tc, HW) tile
    if mask_last:
        ch = c * tc + jax.lax.broadcasted_iota(jnp.int32, (tc, 1), 0)
        valid = ch < C
        xs = jnp.where(valid, xf, 0.0)
        xm = jnp.where(valid, xf, -jnp.inf)
    else:
        xs = xf
        xm = xf
    sum_scr[...] += jnp.sum(xs, axis=0, keepdims=True)
    max_scr[...] = jnp.maximum(max_scr[...], jnp.max(xm, axis=0, keepdims=True))

    @pl.when(c == pl.num_programs(1) - 1)
    def _():
        attn = _conv_sigmoid_flat(w_ref, sum_scr[...] * (1.0 / C), max_scr[...],
                                  H=H, W=W, K=K)
        attn_ref[0] = attn.astype(attn_ref.dtype)     # emit attn in x.dtype


# ---------------------------------------------------------------------------
# Fallback pass 2: lane-dense broadcast gating  out = attn * x.
# ---------------------------------------------------------------------------
def _gate_kernel(attn_ref, x_ref, o_ref):
    # attn_ref: (1, 1, HW) x.dtype;  x_ref / o_ref: (1, Tc, HW).
    o_ref[0] = x_ref[0] * attn_ref[0]                 # no per-step cast


# ---------------------------------------------------------------------------
# Wrapper.
# ---------------------------------------------------------------------------
def spatial_attention(x, w, *, force_fallback=False, blk_budget_override=None):
    """x: (N, C, H, W);  w: (2, K, K) Conv2d(2, 1, K, bias=False) weight."""
    N, C, H, W = x.shape
    K = w.shape[-1]
    HW = H * W
    isz = x.dtype.itemsize
    vmem_limit = _vmem_limit_bytes()

    x2 = x.reshape(N, C, HW)                          # lane-dense spatial axis
    w2 = w.reshape(2, K * K).astype(jnp.float32)      # tap-major per channel
    # Note: if HW % 128 != 0 the output stores are lane-masked; padding x to a
    # 128 multiple would cost an extra full copy of x, so it is not done here.

    # --- fused single-call path -------------------------------------------
    fused_bytes = C * HW * (4 * isz + 4) + 16 * HW * 4
    if (not force_fallback) and fused_bytes <= vmem_limit // 2:
        out = pl.pallas_call(
            functools.partial(_fused_kernel, C=C, H=H, W=W, K=K),
            out_shape=jax.ShapeDtypeStruct((N, C, HW), x.dtype),
            grid_spec=pltpu.PrefetchScalarGridSpec(
                num_scalar_prefetch=0,
                grid=(N,),
                in_specs=[pl.BlockSpec((2, K * K), lambda n: (0, 0)),
                          pl.BlockSpec((1, C, HW), lambda n: (n, 0, 0))],
                out_specs=pl.BlockSpec((1, C, HW), lambda n: (n, 0, 0))),
            compiler_params=pltpu.CompilerParams(
                dimension_semantics=("parallel",),
                vmem_limit_bytes=vmem_limit),
        )(w2, x2)
        return out.reshape(N, C, H, W)

    # --- fallback: channel-tiled 2-pass path ------------------------------
    blk_budget = blk_budget_override
    if blk_budget is None:
        blk_budget = min(8 * 1024 * 1024, vmem_limit // 8)
    Tc, mask_last = _pick_channel_tile(C, HW, isz, blk_budget)
    nct = pl.cdiv(C, Tc)

    attn = pl.pallas_call(
        functools.partial(_reduce_conv_kernel, C=C, H=H, W=W, K=K,
                          mask_last=mask_last),
        out_shape=jax.ShapeDtypeStruct((N, 1, HW), x.dtype),
        grid_spec=pltpu.PrefetchScalarGridSpec(
            num_scalar_prefetch=0,
            grid=(N, nct),
            in_specs=[pl.BlockSpec((2, K * K), lambda n, c: (0, 0)),
                      pl.BlockSpec((1, Tc, HW), lambda n, c: (n, c, 0))],
            out_specs=pl.BlockSpec((1, 1, HW), lambda n, c: (n, 0, 0)),
            scratch_shapes=[pltpu.VMEM((1, HW), jnp.float32),
                            pltpu.VMEM((1, HW), jnp.float32)]),
        compiler_params=pltpu.CompilerParams(
            dimension_semantics=("parallel", "arbitrary"),
            vmem_limit_bytes=vmem_limit),
    )(w2, x2)

    out = pl.pallas_call(
        _gate_kernel,
        out_shape=jax.ShapeDtypeStruct((N, C, HW), x.dtype),
        grid_spec=pltpu.PrefetchScalarGridSpec(
            num_scalar_prefetch=0,
            grid=(N, nct),
            in_specs=[pl.BlockSpec((1, 1, HW), lambda n, c: (n, 0, 0)),
                      pl.BlockSpec((1, Tc, HW), lambda n, c: (n, c, 0))],
            out_specs=pl.BlockSpec((1, Tc, HW), lambda n, c: (n, c, 0))),
        compiler_params=pltpu.CompilerParams(
            dimension_semantics=("parallel", "parallel"),
            vmem_limit_bytes=vmem_limit),
    )(attn, x2)

    return out.reshape(N, C, H, W)


def spatial_attention_ref(x, w):
    """Pure-JAX reference of the PyTorch forward."""
    K = w.shape[-1]
    P = K // 2
    avg = jnp.mean(x, axis=1, keepdims=True)
    mx = jnp.max(x, axis=1, keepdims=True)
    xc = jnp.concatenate([avg, mx], axis=1)                   # (N, 2, H, W)
    attn = jax.lax.conv_general_dilated(
        xc, w[None].astype(xc.dtype),
        window_strides=(1, 1), padding=((P, P), (P, P)),
        dimension_numbers=("NCHW", "OIHW", "NCHW"))
    return jax.nn.sigmoid(attn) * x


if __name__ == "__main__":
    N, C, H, W = 2, 4, 16, 16
    K = 7

    key = jax.random.PRNGKey(0)
    kx, kw = jax.random.split(key)
    x = jax.random.normal(kx, (N, C, H, W), dtype=jnp.float32)
    # Deterministic "kaiming-ish" init for the Conv2d(2, 1, 7, bias=False) weight.
    w = jax.random.normal(kw, (2, K, K), dtype=jnp.float32) * (1.0 / (K * 2.0 ** 0.5))

    ref = spatial_attention_ref(x, w)

    # Fused single-pallas_call path (default for this size).
    out = jax.block_until_ready(spatial_attention(x, w))
    assert out.shape == (N, C, H, W)
    assert jnp.allclose(out, ref, atol=3e-5, rtol=3e-5), "fused path mismatch"

    # Channel-tiled 2-pass fallback path on the same input.
    out_fb = jax.block_until_ready(spatial_attention(x, w, force_fallback=True))
    assert jnp.allclose(out_fb, ref, atol=3e-5, rtol=3e-5), "fallback mismatch"

    # Fallback with a tiny block budget: channel tiling + masked last tile.
    xb = jax.random.normal(jax.random.PRNGKey(1), (1, 12, H, W), dtype=jnp.float32)
    refb = spatial_attention_ref(xb, w)
    outb = jax.block_until_ready(
        spatial_attention(xb, w, force_fallback=True, blk_budget_override=8 * 1024))
    assert jnp.allclose(outb, refb, atol=3e-5, rtol=3e-5), "tiled/masked mismatch"

    print("KERNEL_OK")
</pallas_src>

<mosaic_0001>
module attributes {stable_mosaic.version = 11 : i64} {
  func.func @_fused_kernel(%arg0: i32, %arg1: memref<2x49xf32, #tpu.memory_space<vmem>>, %arg2: memref<1x4x256xf32, #tpu.memory_space<vmem>>, %arg3: memref<1x4x256xf32, #tpu.memory_space<vmem>>) attributes {dimension_semantics = [#tpu.dimension_semantics<parallel>], iteration_bounds = array<i64: 2>, scalar_prefetch = 0 : i64, scratch_operands = 0 : i64, tpu.core_type = #tpu.core_type<tc>, window_params = [{pipeline_mode = #tpu.pipeline_mode<synchronous>, transform_indices = @transform_0, window_bounds = array<i64: 2, 49>}, {transform_indices = @transform_1, window_bounds = array<i64: 1, 4, 256>}, {transform_indices = @transform_2, window_bounds = array<i64: 1, 4, 256>}]} {
    %c0 = arith.constant 0 : index
    %c0_0 = arith.constant 0 : index
    %c0_1 = arith.constant 0 : index
    %0 = vector.load %arg2[%c0, %c0_0, %c0_1] : memref<1x4x256xf32, #tpu.memory_space<vmem>>, vector<1x4x256xf32>
    %1 = vector.shape_cast %0 : vector<1x4x256xf32> to vector<4x256xf32>
    %cst = arith.constant dense<0.000000e+00> : vector<256xf32>
    %2 = vector.multi_reduction <add>, %1, %cst [0] : vector<4x256xf32> to vector<256xf32>
    %3 = vector.shape_cast %2 : vector<256xf32> to vector<1x256xf32>
    %cst_2 = arith.constant 2.500000e-01 : f32
    %4 = vector.broadcast %cst_2 : f32 to vector<1x256xf32>
    %5 = arith.mulf %3, %4 : vector<1x256xf32>
    %cst_3 = arith.constant dense<0xFF800000> : vector<256xf32>
    %6 = vector.multi_reduction <maximumf>, %1, %cst_3 [0] : vector<4x256xf32> to vector<256xf32>
    %7 = vector.shape_cast %6 : vector<256xf32> to vector<1x256xf32>
    %8 = tpu.concatenate %5, %7 in 0 : vector<1x256xf32>, vector<1x256xf32> -> vector<2x256xf32>
    %cst_4 = arith.constant 0.000000e+00 : f32
    %9 = vector.broadcast %cst_4 : f32 to vector<2x51xf32>
    %10 = tpu.concatenate %9, %8, %9 in 1 : vector<2x51xf32>, vector<2x256xf32>, vector<2x51xf32> -> vector<2x358xf32>
    %11 = tpu.iota {dimensions = array<i32: 1>} : vector<1x256xi32>
    %c16_i32 = arith.constant 16 : i32
    %c0_i32 = arith.constant 0 : i32
    %12 = arith.cmpi eq, %c16_i32, %c0_i32 : i32
    %c1_i32 = arith.constant 1 : i32
    %13 = arith.select %12, %c1_i32, %c16_i32 : i32
    %14 = vector.broadcast %13 : i32 to vector<1x256xi32>
    %15 = arith.remsi %11, %14 : vector<1x256xi32>
    %c0_i32_5 = arith.constant 0 : i32
    %16 = vector.broadcast %c0_i32_5 : i32 to vector<1x256xi32>
    %17 = arith.cmpi ne, %15, %16 : vector<1x256xi32>
    %c0_i32_6 = arith.constant 0 : i32
    %18 = vector.broadcast %c0_i32_6 : i32 to vector<1x256xi32>
    %19 = arith.cmpi slt, %15, %18 : vector<1x256xi32>
    %c0_i32_7 = arith.constant 0 : i32
    %20 = arith.cmpi slt, %13, %c0_i32_7 : i32
    %21 = vector.broadcast %20 : i1 to vector<1x256xi1>
    %22 = vector.broadcast %21 : vector<1x256xi1> to vector<1x256xi1>
    %23 = arith.xori %19, %22 : vector<1x256xi1>
    %24 = arith.andi %23, %17 : vector<1x256xi1>
    %25 = vector.broadcast %13 : i32 to vector<1x256xi32>
    %26 = arith.addi %15, %25 : vector<1x256xi32>
    %27 = arith.select %24, %26, %15 : vector<1x256xi1>, vector<1x256xi32>
    %cst_8 = arith.constant 0.000000e+00 : f32
    %28 = vector.broadcast %cst_8 : f32 to vector<2x256xf32>
    %29 = vector.extract_strided_slice %10 {offsets = [0, 0], sizes = [2, 256], strides = [1, 1]} : vector<2x358xf32> to vector<2x256xf32>
    %c-3_i32 = arith.constant -3 : i32
    %30 = vector.broadcast %c-3_i32 : i32 to vector<1x256xi32>
    %31 = arith.addi %27, %30 : vector<1x256xi32>
    %c0_i32_9 = arith.constant 0 : i32
    %32 = vector.broadcast %c0_i32_9 : i32 to vector<1x256xi32>
    %33 = arith.cmpi sge, %31, %32 : vector<1x256xi32>
    %c-3_i32_10 = arith.constant -3 : i32
    %34 = vector.broadcast %c-3_i32_10 : i32 to vector<1x256xi32>
    %35 = arith.addi %27, %34 : vector<1x256xi32>
    %c16_i32_11 = arith.constant 16 : i32
    %36 = vector.broadcast %c16_i32_11 : i32 to vector<1x256xi32>
    %37 = arith.cmpi slt, %35, %36 : vector<1x256xi32>
    %38 = arith.andi %33, %37 : vector<1x256xi1>
    %cst_12 = arith.constant 0.000000e+00 : f32
    %39 = vector.shape_cast %38 : vector<1x256xi1> to vector<1x256xi1>
    %40 = vector.broadcast %39 : vector<1x256xi1> to vector<2x256xi1>
    %41 = vector.broadcast %cst_12 : f32 to vector<2x256xf32>
    %42 = arith.select %40, %29, %41 : vector<2x256xi1>, vector<2x256xf32>
    %c0_13 = arith.constant 0 : index
    %c0_14 = arith.constant 0 : index
    %43 = vector.load %arg1[%c0_13, %c0_14] : memref<2x49xf32, #tpu.memory_space<vmem>>, vector<2x1xf32>
    %44 = vector.broadcast %43 : vector<2x1xf32> to vector<2x256xf32>
    %45 = arith.mulf %44, %42 : vector<2x256xf32>
    %46 = arith.addf %28, %45 : vector<2x256xf32>
    %47 = vector.extract_strided_slice %10 {offsets = [0, 1], sizes = [2, 256], strides = [1, 1]} : vector<2x358xf32> to vector<2x256xf32>
    %c-2_i32 = arith.constant -2 : i32
    %48 = vector.broadcast %c-2_i32 : i32 to vector<1x256xi32>
    %49 = arith.addi %27, %48 : vector<1x256xi32>
    %c0_i32_15 = arith.constant 0 : i32
    %50 = vector.broadcast %c0_i32_15 : i32 to vector<1x256xi32>
    %51 = arith.cmpi sge, %49, %50 : vector<1x256xi32>
    %c-2_i32_16 = arith.constant -2 : i32
    %52 = vector.broadcast %c-2_i32_16 : i32 to vector<1x256xi32>
    %53 = arith.addi %27, %52 : vector<1x256xi32>
    %c16_i32_17 = arith.constant 16 : i32
    %54 = vector.broadcast %c16_i32_17 : i32 to vector<1x256xi32>
    %55 = arith.cmpi slt, %53, %54 : vector<1x256xi32>
    %56 = arith.andi %51, %55 : vector<1x256xi1>
    %cst_18 = arith.constant 0.000000e+00 : f32
    %57 = vector.shape_cast %56 : vector<1x256xi1> to vector<1x256xi1>
    %58 = vector.broadcast %57 : vector<1x256xi1> to vector<2x256xi1>
    %59 = vector.broadcast %cst_18 : f32 to vector<2x256xf32>
    %60 = arith.select %58, %47, %59 : vector<2x256xi1>, vector<2x256xf32>
    %c0_19 = arith.constant 0 : index
    %c1 = arith.constant 1 : index
    %61 = vector.load %arg1[%c0_19, %c1] : memref<2x49xf32, #tpu.memory_space<vmem>>, vector<2x1xf32>
    %62 = vector.broadcast %61 : vector<2x1xf32> to vector<2x256xf32>
    %63 = arith.mulf %62, %60 : vector<2x256xf32>
    %64 = arith.addf %46, %63 : vector<2x256xf32>
    %65 = vector.extract_strided_slice %10 {offsets = [0, 2], sizes = [2, 256], strides = [1, 1]} : vector<2x358xf32> to vector<2x256xf32>
    %c-1_i32 = arith.constant -1 : i32
    %66 = vector.broadcast %c-1_i32 : i32 to vector<1x256xi32>
    %67 = arith.addi %27, %66 : vector<1x256xi32>
    %c0_i32_20 = arith.constant 0 : i32
    %68 = vector.broadcast %c0_i32_20 : i32 to vector<1x256xi32>
    %69 = arith.cmpi sge, %67, %68 : vector<1x256xi32>
    %c-1_i32_21 = arith.constant -1 : i32
    %70 = vector.broadcast %c-1_i32_21 : i32 to vector<1x256xi32>
    %71 = arith.addi %27, %70 : vector<1x256xi32>
    %c16_i32_22 = arith.constant 16 : i32
    %72 = vector.broadcast %c16_i32_22 : i32 to vector<1x256xi32>
    %73 = arith.cmpi slt, %71, %72 : vector<1x256xi32>
    %74 = arith.andi %69, %73 : vector<1x256xi1>
    %cst_23 = arith.constant 0.000000e+00 : f32
    %75 = vector.shape_cast %74 : vector<1x256xi1> to vector<1x256xi1>
    %76 = vector.broadcast %75 : vector<1x256xi1> to vector<2x256xi1>
    %77 = vector.broadcast %cst_23 : f32 to vector<2x256xf32>
    %78 = arith.select %76, %65, %77 : vector<2x256xi1>, vector<2x256xf32>
    %c0_24 = arith.constant 0 : index
    %c2 = arith.constant 2 : index
    %79 = vector.load %arg1[%c0_24, %c2] : memref<2x49xf32, #tpu.memory_space<vmem>>, vector<2x1xf32>
    %80 = vector.broadcast %79 : vector<2x1xf32> to vector<2x256xf32>
    %81 = arith.mulf %80, %78 : vector<2x256xf32>
    %82 = arith.addf %64, %81 : vector<2x256xf32>
    %83 = vector.extract_strided_slice %10 {offsets = [0, 3], sizes = [2, 256], strides = [1, 1]} : vector<2x358xf32> to vector<2x256xf32>
    %c0_25 = arith.constant 0 : index
    %c3 = arith.constant 3 : index
    %84 = vector.load %arg1[%c0_25, %c3] : memref<2x49xf32, #tpu.memory_space<vmem>>, vector<2x1xf32>
    %85 = vector.broadcast %84 : vector<2x1xf32> to vector<2x256xf32>
    %86 = arith.mulf %85, %83 : vector<2x256xf32>
    %87 = arith.addf %82, %86 : vector<2x256xf32>
    %88 = vector.extract_strided_slice %10 {offsets = [0, 4], sizes = [2, 256], strides = [1, 1]} : vector<2x358xf32> to vector<2x256xf32>
    %c1_i32_26 = arith.constant 1 : i32
    %89 = vector.broadcast %c1_i32_26 : i32 to vector<1x256xi32>
    %90 = arith.addi %27, %89 : vector<1x256xi32>
    %c0_i32_27 = arith.constant 0 : i32
    %91 = vector.broadcast %c0_i32_27 : i32 to vector<1x256xi32>
    %92 = arith.cmpi sge, %90, %91 : vector<1x256xi32>
    %c1_i32_28 = arith.constant 1 : i32
    %93 = vector.broadcast %c1_i32_28 : i32 to vector<1x256xi32>
    %94 = arith.addi %27, %93 : vector<1x256xi32>
    %c16_i32_29 = arith.constant 16 : i32
    %95 = vector.broadcast %c16_i32_29 : i32 to vector<1x256xi32>
    %96 = arith.cmpi slt, %94, %95 : vector<1x256xi32>
    %97 = arith.andi %92, %96 : vector<1x256xi1>
    %cst_30 = arith.constant 0.000000e+00 : f32
    %98 = vector.shape_cast %97 : vector<1x256xi1> to vector<1x256xi1>
    %99 = vector.broadcast %98 : vector<1x256xi1> to vector<2x256xi1>
    %100 = vector.broadcast %cst_30 : f32 to vector<2x256xf32>
    %101 = arith.select %99, %88, %100 : vector<2x256xi1>, vector<2x256xf32>
    %c0_31 = arith.constant 0 : index
    %c4 = arith.constant 4 : index
    %102 = vector.load %arg1[%c0_31, %c4] : memref<2x49xf32, #tpu.memory_space<vmem>>, vector<2x1xf32>
    %103 = vector.broadcast %102 : vector<2x1xf32> to vector<2x256xf32>
    %104 = arith.mulf %103, %101 : vector<2x256xf32>
    %105 = arith.addf %87, %104 : vector<2x256xf32>
    %106 = vector.extract_strided_slice %10 {offsets = [0, 5], sizes = [2, 256], strides = [1, 1]} : vector<2x358xf32> to vector<2x256xf32>
    %c2_i32 = arith.constant 2 : i32
    %107 = vector.broadcast %c2_i32 : i32 to vector<1x256xi32>
    %108 = arith.addi %27, %107 : vector<1x256xi32>
    %c0_i32_32 = arith.constant 0 : i32
    %109 = vector.broadcast %c0_i32_32 : i32 to vector<1x256xi32>
    %110 = arith.cmpi sge, %108, %109 : vector<1x256xi32>
    %c2_i32_33 = arith.constant 2 : i32
    %111 = vector.broadcast %c2_i32_33 : i32 to vector<1x256xi32>
    %112 = arith.addi %27, %111 : vector<1x256xi32>
    %c16_i32_34 = arith.constant 16 : i32
    %113 = vector.broadcast %c16_i32_34 : i32 to vector<1x256xi32>
    %114 = arith.cmpi slt, %112, %113 : vector<1x256xi32>
    %115 = arith.andi %110, %114 : vector<1x256xi1>
    %cst_35 = arith.constant 0.000000e+00 : f32
    %116 = vector.shape_cast %115 : vector<1x256xi1> to vector<1x256xi1>
    %117 = vector.broadcast %116 : vector<1x256xi1> to vector<2x256xi1>
    %118 = vector.broadcast %cst_35 : f32 to vector<2x256xf32>
    %119 = arith.select %117, %106, %118 : vector<2x256xi1>, vector<2x256xf32>
    %c0_36 = arith.constant 0 : index
    %c5 = arith.constant 5 : index
    %120 = vector.load %arg1[%c0_36, %c5] : memref<2x49xf32, #tpu.memory_space<vmem>>, vector<2x1xf32>
    %121 = vector.broadcast %120 : vector<2x1xf32> to vector<2x256xf32>
    %122 = arith.mulf %121, %119 : vector<2x256xf32>
    %123 = arith.addf %105, %122 : vector<2x256xf32>
    %124 = vector.extract_strided_slice %10 {offsets = [0, 6], sizes = [2, 256], strides = [1, 1]} : vector<2x358xf32> to vector<2x256xf32>
    %c3_i32 = arith.constant 3 : i32
    %125 = vector.broadcast %c3_i32 : i32 to vector<1x256xi32>
    %126 = arith.addi %27, %125 : vector<1x256xi32>
    %c0_i32_37 = arith.constant 0 : i32
    %127 = vector.broadcast %c0_i32_37 : i32 to vector<1x256xi32>
    %128 = arith.cmpi sge, %126, %127 : vector<1x256xi32>
    %c3_i32_38 = arith.constant 3 : i32
    %129 = vector.broadcast %c3_i32_38 : i32 to vector<1x256xi32>
    %130 = arith.addi %27, %129 : vector<1x256xi32>
    %c16_i32_39 = arith.constant 16 : i32
    %131 = vector.broadcast %c16_i32_39 : i32 to vector<1x256xi32>
    %132 = arith.cmpi slt, %130, %131 : vector<1x256xi32>
    %133 = arith.andi %128, %132 : vector<1x256xi1>
    %cst_40 = arith.constant 0.000000e+00 : f32
    %134 = vector.shape_cast %133 : vector<1x256xi1> to vector<1x256xi1>
    %135 = vector.broadcast %134 : vector<1x256xi1> to vector<2x256xi1>
    %136 = vector.broadcast %cst_40 : f32 to vector<2x256xf32>
    %137 = arith.select %135, %124, %136 : vector<2x256xi1>, vector<2x256xf32>
    %c0_41 = arith.constant 0 : index
    %c6 = arith.constant 6 : index
    %138 = vector.load %arg1[%c0_41, %c6] : memref<2x49xf32, #tpu.memory_space<vmem>>, vector<2x1xf32>
    %139 = vector.broadcast %138 : vector<2x1xf32> to vector<2x256xf32>
    %140 = arith.mulf %139, %137 : vector<2x256xf32>
    %141 = arith.addf %123, %140 : vector<2x256xf32>
    %142 = vector.extract_strided_slice %10 {offsets = [0, 16], sizes = [2, 256], strides = [1, 1]} : vector<2x358xf32> to vector<2x256xf32>
    %c-3_i32_42 = arith.constant -3 : i32
    %143 = vector.broadcast %c-3_i32_42 : i32 to vector<1x256xi32>
    %144 = arith.addi %27, %143 : vector<1x256xi32>
    %c0_i32_43 = arith.constant 0 : i32
    %145 = vector.broadcast %c0_i32_43 : i32 to vector<1x256xi32>
    %146 = arith.cmpi sge, %144, %145 : vector<1x256xi32>
    %c-3_i32_44 = arith.constant -3 : i32
    %147 = vector.broadcast %c-3_i32_44 : i32 to vector<1x256xi32>
    %148 = arith.addi %27, %147 : vector<1x256xi32>
    %c16_i32_45 = arith.constant 16 : i32
    %149 = vector.broadcast %c16_i32_45 : i32 to vector<1x256xi32>
    %150 = arith.cmpi slt, %148, %149 : vector<1x256xi32>
    %151 = arith.andi %146, %150 : vector<1x256xi1>
    %cst_46 = arith.constant 0.000000e+00 : f32
    %152 = vector.shape_cast %151 : vector<1x256xi1> to vector<1x256xi1>
    %153 = vector.broadcast %152 : vector<1x256xi1> to vector<2x256xi1>
    %154 = vector.broadcast %cst_46 : f32 to vector<2x256xf32>
    %155 = arith.select %153, %142, %154 : vector<2x256xi1>, vector<2x256xf32>
    %c0_47 = arith.constant 0 : index
    %c7 = arith.constant 7 : index
    %156 = vector.load %arg1[%c0_47, %c7] : memref<2x49xf32, #tpu.memory_space<vmem>>, vector<2x1xf32>
    %157 = vector.broadcast %156 : vector<2x1xf32> to vector<2x256xf32>
    %158 = arith.mulf %157, %155 : vector<2x256xf32>
    %159 = arith.addf %141, %158 : vector<2x256xf32>
    %160 = vector.extract_strided_slice %10 {offsets = [0, 17], sizes = [2, 256], strides = [1, 1]} : vector<2x358xf32> to vector<2x256xf32>
    %c-2_i32_48 = arith.constant -2 : i32
    %161 = vector.broadcast %c-2_i32_48 : i32 to vector<1x256xi32>
    %162 = arith.addi %27, %161 : vector<1x256xi32>
    %c0_i32_49 = arith.constant 0 : i32
    %163 = vector.broadcast %c0_i32_49 : i32 to vector<1x256xi32>
    %164 = arith.cmpi sge, %162, %163 : vector<1x256xi32>
    %c-2_i32_50 = arith.constant -2 : i32
    %165 = vector.broadcast %c-2_i32_50 : i32 to vector<1x256xi32>
    %166 = arith.addi %27, %165 : vector<1x256xi32>
    %c16_i32_51 = arith.constant 16 : i32
    %167 = vector.broadcast %c16_i32_51 : i32 to vector<1x256xi32>
    %168 = arith.cmpi slt, %166, %167 : vector<1x256xi32>
    %169 = arith.andi %164, %168 : vector<1x256xi1>
    %cst_52 = arith.constant 0.000000e+00 : f32
    %170 = vector.shape_cast %169 : vector<1x256xi1> to vector<1x256xi1>
    %171 = vector.broadcast %170 : vector<1x256xi1> to vector<2x256xi1>
    %172 = vector.broadcast %cst_52 : f32 to vector<2x256xf32>
    %173 = arith.select %171, %160, %172 : vector<2x256xi1>, vector<2x256xf32>
    %c0_53 = arith.constant 0 : index
    %c8 = arith.constant 8 : index
    %174 = vector.load %arg1[%c0_53, %c8] : memref<2x49xf32, #tpu.memory_space<vmem>>, vector<2x1xf32>
    %175 = vector.broadcast %174 : vector<2x1xf32> to vector<2x256xf32>
    %176 = arith.mulf %175, %173 : vector<2x256xf32>
    %177 = arith.addf %159, %176 : vector<2x256xf32>
    %178 = vector.extract_strided_slice %10 {offsets = [0, 18], sizes = [2, 256], strides = [1, 1]} : vector<2x358xf32> to vector<2x256xf32>
    %c-1_i32_54 = arith.constant -1 : i32
    %179 = vector.broadcast %c-1_i32_54 : i32 to vector<1x256xi32>
    %180 = arith.addi %27, %179 : vector<1x256xi32>
    %c0_i32_55 = arith.constant 0 : i32
    %181 = vector.broadcast %c0_i32_55 : i32 to vector<1x256xi32>
    %182 = arith.cmpi sge, %180, %181 : vector<1x256xi32>
    %c-1_i32_56 = arith.constant -1 : i32
    %183 = vector.broadcast %c-1_i32_56 : i32 to vector<1x256xi32>
    %184 = arith.addi %27, %183 : vector<1x256xi32>
    %c16_i32_57 = arith.constant 16 : i32
    %185 = vector.broadcast %c16_i32_57 : i32 to vector<1x256xi32>
    %186 = arith.cmpi slt, %184, %185 : vector<1x256xi32>
    %187 = arith.andi %182, %186 : vector<1x256xi1>
    %cst_58 = arith.constant 0.000000e+00 : f32
    %188 = vector.shape_cast %187 : vector<1x256xi1> to vector<1x256xi1>
    %189 = vector.broadcast %188 : vector<1x256xi1> to vector<2x256xi1>
    %190 = vector.broadcast %cst_58 : f32 to vector<2x256xf32>
    %191 = arith.select %189, %178, %190 : vector<2x256xi1>, vector<2x256xf32>
    %c0_59 = arith.constant 0 : index
    %c9 = arith.constant 9 : index
    %192 = vector.load %arg1[%c0_59, %c9] : memref<2x49xf32, #tpu.memory_space<vmem>>, vector<2x1xf32>
    %193 = vector.broadcast %192 : vector<2x1xf32> to vector<2x256xf32>
    %194 = arith.mulf %193, %191 : vector<2x256xf32>
    %195 = arith.addf %177, %194 : vector<2x256xf32>
    %196 = vector.extract_strided_slice %10 {offsets = [0, 19], sizes = [2, 256], strides = [1, 1]} : vector<2x358xf32> to vector<2x256xf32>
    %c0_60 = arith.constant 0 : index
    %c10 = arith.constant 10 : index
    %197 = vector.load %arg1[%c0_60, %c10] : memref<2x49xf32, #tpu.memory_space<vmem>>, vector<2x1xf32>
    %198 = vector.broadcast %197 : vector<2x1xf32> to vector<2x256xf32>
    %199 = arith.mulf %198, %196 : vector<2x256xf32>
    %200 = arith.addf %195, %199 : vector<2x256xf32>
    %201 = vector.extract_strided_slice %10 {offsets = [0, 20], sizes = [2, 256], strides = [1, 1]} : vector<2x358xf32> to vector<2x256xf32>
    %c1_i32_61 = arith.constant 1 : i32
    %202 = vector.broadcast %c1_i32_61 : i32 to vector<1x256xi32>
    %203 = arith.addi %27, %202 : vector<1x256xi32>
    %c0_i32_62 = arith.constant 0 : i32
    %204 = vector.broadcast %c0_i32_62 : i32 to vector<1x256xi32>
    %205 = arith.cmpi sge, %203, %204 : vector<1x256xi32>
    %c1_i32_63 = arith.constant 1 : i32
    %206 = vector.broadcast %c1_i32_63 : i32 to vector<1x256xi32>
    %207 = arith.addi %27, %206 : vector<1x256xi32>
    %c16_i32_64 = arith.constant 16 : i32
    %208 = vector.broadcast %c16_i32_64 : i32 to vector<1x256xi32>
    %209 = arith.cmpi slt, %207, %208 : vector<1x256xi32>
    %210 = arith.andi %205, %209 : vector<1x256xi1>
    %cst_65 = arith.constant 0.000000e+00 : f32
    %211 = vector.shape_cast %210 : vector<1x256xi1> to vector<1x256xi1>
    %212 = vector.broadcast %211 : vector<1x256xi1> to vector<2x256xi1>
    %213 = vector.broadcast %cst_65 : f32 to vector<2x256xf32>
    %214 = arith.select %212, %201, %213 : vector<2x256xi1>, vector<2x256xf32>
    %c0_66 = arith.constant 0 : index
    %c11 = arith.constant 11 : index
    %215 = vector.load %arg1[%c0_66, %c11] : memref<2x49xf32, #tpu.memory_space<vmem>>, vector<2x1xf32>
    %216 = vector.broadcast %215 : vector<2x1xf32> to vector<2x256xf32>
    %217 = arith.mulf %216, %214 : vector<2x256xf32>
    %218 = arith.addf %200, %217 : vector<2x256xf32>
    %219 = vector.extract_strided_slice %10 {offsets = [0, 21], sizes = [2, 256], strides = [1, 1]} : vector<2x358xf32> to vector<2x256xf32>
    %c2_i32_67 = arith.constant 2 : i32
    %220 = vector.broadcast %c2_i32_67 : i32 to vector<1x256xi32>
    %221 = arith.addi %27, %220 : vector<1x256xi32>
    %c0_i32_68 = arith.constant 0 : i32
    %222 = vector.broadcast %c0_i32_68 : i32 to vector<1x256xi32>
    %223 = arith.cmpi sge, %221, %222 : vector<1x256xi32>
    %c2_i32_69 = arith.constant 2 : i32
    %224 = vector.broadcast %c2_i32_69 : i32 to vector<1x256xi32>
    %225 = arith.addi %27, %224 : vector<1x256xi32>
    %c16_i32_70 = arith.constant 16 : i32
    %226 = vector.broadcast %c16_i32_70 : i32 to vector<1x256xi32>
    %227 = arith.cmpi slt, %225, %226 : vector<1x256xi32>
    %228 = arith.andi %223, %227 : vector<1x256xi1>
    %cst_71 = arith.constant 0.000000e+00 : f32
    %229 = vector.shape_cast %228 : vector<1x256xi1> to vector<1x256xi1>
    %230 = vector.broadcast %229 : vector<1x256xi1> to vector<2x256xi1>
    %231 = vector.broadcast %cst_71 : f32 to vector<2x256xf32>
    %232 = arith.select %230, %219, %231 : vector<2x256xi1>, vector<2x256xf32>
    %c0_72 = arith.constant 0 : index
    %c12 = arith.constant 12 : index
    %233 = vector.load %arg1[%c0_72, %c12] : memref<2x49xf32, #tpu.memory_space<vmem>>, vector<2x1xf32>
    %234 = vector.broadcast %233 : vector<2x1xf32> to vector<2x256xf32>
    %235 = arith.mulf %234, %232 : vector<2x256xf32>
    %236 = arith.addf %218, %235 : vector<2x256xf32>
    %237 = vector.extract_strided_slice %10 {offsets = [0, 22], sizes = [2, 256], strides = [1, 1]} : vector<2x358xf32> to vector<2x256xf32>
    %c3_i32_73 = arith.constant 3 : i32
    %238 = vector.broadcast %c3_i32_73 : i32 to vector<1x256xi32>
    %239 = arith.addi %27, %238 : vector<1x256xi32>
    %c0_i32_74 = arith.constant 0 : i32
    %240 = vector.broadcast %c0_i32_74 : i32 to vector<1x256xi32>
    %241 = arith.cmpi sge, %239, %240 : vector<1x256xi32>
    %c3_i32_75 = arith.constant 3 : i32
    %242 = vector.broadcast %c3_i32_75 : i32 to vector<1x256xi32>
    %243 = arith.addi %27, %242 : vector<1x256xi32>
    %c16_i32_76 = arith.constant 16 : i32
    %244 = vector.broadcast %c16_i32_76 : i32 to vector<1x256xi32>
    %245 = arith.cmpi slt, %243, %244 : vector<1x256xi32>
    %246 = arith.andi %241, %245 : vector<1x256xi1>
    %cst_77 = arith.constant 0.000000e+00 : f32
    %247 = vector.shape_cast %246 : vector<1x256xi1> to vector<1x256xi1>
    %248 = vector.broadcast %247 : vector<1x256xi1> to vector<2x256xi1>
    %249 = vector.broadcast %cst_77 : f32 to vector<2x256xf32>
    %250 = arith.select %248, %237, %249 : vector<2x256xi1>, vector<2x256xf32>
    %c0_78 = arith.constant 0 : index
    %c13 = arith.constant 13 : index
    %251 = vector.load %arg1[%c0_78, %c13] : memref<2x49xf32, #tpu.memory_space<vmem>>, vector<2x1xf32>
    %252 = vector.broadcast %251 : vector<2x1xf32> to vector<2x256xf32>
    %253 = arith.mulf %252, %250 : vector<2x256xf32>
    %254 = arith.addf %236, %253 : vector<2x256xf32>
    %255 = vector.extract_strided_slice %10 {offsets = [0, 32], sizes = [2, 256], strides = [1, 1]} : vector<2x358xf32> to vector<2x256xf32>
    %c-3_i32_79 = arith.constant -3 : i32
    %256 = vector.broadcast %c-3_i32_79 : i32 to vector<1x256xi32>
    %257 = arith.addi %27, %256 : vector<1x256xi32>
    %c0_i32_80 = arith.constant 0 : i32
    %258 = vector.broadcast %c0_i32_80 : i32 to vector<1x256xi32>
    %259 = arith.cmpi sge, %257, %258 : vector<1x256xi32>
    %c-3_i32_81 = arith.constant -3 : i32
    %260 = vector.broadcast %c-3_i32_81 : i32 to vector<1x256xi32>
    %261 = arith.addi %27, %260 : vector<1x256xi32>
    %c16_i32_82 = arith.constant 16 : i32
    %262 = vector.broadcast %c16_i32_82 : i32 to vector<1x256xi32>
    %263 = arith.cmpi slt, %261, %262 : vector<1x256xi32>
    %264 = arith.andi %259, %263 : vector<1x256xi1>
    %cst_83 = arith.constant 0.000000e+00 : f32
    %265 = vector.shape_cast %264 : vector<1x256xi1> to vector<1x256xi1>
    %266 = vector.broadcast %265 : vector<1x256xi1> to vector<2x256xi1>
    %267 = vector.broadcast %cst_83 : f32 to vector<2x256xf32>
    %268 = arith.select %266, %255, %267 : vector<2x256xi1>, vector<2x256xf32>
    %c0_84 = arith.constant 0 : index
    %c14 = arith.constant 14 : index
    %269 = vector.load %arg1[%c0_84, %c14] : memref<2x49xf32, #tpu.memory_space<vmem>>, vector<2x1xf32>
    %270 = vector.broadcast %269 : vector<2x1xf32> to vector<2x256xf32>
    %271 = arith.mulf %270, %268 : vector<2x256xf32>
    %272 = arith.addf %254, %271 : vector<2x256xf32>
    %273 = vector.extract_strided_slice %10 {offsets = [0, 33], sizes = [2, 256], strides = [1, 1]} : vector<2x358xf32> to vector<2x256xf32>
    %c-2_i32_85 = arith.constant -2 : i32
    %274 = vector.broadcast %c-2_i32_85 : i32 to vector<1x256xi32>
    %275 = arith.addi %27, %274 : vector<1x256xi32>
    %c0_i32_86 = arith.constant 0 : i32
    %276 = vector.broadcast %c0_i32_86 : i32 to vector<1x256xi32>
    %277 = arith.cmpi sge, %275, %276 : vector<1x256xi32>
    %c-2_i32_87 = arith.constant -2 : i32
    %278 = vector.broadcast %c-2_i32_87 : i32 to vector<1x256xi32>
    %279 = arith.addi %27, %278 : vector<1x256xi32>
    %c16_i32_88 = arith.constant 16 : i32
    %280 = vector.broadcast %c16_i32_88 : i32 to vector<1x256xi32>
    %281 = arith.cmpi slt, %279, %280 : vector<1x256xi32>
    %282 = arith.andi %277, %281 : vector<1x256xi1>
    %cst_89 = arith.constant 0.000000e+00 : f32
    %283 = vector.shape_cast %282 : vector<1x256xi1> to vector<1x256xi1>
    %284 = vector.broadcast %283 : vector<1x256xi1> to vector<2x256xi1>
    %285 = vector.broadcast %cst_89 : f32 to vector<2x256xf32>
    %286 = arith.select %284, %273, %285 : vector<2x256xi1>, vector<2x256xf32>
    %c0_90 = arith.constant 0 : index
    %c15 = arith.constant 15 : index
    %287 = vector.load %arg1[%c0_90, %c15] : memref<2x49xf32, #tpu.memory_space<vmem>>, vector<2x1xf32>
    %288 = vector.broadcast %287 : vector<2x1xf32> to vector<2x256xf32>
    %289 = arith.mulf %288, %286 : vector<2x256xf32>
    %290 = arith.addf %272, %289 : vector<2x256xf32>
    %291 = vector.extract_strided_slice %10 {offsets = [0, 34], sizes = [2, 256], strides = [1, 1]} : vector<2x358xf32> to vector<2x256xf32>
    %c-1_i32_91 = arith.constant -1 : i32
    %292 = vector.broadcast %c-1_i32_91 : i32 to vector<1x256xi32>
    %293 = arith.addi %27, %292 : vector<1x256xi32>
    %c0_i32_92 = arith.constant 0 : i32
    %294 = vector.broadcast %c0_i32_92 : i32 to vector<1x256xi32>
    %295 = arith.cmpi sge, %293, %294 : vector<1x256xi32>
    %c-1_i32_93 = arith.constant -1 : i32
    %296 = vector.broadcast %c-1_i32_93 : i32 to vector<1x256xi32>
    %297 = arith.addi %27, %296 : vector<1x256xi32>
    %c16_i32_94 = arith.constant 16 : i32
    %298 = vector.broadcast %c16_i32_94 : i32 to vector<1x256xi32>
    %299 = arith.cmpi slt, %297, %298 : vector<1x256xi32>
    %300 = arith.andi %295, %299 : vector<1x256xi1>
    %cst_95 = arith.constant 0.000000e+00 : f32
    %301 = vector.shape_cast %300 : vector<1x256xi1> to vector<1x256xi1>
    %302 = vector.broadcast %301 : vector<1x256xi1> to vector<2x256xi1>
    %303 = vector.broadcast %cst_95 : f32 to vector<2x256xf32>
    %304 = arith.select %302, %291, %303 : vector<2x256xi1>, vector<2x256xf32>
    %c0_96 = arith.constant 0 : index
    %c16 = arith.constant 16 : index
    %305 = vector.load %arg1[%c0_96, %c16] : memref<2x49xf32, #tpu.memory_space<vmem>>, vector<2x1xf32>
    %306 = vector.broadcast %305 : vector<2x1xf32> to vector<2x256xf32>
    %307 = arith.mulf %306, %304 : vector<2x256xf32>
    %308 = arith.addf %290, %307 : vector<2x256xf32>
    %309 = vector.extract_strided_slice %10 {offsets = [0, 35], sizes = [2, 256], strides = [1, 1]} : vector<2x358xf32> to vector<2x256xf32>
    %c0_97 = arith.constant 0 : index
    %c17 = arith.constant 17 : index
    %310 = vector.load %arg1[%c0_97, %c17] : memref<2x49xf32, #tpu.memory_space<vmem>>, vector<2x1xf32>
    %311 = vector.broadcast %310 : vector<2x1xf32> to vector<2x256xf32>
    %312 = arith.mulf %311, %309 : vector<2x256xf32>
    %313 = arith.addf %308, %312 : vector<2x256xf32>
    %314 = vector.extract_strided_slice %10 {offsets = [0, 36], sizes = [2, 256], strides = [1, 1]} : vector<2x358xf32> to vector<2x256xf32>
    %c1_i32_98 = arith.constant 1 : i32
    %315 = vector.broadcast %c1_i32_98 : i32 to vector<1x256xi32>
    %316 = arith.addi %27, %315 : vector<1x256xi32>
    %c0_i32_99 = arith.constant 0 : i32
    %317 = vector.broadcast %c0_i32_99 : i32 to vector<1x256xi32>
    %318 = arith.cmpi sge, %316, %317 : vector<1x256xi32>
    %c1_i32_100 = arith.constant 1 : i32
    %319 = vector.broadcast %c1_i32_100 : i32 to vector<1x256xi32>
    %320 = arith.addi %27, %319 : vector<1x256xi32>
    %c16_i32_101 = arith.constant 16 : i32
    %321 = vector.broadcast %c16_i32_101 : i32 to vector<1x256xi32>
    %322 = arith.cmpi slt, %320, %321 : vector<1x256xi32>
    %323 = arith.andi %318, %322 : vector<1x256xi1>
    %cst_102 = arith.constant 0.000000e+00 : f32
    %324 = vector.shape_cast %323 : vector<1x256xi1> to vector<1x256xi1>
    %325 = vector.broadcast %324 : vector<1x256xi1> to vector<2x256xi1>
    %326 = vector.broadcast %cst_102 : f32 to vector<2x256xf32>
    %327 = arith.select %325, %314, %326 : vector<2x256xi1>, vector<2x256xf32>
    %c0_103 = arith.constant 0 : index
    %c18 = arith.constant 18 : index
    %328 = vector.load %arg1[%c0_103, %c18] : memref<2x49xf32, #tpu.memory_space<vmem>>, vector<2x1xf32>
    %329 = vector.broadcast %328 : vector<2x1xf32> to vector<2x256xf32>
    %330 = arith.mulf %329, %327 : vector<2x256xf32>
    %331 = arith.addf %313, %330 : vector<2x256xf32>
    %332 = vector.extract_strided_slice %10 {offsets = [0, 37], sizes = [2, 256], strides = [1, 1]} : vector<2x358xf32> to vector<2x256xf32>
    %c2_i32_104 = arith.constant 2 : i32
    %333 = vector.broadcast %c2_i32_104 : i32 to vector<1x256xi32>
    %334 = arith.addi %27, %333 : vector<1x256xi32>
    %c0_i32_105 = arith.constant 0 : i32
    %335 = vector.broadcast %c0_i32_105 : i32 to vector<1x256xi32>
    %336 = arith.cmpi sge, %334, %335 : vector<1x256xi32>
    %c2_i32_106 = arith.constant 2 : i32
    %337 = vector.broadcast %c2_i32_106 : i32 to vector<1x256xi32>
    %338 = arith.addi %27, %337 : vector<1x256xi32>
    %c16_i32_107 = arith.constant 16 : i32
    %339 = vector.broadcast %c16_i32_107 : i32 to vector<1x256xi32>
    %340 = arith.cmpi slt, %338, %339 : vector<1x256xi32>
    %341 = arith.andi %336, %340 : vector<1x256xi1>
    %cst_108 = arith.constant 0.000000e+00 : f32
    %342 = vector.shape_cast %341 : vector<1x256xi1> to vector<1x256xi1>
    %343 = vector.broadcast %342 : vector<1x256xi1> to vector<2x256xi1>
    %344 = vector.broadcast %cst_108 : f32 to vector<2x256xf32>
    %345 = arith.select %343, %332, %344 : vector<2x256xi1>, vector<2x256xf32>
    %c0_109 = arith.constant 0 : index
    %c19 = arith.constant 19 : index
    %346 = vector.load %arg1[%c0_109, %c19] : memref<2x49xf32, #tpu.memory_space<vmem>>, vector<2x1xf32>
    %347 = vector.broadcast %346 : vector<2x1xf32> to vector<2x256xf32>
    %348 = arith.mulf %347, %345 : vector<2x256xf32>
    %349 = arith.addf %331, %348 : vector<2x256xf32>
    %350 = vector.extract_strided_slice %10 {offsets = [0, 38], sizes = [2, 256], strides = [1, 1]} : vector<2x358xf32> to vector<2x256xf32>
    %c3_i32_110 = arith.constant 3 : i32
    %351 = vector.broadcast %c3_i32_110 : i32 to vector<1x256xi32>
    %352 = arith.addi %27, %351 : vector<1x256xi32>
    %c0_i32_111 = arith.constant 0 : i32
    %353 = vector.broadcast %c0_i32_111 : i32 to vector<1x256xi32>
    %354 = arith.cmpi sge, %352, %353 : vector<1x256xi32>
    %c3_i32_112 = arith.constant 3 : i32
    %355 = vector.broadcast %c3_i32_112 : i32 to vector<1x256xi32>
    %356 = arith.addi %27, %355 : vector<1x256xi32>
    %c16_i32_113 = arith.constant 16 : i32
    %357 = vector.broadcast %c16_i32_113 : i32 to vector<1x256xi32>
    %358 = arith.cmpi slt, %356, %357 : vector<1x256xi32>
    %359 = arith.andi %354, %358 : vector<1x256xi1>
    %cst_114 = arith.constant 0.000000e+00 : f32
    %360 = vector.shape_cast %359 : vector<1x256xi1> to vector<1x256xi1>
    %361 = vector.broadcast %360 : vector<1x256xi1> to vector<2x256xi1>
    %362 = vector.broadcast %cst_114 : f32 to vector<2x256xf32>
    %363 = arith.select %361, %350, %362 : vector<2x256xi1>, vector<2x256xf32>
    %c0_115 = arith.constant 0 : index
    %c20 = arith.constant 20 : index
    %364 = vector.load %arg1[%c0_115, %c20] : memref<2x49xf32, #tpu.memory_space<vmem>>, vector<2x1xf32>
    %365 = vector.broadcast %364 : vector<2x1xf32> to vector<2x256xf32>
    %366 = arith.mulf %365, %363 : vector<2x256xf32>
    %367 = arith.addf %349, %366 : vector<2x256xf32>
    %368 = vector.extract_strided_slice %10 {offsets = [0, 48], sizes = [2, 256], strides = [1, 1]} : vector<2x358xf32> to vector<2x256xf32>
    %c-3_i32_116 = arith.constant -3 : i32
    %369 = vector.broadcast %c-3_i32_116 : i32 to vector<1x256xi32>
    %370 = arith.addi %27, %369 : vector<1x256xi32>
    %c0_i32_117 = arith.constant 0 : i32
    %371 = vector.broadcast %c0_i32_117 : i32 to vector<1x256xi32>
    %372 = arith.cmpi sge, %370, %371 : vector<1x256xi32>
    %c-3_i32_118 = arith.constant -3 : i32
    %373 = vector.broadcast %c-3_i32_118 : i32 to vector<1x256xi32>
    %374 = arith.addi %27, %373 : vector<1x256xi32>
    %c16_i32_119 = arith.constant 16 : i32
    %375 = vector.broadcast %c16_i32_119 : i32 to vector<1x256xi32>
    %376 = arith.cmpi slt, %374, %375 : vector<1x256xi32>
    %377 = arith.andi %372, %376 : vector<1x256xi1>
    %cst_120 = arith.constant 0.000000e+00 : f32
    %378 = vector.shape_cast %377 : vector<1x256xi1> to vector<1x256xi1>
    %379 = vector.broadcast %378 : vector<1x256xi1> to vector<2x256xi1>
    %380 = vector.broadcast %cst_120 : f32 to vector<2x256xf32>
    %381 = arith.select %379, %368, %380 : vector<2x256xi1>, vector<2x256xf32>
    %c0_121 = arith.constant 0 : index
    %c21 = arith.constant 21 : index
    %382 = vector.load %arg1[%c0_121, %c21] : memref<2x49xf32, #tpu.memory_space<vmem>>, vector<2x1xf32>
    %383 = vector.broadcast %382 : vector<2x1xf32> to vector<2x256xf32>
    %384 = arith.mulf %383, %381 : vector<2x256xf32>
    %385 = arith.addf %367, %384 : vector<2x256xf32>
    %386 = vector.extract_strided_slice %10 {offsets = [0, 49], sizes = [2, 256], strides = [1, 1]} : vector<2x358xf32> to vector<2x256xf32>
    %c-2_i32_122 = arith.constant -2 : i32
    %387 = vector.broadcast %c-2_i32_122 : i32 to vector<1x256xi32>
    %388 = arith.addi %27, %387 : vector<1x256xi32>
    %c0_i32_123 = arith.constant 0 : i32
    %389 = vector.broadcast %c0_i32_123 : i32 to vector<1x256xi32>
    %390 = arith.cmpi sge, %388, %389 : vector<1x256xi32>
    %c-2_i32_124 = arith.constant -2 : i32
    %391 = vector.broadcast %c-2_i32_124 : i32 to vector<1x256xi32>
    %392 = arith.addi %27, %391 : vector<1x256xi32>
    %c16_i32_125 = arith.constant 16 : i32
    %393 = vector.broadcast %c16_i32_125 : i32 to vector<1x256xi32>
    %394 = arith.cmpi slt, %392, %393 : vector<1x256xi32>
    %395 = arith.andi %390, %394 : vector<1x256xi1>
    %cst_126 = arith.constant 0.000000e+00 : f32
    %396 = vector.shape_cast %395 : vector<1x256xi1> to vector<1x256xi1>
    %397 = vector.broadcast %396 : vector<1x256xi1> to vector<2x256xi1>
    %398 = vector.broadcast %cst_126 : f32 to vector<2x256xf32>
    %399 = arith.select %397, %386, %398 : vector<2x256xi1>, vector<2x256xf32>
    %c0_127 = arith.constant 0 : index
    %c22 = arith.constant 22 : index
    %400 = vector.load %arg1[%c0_127, %c22] : memref<2x49xf32, #tpu.memory_space<vmem>>, vector<2x1xf32>
    %401 = vector.broadcast %400 : vector<2x1xf32> to vector<2x256xf32>
    %402 = arith.mulf %401, %399 : vector<2x256xf32>
    %403 = arith.addf %385, %402 : vector<2x256xf32>
    %404 = vector.extract_strided_slice %10 {offsets = [0, 50], sizes = [2, 256], strides = [1, 1]} : vector<2x358xf32> to vector<2x256xf32>
    %c-1_i32_128 = arith.constant -1 : i32
    %405 = vector.broadcast %c-1_i32_128 : i32 to vector<1x256xi32>
    %406 = arith.addi %27, %405 : vector<1x256xi32>
    %c0_i32_129 = arith.constant 0 : i32
    %407 = vector.broadcast %c0_i32_129 : i32 to vector<1x256xi32>
    %408 = arith.cmpi sge, %406, %407 : vector<1x256xi32>
    %c-1_i32_130 = arith.constant -1 : i32
    %409 = vector.broadcast %c-1_i32_130 : i32 to vector<1x256xi32>
    %410 = arith.addi %27, %409 : vector<1x256xi32>
    %c16_i32_131 = arith.constant 16 : i32
    %411 = vector.broadcast %c16_i32_131 : i32 to vector<1x256xi32>
    %412 = arith.cmpi slt, %410, %411 : vector<1x256xi32>
    %413 = arith.andi %408, %412 : vector<1x256xi1>
    %cst_132 = arith.constant 0.000000e+00 : f32
    %414 = vector.shape_cast %413 : vector<1x256xi1> to vector<1x256xi1>
    %415 = vector.broadcast %414 : vector<1x256xi1> to vector<2x256xi1>
    %416 = vector.broadcast %cst_132 : f32 to vector<2x256xf32>
    %417 = arith.select %415, %404, %416 : vector<2x256xi1>, vector<2x256xf32>
    %c0_133 = arith.constant 0 : index
    %c23 = arith.constant 23 : index
    %418 = vector.load %arg1[%c0_133, %c23] : memref<2x49xf32, #tpu.memory_space<vmem>>, vector<2x1xf32>
    %419 = vector.broadcast %418 : vector<2x1xf32> to vector<2x256xf32>
    %420 = arith.mulf %419, %417 : vector<2x256xf32>
    %421 = arith.addf %403, %420 : vector<2x256xf32>
    %422 = vector.extract_strided_slice %10 {offsets = [0, 51], sizes = [2, 256], strides = [1, 1]} : vector<2x358xf32> to vector<2x256xf32>
    %c0_134 = arith.constant 0 : index
    %c24 = arith.constant 24 : index
    %423 = vector.load %arg1[%c0_134, %c24] : memref<2x49xf32, #tpu.memory_space<vmem>>, vector<2x1xf32>
    %424 = vector.broadcast %423 : vector<2x1xf32> to vector<2x256xf32>
    %425 = arith.mulf %424, %422 : vector<2x256xf32>
    %426 = arith.addf %421, %425 : vector<2x256xf32>
    %427 = vector.extract_strided_slice %10 {offsets = [0, 52], sizes = [2, 256], strides = [1, 1]} : vector<2x358xf32> to vector<2x256xf32>
    %c1_i32_135 = arith.constant 1 : i32
    %428 = vector.broadcast %c1_i32_135 : i32 to vector<1x256xi32>
    %429 = arith.addi %27, %428 : vector<1x256xi32>
    %c0_i32_136 = arith.constant 0 : i32
    %430 = vector.broadcast %c0_i32_136 : i32 to vector<1x256xi32>
    %431 = arith.cmpi sge, %429, %430 : vector<1x256xi32>
    %c1_i32_137 = arith.constant 1 : i32
    %432 = vector.broadcast %c1_i32_137 : i32 to vector<1x256xi32>
    %433 = arith.addi %27, %432 : vector<1x256xi32>
    %c16_i32_138 = arith.constant 16 : i32
    %434 = vector.broadcast %c16_i32_138 : i32 to vector<1x256xi32>
    %435 = arith.cmpi slt, %433, %434 : vector<1x256xi32>
    %436 = arith.andi %431, %435 : vector<1x256xi1>
    %cst_139 = arith.constant 0.000000e+00 : f32
    %437 = vector.shape_cast %436 : vector<1x256xi1> to vector<1x256xi1>
    %438 = vector.broadcast %437 : vector<1x256xi1> to vector<2x256xi1>
    %439 = vector.broadcast %cst_139 : f32 to vector<2x256xf32>
    %440 = arith.select %438, %427, %439 : vector<2x256xi1>, vector<2x256xf32>
    %c0_140 = arith.constant 0 : index
    %c25 = arith.constant 25 : index
    %441 = vector.load %arg1[%c0_140, %c25] : memref<2x49xf32, #tpu.memory_space<vmem>>, vector<2x1xf32>
    %442 = vector.broadcast %441 : vector<2x1xf32> to vector<2x256xf32>
    %443 = arith.mulf %442, %440 : vector<2x256xf32>
    %444 = arith.addf %426, %443 : vector<2x256xf32>
    %445 = vector.extract_strided_slice %10 {offsets = [0, 53], sizes = [2, 256], strides = [1, 1]} : vector<2x358xf32> to vector<2x256xf32>
    %c2_i32_141 = arith.constant 2 : i32
    %446 = vector.broadcast %c2_i32_141 : i32 to vector<1x256xi32>
    %447 = arith.addi %27, %446 : vector<1x256xi32>
    %c0_i32_142 = arith.constant 0 : i32
    %448 = vector.broadcast %c0_i32_142 : i32 to vector<1x256xi32>
    %449 = arith.cmpi sge, %447, %448 : vector<1x256xi32>
    %c2_i32_143 = arith.constant 2 : i32
    %450 = vector.broadcast %c2_i32_143 : i32 to vector<1x256xi32>
    %451 = arith.addi %27, %450 : vector<1x256xi32>
    %c16_i32_144 = arith.constant 16 : i32
    %452 = vector.broadcast %c16_i32_144 : i32 to vector<1x256xi32>
    %453 = arith.cmpi slt, %451, %452 : vector<1x256xi32>
    %454 = arith.andi %449, %453 : vector<1x256xi1>
    %cst_145 = arith.constant 0.000000e+00 : f32
    %455 = vector.shape_cast %454 : vector<1x256xi1> to vector<1x256xi1>
    %456 = vector.broadcast %455 : vector<1x256xi1> to vector<2x256xi1>
    %457 = vector.broadcast %cst_145 : f32 to vector<2x256xf32>
    %458 = arith.select %456, %445, %457 : vector<2x256xi1>, vector<2x256xf32>
    %c0_146 = arith.constant 0 : index
    %c26 = arith.constant 26 : index
    %459 = vector.load %arg1[%c0_146, %c26] : memref<2x49xf32, #tpu.memory_space<vmem>>, vector<2x1xf32>
    %460 = vector.broadcast %459 : vector<2x1xf32> to vector<2x256xf32>
    %461 = arith.mulf %460, %458 : vector<2x256xf32>
    %462 = arith.addf %444, %461 : vector<2x256xf32>
    %463 = vector.extract_strided_slice %10 {offsets = [0, 54], sizes = [2, 256], strides = [1, 1]} : vector<2x358xf32> to vector<2x256xf32>
    %c3_i32_147 = arith.constant 3 : i32
    %464 = vector.broadcast %c3_i32_147 : i32 to vector<1x256xi32>
    %465 = arith.addi %27, %464 : vector<1x256xi32>
    %c0_i32_148 = arith.constant 0 : i32
    %466 = vector.broadcast %c0_i32_148 : i32 to vector<1x256xi32>
    %467 = arith.cmpi sge, %465, %466 : vector<1x256xi32>
    %c3_i32_149 = arith.constant 3 : i32
    %468 = vector.broadcast %c3_i32_149 : i32 to vector<1x256xi32>
    %469 = arith.addi %27, %468 : vector<1x256xi32>
    %c16_i32_150 = arith.constant 16 : i32
    %470 = vector.broadcast %c16_i32_150 : i32 to vector<1x256xi32>
    %471 = arith.cmpi slt, %469, %470 : vector<1x256xi32>
    %472 = arith.andi %467, %471 : vector<1x256xi1>
    %cst_151 = arith.constant 0.000000e+00 : f32
    %473 = vector.shape_cast %472 : vector<1x256xi1> to vector<1x256xi1>
    %474 = vector.broadcast %473 : vector<1x256xi1> to vector<2x256xi1>
    %475 = vector.broadcast %cst_151 : f32 to vector<2x256xf32>
    %476 = arith.select %474, %463, %475 : vector<2x256xi1>, vector<2x256xf32>
    %c0_152 = arith.constant 0 : index
    %c27 = arith.constant 27 : index
    %477 = vector.load %arg1[%c0_152, %c27] : memref<2x49xf32, #tpu.memory_space<vmem>>, vector<2x1xf32>
    %478 = vector.broadcast %477 : vector<2x1xf32> to vector<2x256xf32>
    %479 = arith.mulf %478, %476 : vector<2x256xf32>
    %480 = arith.addf %462, %479 : vector<2x256xf32>
    %481 = vector.extract_strided_slice %10 {offsets = [0, 64], sizes = [2, 256], strides = [1, 1]} : vector<2x358xf32> to vector<2x256xf32>
    %c-3_i32_153 = arith.constant -3 : i32
    %482 = vector.broadcast %c-3_i32_153 : i32 to vector<1x256xi32>
    %483 = arith.addi %27, %482 : vector<1x256xi32>
    %c0_i32_154 = arith.constant 0 : i32
    %484 = vector.broadcast %c0_i32_154 : i32 to vector<1x256xi32>
    %485 = arith.cmpi sge, %483, %484 : vector<1x256xi32>
    %c-3_i32_155 = arith.constant -3 : i32
    %486 = vector.broadcast %c-3_i32_155 : i32 to vector<1x256xi32>
    %487 = arith.addi %27, %486 : vector<1x256xi32>
    %c16_i32_156 = arith.constant 16 : i32
    %488 = vector.broadcast %c16_i32_156 : i32 to vector<1x256xi32>
    %489 = arith.cmpi slt, %487, %488 : vector<1x256xi32>
    %490 = arith.andi %485, %489 : vector<1x256xi1>
    %cst_157 = arith.constant 0.000000e+00 : f32
    %491 = vector.shape_cast %490 : vector<1x256xi1> to vector<1x256xi1>
    %492 = vector.broadcast %491 : vector<1x256xi1> to vector<2x256xi1>
    %493 = vector.broadcast %cst_157 : f32 to vector<2x256xf32>
    %494 = arith.select %492, %481, %493 : vector<2x256xi1>, vector<2x256xf32>
    %c0_158 = arith.constant 0 : index
    %c28 = arith.constant 28 : index
    %495 = vector.load %arg1[%c0_158, %c28] : memref<2x49xf32, #tpu.memory_space<vmem>>, vector<2x1xf32>
    %496 = vector.broadcast %495 : vector<2x1xf32> to vector<2x256xf32>
    %497 = arith.mulf %496, %494 : vector<2x256xf32>
    %498 = arith.addf %480, %497 : vector<2x256xf32>
    %499 = vector.extract_strided_slice %10 {offsets = [0, 65], sizes = [2, 256], strides = [1, 1]} : vector<2x358xf32> to vector<2x256xf32>
    %c-2_i32_159 = arith.constant -2 : i32
    %500 = vector.broadcast %c-2_i32_159 : i32 to vector<1x256xi32>
    %501 = arith.addi %27, %500 : vector<1x256xi32>
    %c0_i32_160 = arith.constant 0 : i32
    %502 = vector.broadcast %c0_i32_160 : i32 to vector<1x256xi32>
    %503 = arith.cmpi sge, %501, %502 : vector<1x256xi32>
    %c-2_i32_161 = arith.constant -2 : i32
    %504 = vector.broadcast %c-2_i32_161 : i32 to vector<1x256xi32>
    %505 = arith.addi %27, %504 : vector<1x256xi32>
    %c16_i32_162 = arith.constant 16 : i32
    %506 = vector.broadcast %c16_i32_162 : i32 to vector<1x256xi32>
    %507 = arith.cmpi slt, %505, %506 : vector<1x256xi32>
    %508 = arith.andi %503, %507 : vector<1x256xi1>
    %cst_163 = arith.constant 0.000000e+00 : f32
    %509 = vector.shape_cast %508 : vector<1x256xi1> to vector<1x256xi1>
    %510 = vector.broadcast %509 : vector<1x256xi1> to vector<2x256xi1>
    %511 = vector.broadcast %cst_163 : f32 to vector<2x256xf32>
    %512 = arith.select %510, %499, %511 : vector<2x256xi1>, vector<2x256xf32>
    %c0_164 = arith.constant 0 : index
    %c29 = arith.constant 29 : index
    %513 = vector.load %arg1[%c0_164, %c29] : memref<2x49xf32, #tpu.memory_space<vmem>>, vector<2x1xf32>
    %514 = vector.broadcast %513 : vector<2x1xf32> to vector<2x256xf32>
    %515 = arith.mulf %514, %512 : vector<2x256xf32>
    %516 = arith.addf %498, %515 : vector<2x256xf32>
    %517 = vector.extract_strided_slice %10 {offsets = [0, 66], sizes = [2, 256], strides = [1, 1]} : vector<2x358xf32> to vector<2x256xf32>
    %c-1_i32_165 = arith.constant -1 : i32
    %518 = vector.broadcast %c-1_i32_165 : i32 to vector<1x256xi32>
    %519 = arith.addi %27, %518 : vector<1x256xi32>
    %c0_i32_166 = arith.constant 0 : i32
    %520 = vector.broadcast %c0_i32_166 : i32 to vector<1x256xi32>
    %521 = arith.cmpi sge, %519, %520 : vector<1x256xi32>
    %c-1_i32_167 = arith.constant -1 : i32
    %522 = vector.broadcast %c-1_i32_167 : i32 to vector<1x256xi32>
    %523 = arith.addi %27, %522 : vector<1x256xi32>
    %c16_i32_168 = arith.constant 16 : i32
    %524 = vector.broadcast %c16_i32_168 : i32 to vector<1x256xi32>
    %525 = arith.cmpi slt, %523, %524 : vector<1x256xi32>
    %526 = arith.andi %521, %525 : vector<1x256xi1>
    %cst_169 = arith.constant 0.000000e+00 : f32
    %527 = vector.shape_cast %526 : vector<1x256xi1> to vector<1x256xi1>
    %528 = vector.broadcast %527 : vector<1x256xi1> to vector<2x256xi1>
    %529 = vector.broadcast %cst_169 : f32 to vector<2x256xf32>
    %530 = arith.select %528, %517, %529 : vector<2x256xi1>, vector<2x256xf32>
    %c0_170 = arith.constant 0 : index
    %c30 = arith.constant 30 : index
    %531 = vector.load %arg1[%c0_170, %c30] : memref<2x49xf32, #tpu.memory_space<vmem>>, vector<2x1xf32>
    %532 = vector.broadcast %531 : vector<2x1xf32> to vector<2x256xf32>
    %533 = arith.mulf %532, %530 : vector<2x256xf32>
    %534 = arith.addf %516, %533 : vector<2x256xf32>
    %535 = vector.extract_strided_slice %10 {offsets = [0, 67], sizes = [2, 256], strides = [1, 1]} : vector<2x358xf32> to vector<2x256xf32>
    %c0_171 = arith.constant 0 : index
    %c31 = arith.constant 31 : index
    %536 = vector.load %arg1[%c0_171, %c31] : memref<2x49xf32, #tpu.memory_space<vmem>>, vector<2x1xf32>
    %537 = vector.broadcast %536 : vector<2x1xf32> to vector<2x256xf32>
    %538 = arith.mulf %537, %535 : vector<2x256xf32>
    %539 = arith.addf %534, %538 : vector<2x256xf32>
    %540 = vector.extract_strided_slice %10 {offsets = [0, 68], sizes = [2, 256], strides = [1, 1]} : vector<2x358xf32> to vector<2x256xf32>
    %c1_i32_172 = arith.constant 1 : i32
    %541 = vector.broadcast %c1_i32_172 : i32 to vector<1x256xi32>
    %542 = arith.addi %27, %541 : vector<1x256xi32>
    %c0_i32_173 = arith.constant 0 : i32
    %543 = vector.broadcast %c0_i32_173 : i32 to vector<1x256xi32>
    %544 = arith.cmpi sge, %542, %543 : vector<1x256xi32>
    %c1_i32_174 = arith.constant 1 : i32
    %545 = vector.broadcast %c1_i32_174 : i32 to vector<1x256xi32>
    %546 = arith.addi %27, %545 : vector<1x256xi32>
    %c16_i32_175 = arith.constant 16 : i32
    %547 = vector.broadcast %c16_i32_175 : i32 to vector<1x256xi32>
    %548 = arith.cmpi slt, %546, %547 : vector<1x256xi32>
    %549 = arith.andi %544, %548 : vector<1x256xi1>
    %cst_176 = arith.constant 0.000000e+00 : f32
    %550 = vector.shape_cast %549 : vector<1x256xi1> to vector<1x256xi1>
    %551 = vector.broadcast %550 : vector<1x256xi1> to vector<2x256xi1>
    %552 = vector.broadcast %cst_176 : f32 to vector<2x256xf32>
    %553 = arith.select %551, %540, %552 : vector<2x256xi1>, vector<2x256xf32>
    %c0_177 = arith.constant 0 : index
    %c32 = arith.constant 32 : index
    %554 = vector.load %arg1[%c0_177, %c32] : memref<2x49xf32, #tpu.memory_space<vmem>>, vector<2x1xf32>
    %555 = vector.broadcast %554 : vector<2x1xf32> to vector<2x256xf32>
    %556 = arith.mulf %555, %553 : vector<2x256xf32>
    %557 = arith.addf %539, %556 : vector<2x256xf32>
    %558 = vector.extract_strided_slice %10 {offsets = [0, 69], sizes = [2, 256], strides = [1, 1]} : vector<2x358xf32> to vector<2x256xf32>
    %c2_i32_178 = arith.constant 2 : i32
    %559 = vector.broadcast %c2_i32_178 : i32 to vector<1x256xi32>
    %560 = arith.addi %27, %559 : vector<1x256xi32>
    %c0_i32_179 = arith.constant 0 : i32
    %561 = vector.broadcast %c0_i32_179 : i32 to vector<1x256xi32>
    %562 = arith.cmpi sge, %560, %561 : vector<1x256xi32>
    %c2_i32_180 = arith.constant 2 : i32
    %563 = vector.broadcast %c2_i32_180 : i32 to vector<1x256xi32>
    %564 = arith.addi %27, %563 : vector<1x256xi32>
    %c16_i32_181 = arith.constant 16 : i32
    %565 = vector.broadcast %c16_i32_181 : i32 to vector<1x256xi32>
    %566 = arith.cmpi slt, %564, %565 : vector<1x256xi32>
    %567 = arith.andi %562, %566 : vector<1x256xi1>
    %cst_182 = arith.constant 0.000000e+00 : f32
    %568 = vector.shape_cast %567 : vector<1x256xi1> to vector<1x256xi1>
    %569 = vector.broadcast %568 : vector<1x256xi1> to vector<2x256xi1>
    %570 = vector.broadcast %cst_182 : f32 to vector<2x256xf32>
    %571 = arith.select %569, %558, %570 : vector<2x256xi1>, vector<2x256xf32>
    %c0_183 = arith.constant 0 : index
    %c33 = arith.constant 33 : index
    %572 = vector.load %arg1[%c0_183, %c33] : memref<2x49xf32, #tpu.memory_space<vmem>>, vector<2x1xf32>
    %573 = vector.broadcast %572 : vector<2x1xf32> to vector<2x256xf32>
    %574 = arith.mulf %573, %571 : vector<2x256xf32>
    %575 = arith.addf %557, %574 : vector<2x256xf32>
    %576 = vector.extract_strided_slice %10 {offsets = [0, 70], sizes = [2, 256], strides = [1, 1]} : vector<2x358xf32> to vector<2x256xf32>
    %c3_i32_184 = arith.constant 3 : i32
    %577 = vector.broadcast %c3_i32_184 : i32 to vector<1x256xi32>
    %578 = arith.addi %27, %577 : vector<1x256xi32>
    %c0_i32_185 = arith.constant 0 : i32
    %579 = vector.broadcast %c0_i32_185 : i32 to vector<1x256xi32>
    %580 = arith.cmpi sge, %578, %579 : vector<1x256xi32>
    %c3_i32_186 = arith.constant 3 : i32
    %581 = vector.broadcast %c3_i32_186 : i32 to vector<1x256xi32>
    %582 = arith.addi %27, %581 : vector<1x256xi32>
    %c16_i32_187 = arith.constant 16 : i32
    %583 = vector.broadcast %c16_i32_187 : i32 to vector<1x256xi32>
    %584 = arith.cmpi slt, %582, %583 : vector<1x256xi32>
    %585 = arith.andi %580, %584 : vector<1x256xi1>
    %cst_188 = arith.constant 0.000000e+00 : f32
    %586 = vector.shape_cast %585 : vector<1x256xi1> to vector<1x256xi1>
    %587 = vector.broadcast %586 : vector<1x256xi1> to vector<2x256xi1>
    %588 = vector.broadcast %cst_188 : f32 to vector<2x256xf32>
    %589 = arith.select %587, %576, %588 : vector<2x256xi1>, vector<2x256xf32>
    %c0_189 = arith.constant 0 : index
    %c34 = arith.constant 34 : index
    %590 = vector.load %arg1[%c0_189, %c34] : memref<2x49xf32, #tpu.memory_space<vmem>>, vector<2x1xf32>
    %591 = vector.broadcast %590 : vector<2x1xf32> to vector<2x256xf32>
    %592 = arith.mulf %591, %589 : vector<2x256xf32>
    %593 = arith.addf %575, %592 : vector<2x256xf32>
    %594 = vector.extract_strided_slice %10 {offsets = [0, 80], sizes = [2, 256], strides = [1, 1]} : vector<2x358xf32> to vector<2x256xf32>
    %c-3_i32_190 = arith.constant -3 : i32
    %595 = vector.broadcast %c-3_i32_190 : i32 to vector<1x256xi32>
    %596 = arith.addi %27, %595 : vector<1x256xi32>
    %c0_i32_191 = arith.constant 0 : i32
    %597 = vector.broadcast %c0_i32_191 : i32 to vector<1x256xi32>
    %598 = arith.cmpi sge, %596, %597 : vector<1x256xi32>
    %c-3_i32_192 = arith.constant -3 : i32
    %599 = vector.broadcast %c-3_i32_192 : i32 to vector<1x256xi32>
    %600 = arith.addi %27, %599 : vector<1x256xi32>
    %c16_i32_193 = arith.constant 16 : i32
    %601 = vector.broadcast %c16_i32_193 : i32 to vector<1x256xi32>
    %602 = arith.cmpi slt, %600, %601 : vector<1x256xi32>
    %603 = arith.andi %598, %602 : vector<1x256xi1>
    %cst_194 = arith.constant 0.000000e+00 : f32
    %604 = vector.shape_cast %603 : vector<1x256xi1> to vector<1x256xi1>
    %605 = vector.broadcast %604 : vector<1x256xi1> to vector<2x256xi1>
    %606 = vector.broadcast %cst_194 : f32 to vector<2x256xf32>
    %607 = arith.select %605, %594, %606 : vector<2x256xi1>, vector<2x256xf32>
    %c0_195 = arith.constant 0 : index
    %c35 = arith.constant 35 : index
    %608 = vector.load %arg1[%c0_195, %c35] : memref<2x49xf32, #tpu.memory_space<vmem>>, vector<2x1xf32>
    %609 = vector.broadcast %608 : vector<2x1xf32> to vector<2x256xf32>
    %610 = arith.mulf %609, %607 : vector<2x256xf32>
    %611 = arith.addf %593, %610 : vector<2x256xf32>
    %612 = vector.extract_strided_slice %10 {offsets = [0, 81], sizes = [2, 256], strides = [1, 1]} : vector<2x358xf32> to vector<2x256xf32>
    %c-2_i32_196 = arith.constant -2 : i32
    %613 = vector.broadcast %c-2_i32_196 : i32 to vector<1x256xi32>
    %614 = arith.addi %27, %613 : vector<1x256xi32>
    %c0_i32_197 = arith.constant 0 : i32
    %615 = vector.broadcast %c0_i32_197 : i32 to vector<1x256xi32>
    %616 = arith.cmpi sge, %614, %615 : vector<1x256xi32>
    %c-2_i32_198 = arith.constant -2 : i32
    %617 = vector.broadcast %c-2_i32_198 : i32 to vector<1x256xi32>
    %618 = arith.addi %27, %617 : vector<1x256xi32>
    %c16_i32_199 = arith.constant 16 : i32
    %619 = vector.broadcast %c16_i32_199 : i32 to vector<1x256xi32>
    %620 = arith.cmpi slt, %618, %619 : vector<1x256xi32>
    %621 = arith.andi %616, %620 : vector<1x256xi1>
    %cst_200 = arith.constant 0.000000e+00 : f32
    %622 = vector.shape_cast %621 : vector<1x256xi1> to vector<1x256xi1>
    %623 = vector.broadcast %622 : vector<1x256xi1> to vector<2x256xi1>
    %624 = vector.broadcast %cst_200 : f32 to vector<2x256xf32>
    %625 = arith.select %623, %612, %624 : vector<2x256xi1>, vector<2x256xf32>
    %c0_201 = arith.constant 0 : index
    %c36 = arith.constant 36 : index
    %626 = vector.load %arg1[%c0_201, %c36] : memref<2x49xf32, #tpu.memory_space<vmem>>, vector<2x1xf32>
    %627 = vector.broadcast %626 : vector<2x1xf32> to vector<2x256xf32>
    %628 = arith.mulf %627, %625 : vector<2x256xf32>
    %629 = arith.addf %611, %628 : vector<2x256xf32>
    %630 = vector.extract_strided_slice %10 {offsets = [0, 82], sizes = [2, 256], strides = [1, 1]} : vector<2x358xf32> to vector<2x256xf32>
    %c-1_i32_202 = arith.constant -1 : i32
    %631 = vector.broadcast %c-1_i32_202 : i32 to vector<1x256xi32>
    %632 = arith.addi %27, %631 : vector<1x256xi32>
    %c0_i32_203 = arith.constant 0 : i32
    %633 = vector.broadcast %c0_i32_203 : i32 to vector<1x256xi32>
    %634 = arith.cmpi sge, %632, %633 : vector<1x256xi32>
    %c-1_i32_204 = arith.constant -1 : i32
    %635 = vector.broadcast %c-1_i32_204 : i32 to vector<1x256xi32>
    %636 = arith.addi %27, %635 : vector<1x256xi32>
    %c16_i32_205 = arith.constant 16 : i32
    %637 = vector.broadcast %c16_i32_205 : i32 to vector<1x256xi32>
    %638 = arith.cmpi slt, %636, %637 : vector<1x256xi32>
    %639 = arith.andi %634, %638 : vector<1x256xi1>
    %cst_206 = arith.constant 0.000000e+00 : f32
    %640 = vector.shape_cast %639 : vector<1x256xi1> to vector<1x256xi1>
    %641 = vector.broadcast %640 : vector<1x256xi1> to vector<2x256xi1>
    %642 = vector.broadcast %cst_206 : f32 to vector<2x256xf32>
    %643 = arith.select %641, %630, %642 : vector<2x256xi1>, vector<2x256xf32>
    %c0_207 = arith.constant 0 : index
    %c37 = arith.constant 37 : index
    %644 = vector.load %arg1[%c0_207, %c37] : memref<2x49xf32, #tpu.memory_space<vmem>>, vector<2x1xf32>
    %645 = vector.broadcast %644 : vector<2x1xf32> to vector<2x256xf32>
    %646 = arith.mulf %645, %643 : vector<2x256xf32>
    %647 = arith.addf %629, %646 : vector<2x256xf32>
    %648 = vector.extract_strided_slice %10 {offsets = [0, 83], sizes = [2, 256], strides = [1, 1]} : vector<2x358xf32> to vector<2x256xf32>
    %c0_208 = arith.constant 0 : index
    %c38 = arith.constant 38 : index
    %649 = vector.load %arg1[%c0_208, %c38] : memref<2x49xf32, #tpu.memory_space<vmem>>, vector<2x1xf32>
    %650 = vector.broadcast %649 : vector<2x1xf32> to vector<2x256xf32>
    %651 = arith.mulf %650, %648 : vector<2x256xf32>
    %652 = arith.addf %647, %651 : vector<2x256xf32>
    %653 = vector.extract_strided_slice %10 {offsets = [0, 84], sizes = [2, 256], strides = [1, 1]} : vector<2x358xf32> to vector<2x256xf32>
    %c1_i32_209 = arith.constant 1 : i32
    %654 = vector.broadcast %c1_i32_209 : i32 to vector<1x256xi32>
    %655 = arith.addi %27, %654 : vector<1x256xi32>
    %c0_i32_210 = arith.constant 0 : i32
    %656 = vector.broadcast %c0_i32_210 : i32 to vector<1x256xi32>
    %657 = arith.cmpi sge, %655, %656 : vector<1x256xi32>
    %c1_i32_211 = arith.constant 1 : i32
    %658 = vector.broadcast %c1_i32_211 : i32 to vector<1x256xi32>
    %659 = arith.addi %27, %658 : vector<1x256xi32>
    %c16_i32_212 = arith.constant 16 : i32
    %660 = vector.broadcast %c16_i32_212 : i32 to vector<1x256xi32>
    %661 = arith.cmpi slt, %659, %660 : vector<1x256xi32>
    %662 = arith.andi %657, %661 : vector<1x256xi1>
    %cst_213 = arith.constant 0.000000e+00 : f32
    %663 = vector.shape_cast %662 : vector<1x256xi1> to vector<1x256xi1>
    %664 = vector.broadcast %663 : vector<1x256xi1> to vector<2x256xi1>
    %665 = vector.broadcast %cst_213 : f32 to vector<2x256xf32>
    %666 = arith.select %664, %653, %665 : vector<2x256xi1>, vector<2x256xf32>
    %c0_214 = arith.constant 0 : index
    %c39 = arith.constant 39 : index
    %667 = vector.load %arg1[%c0_214, %c39] : memref<2x49xf32, #tpu.memory_space<vmem>>, vector<2x1xf32>
    %668 = vector.broadcast %667 : vector<2x1xf32> to vector<2x256xf32>
    %669 = arith.mulf %668, %666 : vector<2x256xf32>
    %670 = arith.addf %652, %669 : vector<2x256xf32>
    %671 = vector.extract_strided_slice %10 {offsets = [0, 85], sizes = [2, 256], strides = [1, 1]} : vector<2x358xf32> to vector<2x256xf32>
    %c2_i32_215 = arith.constant 2 : i32
    %672 = vector.broadcast %c2_i32_215 : i32 to vector<1x256xi32>
    %673 = arith.addi %27, %672 : vector<1x256xi32>
    %c0_i32_216 = arith.constant 0 : i32
    %674 = vector.broadcast %c0_i32_216 : i32 to vector<1x256xi32>
    %675 = arith.cmpi sge, %673, %674 : vector<1x256xi32>
    %c2_i32_217 = arith.constant 2 : i32
    %676 = vector.broadcast %c2_i32_217 : i32 to vector<1x256xi32>
    %677 = arith.addi %27, %676 : vector<1x256xi32>
    %c16_i32_218 = arith.constant 16 : i32
    %678 = vector.broadcast %c16_i32_218 : i32 to vector<1x256xi32>
    %679 = arith.cmpi slt, %677, %678 : vector<1x256xi32>
    %680 = arith.andi %675, %679 : vector<1x256xi1>
    %cst_219 = arith.constant 0.000000e+00 : f32
    %681 = vector.shape_cast %680 : vector<1x256xi1> to vector<1x256xi1>
    %682 = vector.broadcast %681 : vector<1x256xi1> to vector<2x256xi1>
    %683 = vector.broadcast %cst_219 : f32 to vector<2x256xf32>
    %684 = arith.select %682, %671, %683 : vector<2x256xi1>, vector<2x256xf32>
    %c0_220 = arith.constant 0 : index
    %c40 = arith.constant 40 : index
    %685 = vector.load %arg1[%c0_220, %c40] : memref<2x49xf32, #tpu.memory_space<vmem>>, vector<2x1xf32>
    %686 = vector.broadcast %685 : vector<2x1xf32> to vector<2x256xf32>
    %687 = arith.mulf %686, %684 : vector<2x256xf32>
    %688 = arith.addf %670, %687 : vector<2x256xf32>
    %689 = vector.extract_strided_slice %10 {offsets = [0, 86], sizes = [2, 256], strides = [1, 1]} : vector<2x358xf32> to vector<2x256xf32>
    %c3_i32_221 = arith.constant 3 : i32
    %690 = vector.broadcast %c3_i32_221 : i32 to vector<1x256xi32>
    %691 = arith.addi %27, %690 : vector<1x256xi32>
    %c0_i32_222 = arith.constant 0 : i32
    %692 = vector.broadcast %c0_i32_222 : i32 to vector<1x256xi32>
    %693 = arith.cmpi sge, %691, %692 : vector<1x256xi32>
    %c3_i32_223 = arith.constant 3 : i32
    %694 = vector.broadcast %c3_i32_223 : i32 to vector<1x256xi32>
    %695 = arith.addi %27, %694 : vector<1x256xi32>
    %c16_i32_224 = arith.constant 16 : i32
    %696 = vector.broadcast %c16_i32_224 : i32 to vector<1x256xi32>
    %697 = arith.cmpi slt, %695, %696 : vector<1x256xi32>
    %698 = arith.andi %693, %697 : vector<1x256xi1>
    %cst_225 = arith.constant 0.000000e+00 : f32
    %699 = vector.shape_cast %698 : vector<1x256xi1> to vector<1x256xi1>
    %700 = vector.broadcast %699 : vector<1x256xi1> to vector<2x256xi1>
    %701 = vector.broadcast %cst_225 : f32 to vector<2x256xf32>
    %702 = arith.select %700, %689, %701 : vector<2x256xi1>, vector<2x256xf32>
    %c0_226 = arith.constant 0 : index
    %c41 = arith.constant 41 : index
    %703 = vector.load %arg1[%c0_226, %c41] : memref<2x49xf32, #tpu.memory_space<vmem>>, vector<2x1xf32>
    %704 = vector.broadcast %703 : vector<2x1xf32> to vector<2x256xf32>
    %705 = arith.mulf %704, %702 : vector<2x256xf32>
    %706 = arith.addf %688, %705 : vector<2x256xf32>
    %707 = vector.extract_strided_slice %10 {offsets = [0, 96], sizes = [2, 256], strides = [1, 1]} : vector<2x358xf32> to vector<2x256xf32>
    %c-3_i32_227 = arith.constant -3 : i32
    %708 = vector.broadcast %c-3_i32_227 : i32 to vector<1x256xi32>
    %709 = arith.addi %27, %708 : vector<1x256xi32>
    %c0_i32_228 = arith.constant 0 : i32
    %710 = vector.broadcast %c0_i32_228 : i32 to vector<1x256xi32>
    %711 = arith.cmpi sge, %709, %710 : vector<1x256xi32>
    %c-3_i32_229 = arith.constant -3 : i32
    %712 = vector.broadcast %c-3_i32_229 : i32 to vector<1x256xi32>
    %713 = arith.addi %27, %712 : vector<1x256xi32>
    %c16_i32_230 = arith.constant 16 : i32
    %714 = vector.broadcast %c16_i32_230 : i32 to vector<1x256xi32>
    %715 = arith.cmpi slt, %713, %714 : vector<1x256xi32>
    %716 = arith.andi %711, %715 : vector<1x256xi1>
    %cst_231 = arith.constant 0.000000e+00 : f32
    %717 = vector.shape_cast %716 : vector<1x256xi1> to vector<1x256xi1>
    %718 = vector.broadcast %717 : vector<1x256xi1> to vector<2x256xi1>
    %719 = vector.broadcast %cst_231 : f32 to vector<2x256xf32>
    %720 = arith.select %718, %707, %719 : vector<2x256xi1>, vector<2x256xf32>
    %c0_232 = arith.constant 0 : index
    %c42 = arith.constant 42 : index
    %721 = vector.load %arg1[%c0_232, %c42] : memref<2x49xf32, #tpu.memory_space<vmem>>, vector<2x1xf32>
    %722 = vector.broadcast %721 : vector<2x1xf32> to vector<2x256xf32>
    %723 = arith.mulf %722, %720 : vector<2x256xf32>
    %724 = arith.addf %706, %723 : vector<2x256xf32>
    %725 = vector.extract_strided_slice %10 {offsets = [0, 97], sizes = [2, 256], strides = [1, 1]} : vector<2x358xf32> to vector<2x256xf32>
    %c-2_i32_233 = arith.constant -2 : i32
    %726 = vector.broadcast %c-2_i32_233 : i32 to vector<1x256xi32>
    %727 = arith.addi %27, %726 : vector<1x256xi32>
    %c0_i32_234 = arith.constant 0 : i32
    %728 = vector.broadcast %c0_i32_234 : i32 to vector<1x256xi32>
    %729 = arith.cmpi sge, %727, %728 : vector<1x256xi32>
    %c-2_i32_235 = arith.constant -2 : i32
    %730 = vector.broadcast %c-2_i32_235 : i32 to vector<1x256xi32>
    %731 = arith.addi %27, %730 : vector<1x256xi32>
    %c16_i32_236 = arith.constant 16 : i32
    %732 = vector.broadcast %c16_i32_236 : i32 to vector<1x256xi32>
    %733 = arith.cmpi slt, %731, %732 : vector<1x256xi32>
    %734 = arith.andi %729, %733 : vector<1x256xi1>
    %cst_237 = arith.constant 0.000000e+00 : f32
    %735 = vector.shape_cast %734 : vector<1x256xi1> to vector<1x256xi1>
    %736 = vector.broadcast %735 : vector<1x256xi1> to vector<2x256xi1>
    %737 = vector.broadcast %cst_237 : f32 to vector<2x256xf32>
    %738 = arith.select %736, %725, %737 : vector<2x256xi1>, vector<2x256xf32>
    %c0_238 = arith.constant 0 : index
    %c43 = arith.constant 43 : index
    %739 = vector.load %arg1[%c0_238, %c43] : memref<2x49xf32, #tpu.memory_space<vmem>>, vector<2x1xf32>
    %740 = vector.broadcast %739 : vector<2x1xf32> to vector<2x256xf32>
    %741 = arith.mulf %740, %738 : vector<2x256xf32>
    %742 = arith.addf %724, %741 : vector<2x256xf32>
    %743 = vector.extract_strided_slice %10 {offsets = [0, 98], sizes = [2, 256], strides = [1, 1]} : vector<2x358xf32> to vector<2x256xf32>
    %c-1_i32_239 = arith.constant -1 : i32
    %744 = vector.broadcast %c-1_i32_239 : i32 to vector<1x256xi32>
    %745 = arith.addi %27, %744 : vector<1x256xi32>
    %c0_i32_240 = arith.constant 0 : i32
    %746 = vector.broadcast %c0_i32_240 : i32 to vector<1x256xi32>
    %747 = arith.cmpi sge, %745, %746 : vector<1x256xi32>
    %c-1_i32_241 = arith.constant -1 : i32
    %748 = vector.broadcast %c-1_i32_241 : i32 to vector<1x256xi32>
    %749 = arith.addi %27, %748 : vector<1x256xi32>
    %c16_i32_242 = arith.constant 16 : i32
    %750 = vector.broadcast %c16_i32_242 : i32 to vector<1x256xi32>
    %751 = arith.cmpi slt, %749, %750 : vector<1x256xi32>
    %752 = arith.andi %747, %751 : vector<1x256xi1>
    %cst_243 = arith.constant 0.000000e+00 : f32
    %753 = vector.shape_cast %752 : vector<1x256xi1> to vector<1x256xi1>
    %754 = vector.broadcast %753 : vector<1x256xi1> to vector<2x256xi1>
    %755 = vector.broadcast %cst_243 : f32 to vector<2x256xf32>
    %756 = arith.select %754, %743, %755 : vector<2x256xi1>, vector<2x256xf32>
    %c0_244 = arith.constant 0 : index
    %c44 = arith.constant 44 : index
    %757 = vector.load %arg1[%c0_244, %c44] : memref<2x49xf32, #tpu.memory_space<vmem>>, vector<2x1xf32>
    %758 = vector.broadcast %757 : vector<2x1xf32> to vector<2x256xf32>
    %759 = arith.mulf %758, %756 : vector<2x256xf32>
    %760 = arith.addf %742, %759 : vector<2x256xf32>
    %761 = vector.extract_strided_slice %10 {offsets = [0, 99], sizes = [2, 256], strides = [1, 1]} : vector<2x358xf32> to vector<2x256xf32>
    %c0_245 = arith.constant 0 : index
    %c45 = arith.constant 45 : index
    %762 = vector.load %arg1[%c0_245, %c45] : memref<2x49xf32, #tpu.memory_space<vmem>>, vector<2x1xf32>
    %763 = vector.broadcast %762 : vector<2x1xf32> to vector<2x256xf32>
    %764 = arith.mulf %763, %761 : vector<2x256xf32>
    %765 = arith.addf %760, %764 : vector<2x256xf32>
    %766 = vector.extract_strided_slice %10 {offsets = [0, 100], sizes = [2, 256], strides = [1, 1]} : vector<2x358xf32> to vector<2x256xf32>
    %c1_i32_246 = arith.constant 1 : i32
    %767 = vector.broadcast %c1_i32_246 : i32 to vector<1x256xi32>
    %768 = arith.addi %27, %767 : vector<1x256xi32>
    %c0_i32_247 = arith.constant 0 : i32
    %769 = vector.broadcast %c0_i32_247 : i32 to vector<1x256xi32>
    %770 = arith.cmpi sge, %768, %769 : vector<1x256xi32>
    %c1_i32_248 = arith.constant 1 : i32
    %771 = vector.broadcast %c1_i32_248 : i32 to vector<1x256xi32>
    %772 = arith.addi %27, %771 : vector<1x256xi32>
    %c16_i32_249 = arith.constant 16 : i32
    %773 = vector.broadcast %c16_i32_249 : i32 to vector<1x256xi32>
    %774 = arith.cmpi slt, %772, %773 : vector<1x256xi32>
    %775 = arith.andi %770, %774 : vector<1x256xi1>
    %cst_250 = arith.constant 0.000000e+00 : f32
    %776 = vector.shape_cast %775 : vector<1x256xi1> to vector<1x256xi1>
    %777 = vector.broadcast %776 : vector<1x256xi1> to vector<2x256xi1>
    %778 = vector.broadcast %cst_250 : f32 to vector<2x256xf32>
    %779 = arith.select %777, %766, %778 : vector<2x256xi1>, vector<2x256xf32>
    %c0_251 = arith.constant 0 : index
    %c46 = arith.constant 46 : index
    %780 = vector.load %arg1[%c0_251, %c46] : memref<2x49xf32, #tpu.memory_space<vmem>>, vector<2x1xf32>
    %781 = vector.broadcast %780 : vector<2x1xf32> to vector<2x256xf32>
    %782 = arith.mulf %781, %779 : vector<2x256xf32>
    %783 = arith.addf %765, %782 : vector<2x256xf32>
    %784 = vector.extract_strided_slice %10 {offsets = [0, 101], sizes = [2, 256], strides = [1, 1]} : vector<2x358xf32> to vector<2x256xf32>
    %c2_i32_252 = arith.constant 2 : i32
    %785 = vector.broadcast %c2_i32_252 : i32 to vector<1x256xi32>
    %786 = arith.addi %27, %785 : vector<1x256xi32>
    %c0_i32_253 = arith.constant 0 : i32
    %787 = vector.broadcast %c0_i32_253 : i32 to vector<1x256xi32>
    %788 = arith.cmpi sge, %786, %787 : vector<1x256xi32>
    %c2_i32_254 = arith.constant 2 : i32
    %789 = vector.broadcast %c2_i32_254 : i32 to vector<1x256xi32>
    %790 = arith.addi %27, %789 : vector<1x256xi32>
    %c16_i32_255 = arith.constant 16 : i32
    %791 = vector.broadcast %c16_i32_255 : i32 to vector<1x256xi32>
    %792 = arith.cmpi slt, %790, %791 : vector<1x256xi32>
    %793 = arith.andi %788, %792 : vector<1x256xi1>
    %cst_256 = arith.constant 0.000000e+00 : f32
    %794 = vector.shape_cast %793 : vector<1x256xi1> to vector<1x256xi1>
    %795 = vector.broadcast %794 : vector<1x256xi1> to vector<2x256xi1>
    %796 = vector.broadcast %cst_256 : f32 to vector<2x256xf32>
    %797 = arith.select %795, %784, %796 : vector<2x256xi1>, vector<2x256xf32>
    %c0_257 = arith.constant 0 : index
    %c47 = arith.constant 47 : index
    %798 = vector.load %arg1[%c0_257, %c47] : memref<2x49xf32, #tpu.memory_space<vmem>>, vector<2x1xf32>
    %799 = vector.broadcast %798 : vector<2x1xf32> to vector<2x256xf32>
    %800 = arith.mulf %799, %797 : vector<2x256xf32>
    %801 = arith.addf %783, %800 : vector<2x256xf32>
    %802 = vector.extract_strided_slice %10 {offsets = [0, 102], sizes = [2, 256], strides = [1, 1]} : vector<2x358xf32> to vector<2x256xf32>
    %c3_i32_258 = arith.constant 3 : i32
    %803 = vector.broadcast %c3_i32_258 : i32 to vector<1x256xi32>
    %804 = arith.addi %27, %803 : vector<1x256xi32>
    %c0_i32_259 = arith.constant 0 : i32
    %805 = vector.broadcast %c0_i32_259 : i32 to vector<1x256xi32>
    %806 = arith.cmpi sge, %804, %805 : vector<1x256xi32>
    %c3_i32_260 = arith.constant 3 : i32
    %807 = vector.broadcast %c3_i32_260 : i32 to vector<1x256xi32>
    %808 = arith.addi %27, %807 : vector<1x256xi32>
    %c16_i32_261 = arith.constant 16 : i32
    %809 = vector.broadcast %c16_i32_261 : i32 to vector<1x256xi32>
    %810 = arith.cmpi slt, %808, %809 : vector<1x256xi32>
    %811 = arith.andi %806, %810 : vector<1x256xi1>
    %cst_262 = arith.constant 0.000000e+00 : f32
    %812 = vector.shape_cast %811 : vector<1x256xi1> to vector<1x256xi1>
    %813 = vector.broadcast %812 : vector<1x256xi1> to vector<2x256xi1>
    %814 = vector.broadcast %cst_262 : f32 to vector<2x256xf32>
    %815 = arith.select %813, %802, %814 : vector<2x256xi1>, vector<2x256xf32>
    %c0_263 = arith.constant 0 : index
    %c48 = arith.constant 48 : index
    %816 = vector.load %arg1[%c0_263, %c48] : memref<2x49xf32, #tpu.memory_space<vmem>>, vector<2x1xf32>
    %817 = vector.broadcast %816 : vector<2x1xf32> to vector<2x256xf32>
    %818 = arith.mulf %817, %815 : vector<2x256xf32>
    %819 = arith.addf %801, %818 : vector<2x256xf32>
    %cst_264 = arith.constant dense<0.000000e+00> : vector<256xf32>
    %820 = vector.multi_reduction <add>, %819, %cst_264 [0] : vector<2x256xf32> to vector<256xf32>
    %821 = vector.shape_cast %820 : vector<256xf32> to vector<1x256xf32>
    %822 = arith.negf %821 : vector<1x256xf32>
    %823 = math.exp %822 : vector<1x256xf32>
    %cst_265 = arith.constant 1.000000e+00 : f32
    %824 = vector.broadcast %cst_265 : f32 to vector<1x256xf32>
    %825 = arith.addf %824, %823 : vector<1x256xf32>
    %826 = arith.divf %824, %825 : vector<1x256xf32>
    %c0_266 = arith.constant 0 : index
    %c0_267 = arith.constant 0 : index
    %c0_268 = arith.constant 0 : index
    %827 = vector.load %arg2[%c0_266, %c0_267, %c0_268] : memref<1x4x256xf32, #tpu.memory_space<vmem>>, vector<1x4x256xf32>
    %828 = vector.shape_cast %827 : vector<1x4x256xf32> to vector<4x256xf32>
    %829 = vector.broadcast %826 : vector<1x256xf32> to vector<4x256xf32>
    %830 = arith.mulf %828, %829 : vector<4x256xf32>
    %c0_269 = arith.constant 0 : index
    %c0_270 = arith.constant 0 : index
    %c0_271 = arith.constant 0 : index
    %831 = vector.load %arg3[%c0_269, %c0_270, %c0_271] : memref<1x4x256xf32, #tpu.memory_space<vmem>>, vector<1x4x256xf32>
    %832 = vector.shape_cast %831 : vector<1x4x256xf32> to vector<4x256xf32>
    %833 = vector.shape_cast %830 : vector<4x256xf32> to vector<1x4x256xf32>
    tpu.vector_store %arg3[%c0_269, %c0_270, %c0_271], %833 {strides = array<i32>} : memref<1x4x256xf32, #tpu.memory_space<vmem>>, vector<1x4x256xf32>,
    return
  }
  func.func @transform_0(%arg0: i32) -> (i32, i32) {
    %c0_i32 = arith.constant 0 : i32
    %c0_i32_0 = arith.constant 0 : i32
    %c0_i32_1 = arith.constant 0 : i32
    return %c0_i32, %c0_i32_0 : i32, i32
  }
  func.func @transform_1(%arg0: i32) -> (i32, i32, i32) {
    %c0_i32 = arith.constant 0 : i32
    %c0_i32_0 = arith.constant 0 : i32
    %c0_i32_1 = arith.constant 0 : i32
    return %arg0, %c0_i32, %c0_i32_0 : i32, i32, i32
  }
  func.func @transform_2(%arg0: i32) -> (i32, i32, i32) {
    %c0_i32 = arith.constant 0 : i32
    %c0_i32_0 = arith.constant 0 : i32
    %c0_i32_1 = arith.constant 0 : i32
    return %arg0, %c0_i32, %c0_i32_0 : i32, i32, i32
  }
}

</mosaic_0001>

<bundles_post_ra>
// kernel: tpu_custom_call.1
= control target key start
LH: loop header
LB: loop body
LE: loop exit
PB: predicated region body
PF: predicated region fallthrough
CT: control target
= control target key end

     0   :  { %7 = vsyncpa [#allocation3], 0  ;;  %s2987_s0 = inlined_call_operand.hbm [shape: f32[2,49], index: 0, kind: input, shape index: {}]   ;;  %s2988_s1 = inlined_call_operand.hbm [shape: f32[2,4,256], index: 1, kind: input, shape index: {}]   ;;  %s2989_s2 = inlined_call_operand.hbm [shape: f32[2,4,256], index: 2, kind: output, shape index: {}]  }
   0x1   :  { %8 = vsyncpa [#allocation6], 0 }
   0x2   :  { %10 = vsyncpa [#allocation6 + $0x1], 0 }
   0x3   :  { %11 = vsyncpa [#allocation4], 0 }
   0x4   :  { %13 = vsyncpa [#allocation4 + $0x1], 0  ;;  %s1970_s9 = smov 0   ;;  %s1972_s10 = smov 0  }
   0x5   :  { %s1974_s11 = smov 0   ;;  %s1976_s12 = smov 0  }
   0x6 LB: > { %s1991_s13 = sadd.s32 4294967295, %s1852_s12   ;;  %s1489_s14 = sadd.s32 4294967294, %s1852_s12   ;;  %s1852_s12 = sphi %s1976_s12, %s3071_s12   ;;  %s1848_s11 = sphi %s1974_s11, %s3070_s11   ;;  %s1844_s10 = sphi %s1972_s10, %s3069_s10   ;;  %s1840_s9 = sphi %s1970_s9, %s3068_s9  }
   0x7   : > { %p60_p0 = scmp.ne.s32.totalorder %s1844_s10, %s1840_s9  ;;  %p2990_p1 = scmp.eq.s32.totalorder %s1991_s13, 0 }
   0x8   : > { %p90_p3 = scmp.eq.s32.totalorder %s1489_s14, 1  ;;  %p1490_p5 = scmp.ge.s32.totalorder %s1852_s12, 1 }
   0x9   : > { %p2000_p4 = por %p2990_p1, %p60_p0  ;;  %p97_p7 = scmp.lt.s32.totalorder %s1852_s12, 3 }
   0xa   : > { %p2005_p6 = por %p90_p3, %p60_p0  ;;  %s1854_s18 = smov [#allocation2]  }
   0xb   : > { %s3009_s15 = scalar_select %p2000_p4, 1, 0 }
   0xc   : > { %s3010_s16 = scalar_select %p2005_p6, 1, 0 }
   0xd   : > { %p2010_p8 = pnand %p1490_p5, %p97_p7  ;;  %s110_s19 = sshll.u32 %s1854_s18, 4  ;;  %s111_s19 = int_to_ptr.vmem [resolvable:$true] %s110_s19 }
   0xe   : > { %s2018_s20 = sadd.s32 1, %s1852_s12   ;;  %s47_s24 = sadd.s32 1, %s1848_s11 }
   0xf   : > { %s3011_s17 = scalar_select %p2010_p8, 1, 0 }
  0x10   : > { %p1517_p10 = pneg %p2010_p8  ;;  %s44_s22 = ssub.s32 %s1852_s12, %s2018_s20 }
  0x11   : > { %p2028_p12 = scmp.eq.s32.totalorder %s44_s22, 0  ;;  %s1724_s27 = scalar_lea.hbm %s2987_s0, 32 }
  0x12   : > { %p2022_p11 = pnand %p1517_p10, %p2990_p1  ;;  %p1725_p0 = scmp.ne.s32.totalorder %s2987_s0, %s1724_s27 }
  0x13   : > { %s3013_s23 = scalar_select %p2028_p12, 1, 0 }
  0x14   : > { %p1726_p3 = pneg %p2022_p11  ;;  %p1731_p10 = scmp.lt.u32.totalorder %s1724_s27, %s2987_s0 }
  0x16   : > { %p1727_p5 = pnand %p1726_p3, %p1725_p0 }
  0x18   : > { %p1728_p7 = pneg %p1727_p5 }
  0x1a   : > { %p1733_p9 = pnand %p1731_p10, %p1728_p7 }
  0x1c   : > { %1736 = shalt.err (!%p1733_p9)
}
  0x1d   : > { %s1737_s4 = scalar_lea.vmem %s111_s19, 32  ;;  %p1745_p6 = scmp.lt.s32.totalorder %s111_s19, %s111_s19 }
  0x1e   : > { %p1738_p1 = scmp.ne.s32.totalorder %s111_s19, %s1737_s4  ;;  %p1746_p4 = scmp.lt.s32.totalorder %s1737_s4, %s1737_s4 }
  0x20   : > { %p1740_p2 = pnand %p1738_p1, %p1726_p3  ;;  %p1747_p8 = por %p1746_p4, %p1745_p6 }
  0x22   : > { %p1741_p13 = pneg %p1740_p2 }
  0x24   : > { %p1748_p12 = pnand %p1747_p8, %p1741_p13 }
  0x26   : > { %1751 = shalt.err (!%p1748_p12)
}
  0x27   : > { %1520 = dma.hbm_to_vmem [thread:$0]  (!%p2022_p11), %s2987_s0, 32, %s111_s19, [#allocation3]  }
  0x28   : > { %p3014_p1 = scmp.ne.s32.totalorder %s3013_s23, 0  ;;  %p55_p2 = scmp.eq.s32.totalorder %s1852_s12, 0 }
  0x29   : > { %p3015_p4 = scmp.ne.s32.totalorder %s1848_s11, %s1844_s10  ;;  %p3016_p6 = scmp.eq.s32.totalorder %s1991_s13, 1 }
  0x2a   : > { %s2054_s7 = scalar_select %p3014_p1, %s1848_s11, %s47_s24  }
  0x2b   : > { %p2062_p8 = por %p3016_p6, %p3015_p4  ;;  %p1530_p9 = scmp.lt.s32.totalorder %s1852_s12, 2 }
  0x2c   : > { %s121_s14 = sand.u32 1, %s1848_s11   ;;  %p3018_p12 = pmov %p3015_p4 }
  0x2d   : > { %s1493_s18 = sshll.u32 %s121_s14, 3  ;;  %s1507_s21 = sshll.u32 %s1852_s12, 7 }
  0x2e   : > { %p56_p13 = por %p55_p2, %p3018_p12  ;;  %s2075_s19 = scalar_lea.hbm %s2988_s1, %s1507_s21 }
  0x2f   : > { %s125_s23 = scalar_lea.vmem [#allocation5], %s1493_s18  ;;  %s122_s27 = scalar_lea.sflag [#allocation6], %s121_s14 }
  0x30   : > { %s133_s24 = sshll.u32 %s125_s23, 4  ;;  %p2077_p11 = pnand %p1530_p9, %p56_p13  ;;  %s2081_s24 = int_to_ptr.vmem [resolvable:$true] %s133_s24 }
  0x31   : > { %s1752_s28 = scalar_lea.hbm %s2075_s19, 128  ;;  %s1757_s3 = scalar_lea.hbm %s2988_s1, 256 }
  0x32   : > { %p1753_p0 = scmp.ne.s32.totalorder %s2075_s19, %s1752_s28  ;;  %p1754_p3 = pneg %p2077_p11 }
  0x33   : > { %p1758_p10 = scmp.lt.u32.totalorder %s2075_s19, %s2988_s1  ;;  %p1759_p1 = scmp.lt.u32.totalorder %s1757_s3, %s1752_s28 }
  0x34   : > { %p1755_p5 = pnand %p1754_p3, %p1753_p0  ;;  %p1761_p4 = scmp.lt.u32.totalorder %s1752_s28, %s2075_s19 }
  0x35   : > { %p1760_p2 = por %p1759_p1, %p1758_p10 }
  0x36   : > { %p1756_p7 = pneg %p1755_p5 }
  0x37   : > { %p1762_p6 = por %p1761_p4, %p1760_p2 }
  0x39   : > { %p1763_p9 = pnand %p1762_p6, %p1756_p7 }
  0x3b   : > { %1766 = shalt.err (!%p1763_p9)
}
  0x3c   : > { %s1767_s6 = scalar_lea.vmem %s2081_s24, 128  ;;  %s1855_s14 = smov [#allocation5]  }
  0x3d   : > { %p1768_p12 = scmp.ne.s32.totalorder %s2081_s24, %s1767_s6  ;;  %s1772_s18 = sshll.u32 %s1855_s14, 4  ;;  %s1773_s18 = int_to_ptr.vmem [resolvable:$false] %s1772_s18 }
  0x3e   : > { %s1774_s21 = scalar_lea.vmem %s1773_s18, 256  ;;  %p1775_p5 = scmp.lt.s32.totalorder %s2081_s24, %s1773_s18 }
  0x3f   : > { %p1770_p13 = pnand %p1768_p12, %p1754_p3  ;;  %p1776_p10 = scmp.lt.s32.totalorder %s1774_s21, %s1767_s6 }
  0x41   : > { %p1771_p0 = pneg %p1770_p13  ;;  %p1777_p1 = por %p1776_p10, %p1775_p5 }
  0x43   : > { %p1778_p2 = pnand %p1777_p1, %p1771_p0 }
  0x45   : > { %1781 = shalt.err (!%p1778_p2)
}
  0x46   : > { %1524 = dma.hbm_to_vmem [thread:$0]  (!%p2077_p11), %s2075_s19, 128, %s2081_s24, %s122_s27  }
  0x47   : > { %p3020_p7 = scmp.ne.s32.totalorder %s3011_s17, 0 }
  0x49   : > { %142 = sbr.rel (%p3020_p7) target bundleno = 1130 (0x46a), region = 28 }
  0x50   : > { %p3021_p3 = scmp.eq.s32.totalorder %s1991_s13, 0 }
  0x52   : > { %1827 = dma.done.wait (%p3021_p3), [#allocation3], 32   ;;  %p3022_p4 = pmov %p3021_p3 }
  0x53   : > { %s2115_s22 = sand.u32 1, %s1844_s10   ;;  %p3023_p11 = scmp.ne.s32.totalorder %s3009_s15, 0 }
  0x54   : > { %1829 = vsyncadd (%p3022_p4), [#allocation3], 4294967264  ;;  %s1498_s25 = sshll.u32 %s2115_s22, 3  ;;  %s149_s23 = scalar_lea.sflag [#allocation6], %s2115_s22 }
  0x55   : > { %s2121_s19 = scalar_lea.vmem [#allocation5], %s1498_s25 }
  0x56   : > { %1831 = dma.done.wait (%p3023_p11), %s149_s23, 128  }
  0x57   : > { %1833 = vsyncadd (%p3023_p11), %s149_s23, 4294967168  ;;  %v1856_v0 = vmov 1   ;;  %v1857_v1 = vmov 0   ;;  %vm177_vm0 = vcmask 1043456   ;;  %v2127_v2 = vld [vmem:[#allocation2] sm:$0x3] }
  0x58   : > { %1665 = vset.pattern.permute.xlu0 %v1856_v0  ;;  %1664 = vset.pattern.permute.xlu1 %v1857_v1  ;;  %v173_v3 = vld [vmem:[%s2121_s19] sm:$0xff]  ;;  %v1858_v15 = vmov 3   ;;  %v1859_v16 = vmov 2   ;;  %v1860_v29 = vmov 4   ;;  %v1861_v30 = vmov 5   ;;  %s1863_s15 = smov 51  }
  0x59   : > { %303 = vperm.xlu0 %1665, %v2127_v2   ;;  %268 = vperm.xlu1 %1664, %v2127_v2   ;;  %v178_v4 = vsel %vm177_vm0, %v173_v3, 0.0  ;;  %v194_v5 = vsel %vm177_vm0, %v173_v3, -inf  ;;  %v175_v6 = vcombine.high %v173_v3, %v173_v3  ;;  %vm208_vm1 = vcmask 1040384   ;;  %s1875_s17 = smov 127   ;;  %s1876_s24 = smov 122  }
  0x5a   : > { %v179_v7 = vrot.slane %v178_v4, 4  ;;  %v195_v8 = vrot.slane %v194_v5, 4  ;;  %v1862_v38 = vmov 6   ;;  %v1864_v42 = vmov 7   ;;  %s1877_s26 = smov 126   ;;  %s1878_s27 = smov 112  }
  0x5b   : > { %v185_v9 = vsel %vm177_vm0, %v175_v6, 0.0  ;;  %v201_v10 = vsel %vm177_vm0, %v175_v6, -inf  ;;  %v1865_v43 = vmov 8   ;;  %v1866_v44 = vmov 10   ;;  %s1879_s28 = smov 124   ;;  %s1880_s29 = smov 111  }
  0x5c   : > { %v180_v11 = vadd.f32 %v179_v7, %v178_v4  ;;  %v196_v12 = vmax.f32 %v194_v5, %v195_v8  ;;  %v186_v13 = vrot.slane %v185_v9, 4  ;;  %v202_v14 = vrot.slane %v201_v10, 4  ;;  %s1881_s30 = smov 123   ;;  %s1882_s3 = smov 110  }
  0x5d   : > { %1667 = vset.pattern.permute.xlu0 %v1858_v15  ;;  %1666 = vset.pattern.permute.xlu1 %v1859_v16  ;;  %v1867_v45 = vmov 9   ;;  %v1868_v46 = vmov 11   ;;  %v1869_v47 = vmov 12   ;;  %v1870_v48 = vmov 13   ;;  %s1883_s4 = smov 108   ;;  %s1884_s5 = smov 106  }
  0x5e   : > { %344 = vperm.xlu0 %1667, %v2127_v2   ;;  %v181_v17 = vrot.slane %v180_v11, 2  ;;  %v197_v18 = vrot.slane %v196_v12, 2  ;;  %v187_v19 = vadd.f32 %v186_v13, %v185_v9  ;;  %v203_v20 = vmax.f32 %v201_v10, %v202_v14  ;;  %336 = vperm.xlu1 %1666, %v2127_v2   ;;  %s1885_s6 = smov 107   ;;  %s1886_s14 = smov 96  }
  0x5f   : > { %v1871_v49 = vmov 14   ;;  %v1872_v50 = vmov 15   ;;  %v1873_v51 = vmov 16   ;;  %v1874_v52 = vmov 17   ;;  %s1887_s18 = smov 95   ;;  %s1888_s21 = smov 94  }
  0x60   : > { %v182_v21 = vadd.f32 %v181_v17, %v180_v11  ;;  %v198_v22 = vmax.f32 %v196_v12, %v197_v18  ;;  %v188_v23 = vrot.slane %v187_v19, 2  ;;  %v204_v24 = vrot.slane %v203_v20, 2  ;;  %s1889_s23 = smov 125  }
  0x61   : > { %vm217_vm2 = vcmask 416768   ;;  %v1891_v5 = vmov 18   ;;  %v1892_v9 = vmov 19   ;;  %vm295_vm3 = vcmask 1039360  }
  0x62   : > { %v183_v25 = vrot.slane %v182_v21, 1  ;;  %v199_v26 = vrot.slane %v198_v22, 1  ;;  %v189_v27 = vadd.f32 %v188_v23, %v187_v19  ;;  %v205_v28 = vmax.f32 %v203_v20, %v204_v24  ;;  %1668 = vset.pattern.permute.xlu0 %v1860_v29  ;;  %1669 = vset.pattern.permute.xlu1 %v1861_v30 }
  0x63   : > { %425 = vperm.xlu1 %1669, %v2127_v2   ;;  %vm328_vm5 = vcmask 1031168   ;;  %vm384_vm11 = vcmask 1014784   ;;  %vm359_vm12 = vcmask 1022976   ;;  %vm417_vm14 = vcmask 1006592  }
  0x64   : > { %v184_v31 = vadd.f32 %v183_v25, %v182_v21  ;;  %v200_v32 = vmax.f32 %v198_v22, %v199_v26  ;;  %v190_v33 = vrot.slane %v189_v27, 1  ;;  %v206_v34 = vrot.slane %v205_v28, 1 }
  0x66   : > { %v192_v35 = vmul.f32 0.25, %v184_v31  ;;  %v191_v36 = vadd.f32 %v190_v33, %v189_v27  ;;  %v207_v37 = vmax.f32 %v205_v28, %v206_v34 }
  0x67   : > { %1670 = vset.pattern.permute.xlu1 %v1862_v38 }
  0x68   : > { %v209_v39 = vsel %vm208_vm1, %v192_v35, %v200_v32  ;;  %v193_v40 = vmul.f32 0.25, %v191_v36  ;;  %458 = vperm.xlu1 %1670, %v2127_v2  }
  0x69   : > { %213 = vrot.lane.b32.xlu0 %v209_v39, %s1863_s15 }
  0x6a   : > { %v210_v41 = vsel %vm208_vm1, %v193_v40, %v207_v37 }
  0x6c   : > { %1671 = vset.pattern.permute.xlu1 %v1864_v42 }
  0x6d   : > { %215 = vrot.lane.b32.xlu0 %v210_v41, %s1863_s15  ;;  %479 = vperm.xlu1 %1671, %v2127_v2   ;;  %s1890_s15 = smov 109  }
  0x71   : > { %392 = vperm.xlu0 %1668, %v2127_v2   ;;  %1672 = vset.pattern.permute.xlu1 %v1865_v43 }
  0x72   : > { %500 = vperm.xlu1 %1672, %v2127_v2  }
  0x75   : > { %1674 = vset.pattern.permute.xlu0 %v1866_v44 }
  0x76   : > { %529 = vperm.xlu0 %1674, %v2127_v2   ;;  %1673 = vset.pattern.permute.xlu1 %v1867_v45 }
  0x77   : > { %521 = vperm.xlu1 %1673, %v2127_v2  }
  0x7a   : > { %1675 = vset.pattern.permute.xlu0 %v1868_v46 }
  0x7b   : > { %1676 = vset.pattern.permute.xlu1 %v1869_v47  ;;  %565 = vperm.xlu0 %1675, %v2127_v2  }
  0x7c   : > { %586 = vperm.xlu1 %1676, %v2127_v2  }
  0x7f   : > { %1681 = vset.pattern.permute.xlu0 %v1874_v52 }
  0x80   : > { %1677 = vset.pattern.permute.xlu1 %v1870_v48 }
  0x81   : > { %607 = vperm.xlu1 %1677, %v2127_v2  }
  0x85   : > { %1678 = vset.pattern.permute.xlu1 %v1871_v49 }
  0x86   : > { %628 = vperm.xlu1 %1678, %v2127_v2  }
  0x8a   : > { %1679 = vset.pattern.permute.xlu1 %v1872_v50 }
  0x8b   : > { %649 = vperm.xlu1 %1679, %v2127_v2  }
  0x8f   : > { %1680 = vset.pattern.permute.xlu1 %v1873_v51 }
  0x90   : > { %670 = vperm.xlu1 %1680, %v2127_v2  }
  0x94   : > { %1683 = vset.pattern.permute.xlu1 %v1892_v9 }
  0xd8   : > { %v2147_v53 = vpop.permute.xlu0 %303  ;;  %v2271_v13 = vpop.permute.xlu1 %268 }
  0xdd   : > { %v2149_v54 = vpop.permute.xlu0 %344  ;;  %v2275_v15 = vpop.permute.xlu1 %336 }
  0xe1   : > { %v214_v55 = vpop.permute.xlu0 %213 }
  0xe2   : > { %v2152_v56 = vsel %vm217_vm2, 0.0, %v214_v55  ;;  %v2279_v17 = vpop.permute.xlu1 %425 }
  0xe3   : > { %3024 = vst [vmem:[#allocation11_spill] sm:$0xff] %v2152_v56  ;;  %289 = vrot.lane.b32.xlu1 %v2152_v56, %s1875_s17  ;;  %444 = vrot.lane.b32.xlu0 %v2152_v56, %s1876_s24  ;;  %v347_v60 = vmul.f32 %v2149_v54, %v2152_v56 }
  0xe5   : > { %v216_v57 = vpop.permute.xlu0 %215 }
  0xe6   : > { %v2179_v58 = vsel %vm217_vm2, %v216_v57, 0.0  ;;  %v2186_v59 = vsel %vm217_vm2, %v214_v55, %v216_v57  ;;  %v1896_v57 = vmov 24   ;;  %vm450_vm2 = vcmask 998400  }
  0xe7   : > { %322 = vrot.lane.b32.xlu1 %v2152_v56, %s1877_s26  ;;  %465 = vrot.lane.b32.xlu0 %v2152_v56, %s1878_s27  ;;  %3025 = vst [vmem:[#allocation12_spill] sm:$0xff] %v2179_v58  ;;  %3026 = vst [vmem:[#allocation13_spill] sm:$0xff] %v2186_v59  ;;  %v349_v0 = vmul.f32 %v2149_v54, %v2179_v58  ;;  %v348_v1 = vmul.f32 %v2149_v54, %v2186_v59  ;;  %v2285_v20 = vpop.permute.xlu1 %458 }
  0xeb   : > { %378 = vrot.lane.b32.xlu1 %v2152_v56, %s1879_s28  ;;  %486 = vrot.lane.b32.xlu0 %v2152_v56, %s1880_s29 }
  0xec   : > { %v2289_v22 = vpop.permute.xlu1 %479 }
  0xef   : > { %411 = vrot.lane.b32.xlu1 %v2152_v56, %s1881_s30  ;;  %507 = vrot.lane.b32.xlu0 %v2152_v56, %s1882_s3 }
  0xf0   : > { %v2213_v61 = vpop.permute.xlu0 %392 }
  0xf1   : > { %v2295_v25 = vpop.permute.xlu1 %500 }
  0xf3   : > { %551 = vrot.lane.b32.xlu1 %v2152_v56, %s1883_s4  ;;  %593 = vrot.lane.b32.xlu0 %v2152_v56, %s1884_s5 }
  0xf5   : > { %v530_v62 = vpop.permute.xlu0 %529 }
  0xf6   : > { %v532_v63 = vmul.f32 %v530_v62, %v2152_v56  ;;  %v534_v3 = vmul.f32 %v530_v62, %v2179_v58  ;;  %v533_v4 = vmul.f32 %v530_v62, %v2186_v59  ;;  %v2299_v27 = vpop.permute.xlu1 %521 }
  0xf7   : > { %572 = vrot.lane.b32.xlu1 %v2152_v56, %s1885_s6  ;;  %614 = vrot.lane.b32.xlu0 %v2152_v56, %s1886_s14 }
  0xfa   : > { %v2259_v6 = vpop.permute.xlu0 %565 }
  0xfb   : > { %635 = vrot.lane.b32.xlu0 %v2152_v56, %s1887_s18  ;;  %293 = vrot.lane.b32.xlu1 %v2179_v58, %s1875_s17  ;;  %v2305_v30 = vpop.permute.xlu1 %586 }
  0xfc   : > { %3031 = vst [vmem:[#allocation18_spill] sm:$0xff] %v2305_v30 }
  0xff   : > { %656 = vrot.lane.b32.xlu0 %v2152_v56, %s1888_s21  ;;  %324 = vrot.lane.b32.xlu1 %v2186_v59, %s1877_s26 }
 0x100   : > { %v2309_v32 = vpop.permute.xlu1 %607 }
 0x101   : > { %3032 = vst [vmem:[#allocation19_spill] sm:$0xff] %v2309_v32 }
 0x103   : > { %353 = vrot.lane.b32.xlu1 %v347_v60, %s1889_s23  ;;  %291 = vrot.lane.b32.xlu0 %v2186_v59, %s1875_s17  ;;  %s1893_s17 = smov 93  }
 0x105   : > { %v2313_v34 = vpop.permute.xlu1 %628 }
 0x106   : > { %3033 = vst [vmem:[#allocation20_spill] sm:$0xff] %v2313_v34 }
 0x107   : > { %382 = vrot.lane.b32.xlu1 %v2179_v58, %s1879_s28  ;;  %326 = vrot.lane.b32.xlu0 %v2179_v58, %s1877_s26  ;;  %s1895_s26 = smov 91  }
 0x10a   : > { %v2317_v36 = vpop.permute.xlu1 %649 }
 0x10b   : > { %413 = vrot.lane.b32.xlu1 %v2186_v59, %s1881_s30  ;;  %380 = vrot.lane.b32.xlu0 %v2186_v59, %s1879_s28  ;;  %3034 = vst [vmem:[#allocation21_spill] sm:$0xff] %v2317_v36  ;;  %s1898_s28 = smov 80  }
 0x10f   : > { %446 = vrot.lane.b32.xlu1 %v2186_v59, %s1876_s24  ;;  %415 = vrot.lane.b32.xlu0 %v2179_v58, %s1881_s30  ;;  %v2321_v38 = vpop.permute.xlu1 %670  ;;  %s1902_s30 = smov 78  }
 0x110   : > { %3035 = vst [vmem:[#allocation22_spill] sm:$0xff] %v2321_v38  ;;  %v224_v38 = vlaneseq }
 0x113   : > { %467 = vrot.lane.b32.xlu1 %v2186_v59, %s1878_s27  ;;  %448 = vrot.lane.b32.xlu0 %v2179_v58, %s1876_s24  ;;  %s1894_s24 = smov 92  }
 0x117   : > { %488 = vrot.lane.b32.xlu1 %v2186_v59, %s1880_s29  ;;  %469 = vrot.lane.b32.xlu0 %v2179_v58, %s1878_s27  ;;  %s1897_s27 = smov 90  }
 0x11b   : > { %509 = vrot.lane.b32.xlu1 %v2186_v59, %s1882_s3  ;;  %490 = vrot.lane.b32.xlu0 %v2179_v58, %s1880_s29  ;;  %s1900_s29 = smov 79  }
 0x11f   : > { %511 = vrot.lane.b32.xlu0 %v2179_v58, %s1882_s3  ;;  %538 = vrot.lane.b32.xlu1 %v532_v63, %s1890_s15  ;;  %s1907_s3 = smov 77  }
 0x123   : > { %553 = vrot.lane.b32.xlu0 %v2186_v59, %s1883_s4  ;;  %555 = vrot.lane.b32.xlu1 %v2179_v58, %s1883_s4  ;;  %s1908_s4 = smov 76  }
 0x127   : > { %576 = vrot.lane.b32.xlu0 %v2179_v58, %s1885_s6  ;;  %574 = vrot.lane.b32.xlu1 %v2186_v59, %s1885_s6  ;;  %s1911_s6 = smov 74  }
 0x12b   : > { %597 = vrot.lane.b32.xlu0 %v2179_v58, %s1884_s5  ;;  %595 = vrot.lane.b32.xlu1 %v2186_v59, %s1884_s5  ;;  %s1909_s5 = smov 75  }
 0x12f   : > { %618 = vrot.lane.b32.xlu0 %v2179_v58, %s1886_s14  ;;  %616 = vrot.lane.b32.xlu1 %v2186_v59, %s1886_s14  ;;  %s1912_s14 = smov 64  }
 0x133   : > { %639 = vrot.lane.b32.xlu0 %v2179_v58, %s1887_s18  ;;  %637 = vrot.lane.b32.xlu1 %v2186_v59, %s1887_s18  ;;  %s1914_s18 = smov 63  }
 0x137   : > { %660 = vrot.lane.b32.xlu0 %v2179_v58, %s1888_s21  ;;  %658 = vrot.lane.b32.xlu1 %v2186_v59, %s1888_s21  ;;  %s1917_s21 = smov 62  }
 0x13b   : > { %357 = vrot.lane.b32.xlu0 %v349_v0, %s1889_s23  ;;  %355 = vrot.lane.b32.xlu1 %v348_v1, %s1889_s23  ;;  %v1899_v0 = vmov 20   ;;  %s1923_s23 = smov 61  }
 0x13f   : > { %542 = vrot.lane.b32.xlu0 %v534_v3, %s1890_s15  ;;  %540 = vrot.lane.b32.xlu1 %v533_v4, %s1890_s15  ;;  %v1901_v3 = vmov 21   ;;  %s1924_s15 = smov 60  }
 0x143   : > { %678 = vperm.xlu0 %1681, %v2127_v2  }
 0x147   : > { %1682 = vset.pattern.permute.xlu0 %v1891_v5  ;;  %v1903_v5 = vmov 22  }
 0x155   : > { %v2261_v7 = vpop.permute.xlu0 %444  ;;  %v2325_v40 = vpop.permute.xlu1 %289 }
 0x159   : > { %v2263_v8 = vpop.permute.xlu0 %465  ;;  %v2329_v42 = vpop.permute.xlu1 %322 }
 0x15d   : > { %v2265_v10 = vpop.permute.xlu0 %486  ;;  %v2333_v44 = vpop.permute.xlu1 %378 }
 0x161   : > { %v2267_v11 = vpop.permute.xlu0 %507  ;;  %v2337_v46 = vpop.permute.xlu1 %411 }
 0x165   : > { %v2269_v12 = vpop.permute.xlu0 %593  ;;  %v2343_v51 = vpop.permute.xlu1 %551 }
 0x166   : > { %3027 = vst [vmem:[#allocation14_spill] sm:$0xff] %v2269_v12 }
 0x169   : > { %v2273_v14 = vpop.permute.xlu0 %614  ;;  %v2347_v54 = vpop.permute.xlu1 %572 }
 0x16a   : > { %3028 = vst [vmem:[#allocation15_spill] sm:$0xff] %v2273_v14 }
 0x16d   : > { %v2277_v16 = vpop.permute.xlu0 %635  ;;  %v2351_v55 = vpop.permute.xlu1 %293 }
 0x16e   : > { %3029 = vst [vmem:[#allocation16_spill] sm:$0xff] %v2277_v16 }
 0x171   : > { %v2281_v18 = vpop.permute.xlu0 %656  ;;  %v2357_v60 = vpop.permute.xlu1 %324 }
 0x172   : > { %3030 = vst [vmem:[#allocation17_spill] sm:$0xff] %v2281_v18  ;;  %v225_v18 = vand.u32 127, %v224_v38 }
 0x175   : > { %v2283_v19 = vpop.permute.xlu0 %291  ;;  %v2361_v62 = vpop.permute.xlu1 %353 }
 0x176   : > { %v297_v38 = vsel %vm295_vm3, %v2283_v19, %v2351_v55 }
 0x179   : > { %v2287_v21 = vpop.permute.xlu0 %326  ;;  %v2367_v63 = vpop.permute.xlu1 %382 }
 0x17d   : > { %v2291_v23 = vpop.permute.xlu0 %380  ;;  %v2371_v1 = vpop.permute.xlu1 %413 }
 0x181   : > { %v2293_v24 = vpop.permute.xlu0 %415  ;;  %v2377_v4 = vpop.permute.xlu1 %446 }
 0x185   : > { %v2297_v26 = vpop.permute.xlu0 %448  ;;  %v2381_v9 = vpop.permute.xlu1 %467 }
 0x189   : > { %v2301_v28 = vpop.permute.xlu0 %469 }
 0x18d   : > { %v2303_v29 = vpop.permute.xlu0 %490 }
 0x191   : > { %v2307_v31 = vpop.permute.xlu0 %511 }
 0x195   : > { %v2311_v33 = vpop.permute.xlu0 %553 }
 0x199   : > { %v2315_v35 = vpop.permute.xlu0 %576 }
 0x19d   : > { %v2319_v37 = vpop.permute.xlu0 %597 }
 0x1a1   : > { %v2323_v39 = vpop.permute.xlu0 %618 }
 0x1a2   : > { %3036 = vst [vmem:[#allocation23_spill] sm:$0xff] %v2323_v39 }
 0x1a5   : > { %v2327_v41 = vpop.permute.xlu0 %639 }
 0x1a6   : > { %3037 = vst [vmem:[#allocation24_spill] sm:$0xff] %v2327_v41 }
 0x1a9   : > { %v2331_v43 = vpop.permute.xlu0 %660 }
 0x1aa   : > { %3038 = vst [vmem:[#allocation25_spill] sm:$0xff] %v2331_v43 }
 0x1ad   : > { %v2335_v45 = vpop.permute.xlu0 %357 }
 0x1b1   : > { %v2339_v47 = vpop.permute.xlu0 %542 }
 0x1c2   : > { %v679_v48 = vpop.permute.xlu0 %678 }
 0x1c3   : > { %v683_v49 = vmul.f32 %v679_v48, %v2179_v58  ;;  %v681_v50 = vmul.f32 %v679_v48, %v2152_v56  ;;  %v682_v52 = vmul.f32 %v679_v48, %v2186_v59  ;;  %v2386_v48 = vpop.permute.xlu1 %488 }
 0x1c5   : > { %691 = vrot.lane.b32.xlu0 %v683_v49, %s1893_s17  ;;  %687 = vrot.lane.b32.xlu1 %v681_v50, %s1893_s17  ;;  %v1904_v49 = vmov 23   ;;  %v1905_v50 = vmov 25  }
 0x1c9   : > { %702 = vrot.lane.b32.xlu0 %v2186_v59, %s1894_s24  ;;  %689 = vrot.lane.b32.xlu1 %v682_v52, %s1893_s17  ;;  %v2389_v52 = vpop.permute.xlu1 %509  ;;  %s1925_s17 = smov 59  }
 0x1cd   : > { %714 = vperm.xlu0 %1682, %v2127_v2   ;;  %700 = vrot.lane.b32.xlu1 %v2152_v56, %s1894_s24 }
 0x1d1   : > { %725 = vrot.lane.b32.xlu0 %v2179_v58, %s1895_s26  ;;  %704 = vrot.lane.b32.xlu1 %v2179_v58, %s1894_s24  ;;  %s1927_s24 = smov 58  }
 0x1d2   : > { %1688 = vset.pattern.permute.xlu0 %v1896_v57  ;;  %v2391_v57 = vpop.permute.xlu1 %538 }
 0x1d5   : > { %742 = vrot.lane.b32.xlu0 %v2152_v56, %s1897_s27  ;;  %721 = vrot.lane.b32.xlu1 %v2152_v56, %s1895_s26 }
 0x1d9   : > { %746 = vrot.lane.b32.xlu0 %v2179_v58, %s1897_s27  ;;  %723 = vrot.lane.b32.xlu1 %v2186_v59, %s1895_s26  ;;  %s1931_s26 = smov 48  }
 0x1dd   : > { %763 = vrot.lane.b32.xlu0 %v2152_v56, %s1898_s28  ;;  %735 = vperm.xlu1 %1683, %v2127_v2  }
 0x1e1   : > { %767 = vrot.lane.b32.xlu0 %v2179_v58, %s1898_s28  ;;  %744 = vrot.lane.b32.xlu1 %v2186_v59, %s1897_s27  ;;  %s1933_s27 = smov 47  }
 0x1e2   : > { %1684 = vset.pattern.permute.xlu1 %v1899_v0  ;;  %v2393_v0 = vpop.permute.xlu1 %555 }
 0x1e5   : > { %784 = vrot.lane.b32.xlu0 %v2152_v56, %s1900_s29  ;;  %756 = vperm.xlu1 %1684, %v2127_v2  }
 0x1e9   : > { %788 = vrot.lane.b32.xlu0 %v2179_v58, %s1900_s29  ;;  %765 = vrot.lane.b32.xlu1 %v2186_v59, %s1898_s28  ;;  %s1935_s28 = smov 46  }
 0x1ea   : > { %1685 = vset.pattern.permute.xlu1 %v1901_v3  ;;  %v1906_v3 = vmov 26  }
 0x1ed   : > { %805 = vrot.lane.b32.xlu0 %v2152_v56, %s1902_s30  ;;  %777 = vperm.xlu1 %1685, %v2127_v2  }
 0x1f1   : > { %809 = vrot.lane.b32.xlu0 %v2179_v58, %s1902_s30  ;;  %786 = vrot.lane.b32.xlu1 %v2186_v59, %s1900_s29  ;;  %s1937_s29 = smov 44  }
 0x1f2   : > { %1686 = vset.pattern.permute.xlu1 %v1903_v5  ;;  %v2395_v5 = vpop.permute.xlu1 %574 }
 0x1f5   : > { %827 = vperm.xlu0 %1688, %v2127_v2   ;;  %798 = vperm.xlu1 %1686, %v2127_v2  }
 0x1f6   : > { %v2397_v58 = vpop.permute.xlu1 %595 }
 0x1f7   : > { %3039 = vst [vmem:[#allocation26_spill] sm:$0xff] %v2397_v58 }
 0x1f9   : > { %807 = vrot.lane.b32.xlu1 %v2186_v59, %s1902_s30  ;;  %1689 = vset.pattern.permute.xlu0 %v1905_v50  ;;  %v231_v50 = vand.u32 15, %v225_v18  ;;  %s1939_s30 = smov 45  }
 0x1fa   : > { %1687 = vset.pattern.permute.xlu1 %v1904_v49  ;;  %v2399_v36 = vpop.permute.xlu1 %616  ;;  %v226_v49 = vadd.s32 128, %v225_v18  ;;  %v296_v18 = vsel %vm295_vm3, %v2325_v40, %v2283_v19 }
 0x1fb   : > { %3040 = vst [vmem:[#allocation27_spill] sm:$0xff] %v2399_v36  ;;  %v2405_v34 = vadd.s32 4294967294, %v231_v50  ;;  %v2411_v14 = vadd.s32 4294967293, %v231_v50  ;;  %v2427_v32 = vadd.s32 4294967295, %v231_v50  ;;  %v2451_v30 = vadd.s32 1, %v231_v50 }
 0x1fd   : > { %819 = vperm.xlu1 %1687, %v2127_v2   ;;  %v238_v2 = vand.u32 15, %v226_v49  ;;  %vm3008_vm6 = vcmp.ge.s32.totalorder %v2405_v34, 0  ;;  %vm253_vm9 = vcmp.ge.s32.totalorder %v2411_v14, 0  ;;  %vm312_vm10 = vcmp.ge.s32.totalorder %v2427_v32, 0 }
 0x1fe   : > { %v2401_v43 = vpop.permute.xlu1 %637  ;;  %vm370_vm15 = vcmp.lt.s32.totalorder %v2451_v30, 16 }
 0x1ff   : > { %3041 = vst [vmem:[#allocation28_spill] sm:$0xff] %v2401_v43  ;;  %v2403_v16 = vadd.s32 4294967294, %v238_v2  ;;  %v2407_v41 = vadd.s32 4294967293, %v238_v2  ;;  %v330_v43 = vsel %vm328_vm5, %v2357_v60, %v2287_v21  ;;  %v263_v21 = vsel %vm253_vm9, %v2152_v56, 0.0 }
 0x200   : > { %v2442_v39 = vadd.s32 1, %v238_v2  ;;  %v2454_v56 = vadd.s32 2, %v238_v2 }
 0x201   : > { %1690 = vset.pattern.permute.xlu1 %v1906_v3  ;;  %v2409_v3 = vadd.s32 4294967295, %v238_v2  ;;  %vm278_vm4 = vcmp.ge.s32.totalorder %v2403_v16, 0  ;;  %vm254_vm7 = vcmp.ge.s32.totalorder %v2407_v41, 0 }
 0x202   : > { %v2416_v49 = vpop.permute.xlu1 %658  ;;  %v301_v55 = vsel %vm278_vm4, %v297_v38, 0.0  ;;  %v264_v19 = vsel %vm254_vm7, %v2186_v59, 0.0  ;;  %v329_v38 = vsel %vm328_vm5, %v2329_v42, %v2357_v60  ;;  %vm371_vm13 = vcmp.lt.s32.totalorder %v2442_v39, 16 }
 0x203   : > { %3042 = vst [vmem:[#allocation29_spill] sm:$0xff] %v2416_v49  ;;  %vm313_vm8 = vcmp.ge.s32.totalorder %v2409_v3, 0  ;;  %v300_v49 = vsel %vm3008_vm6, %v296_v18, 0.0  ;;  %v307_v36 = vmul.f32 %v2147_v53, %v301_v55  ;;  %v271_v55 = vmul.f32 %v2271_v13, %v263_v21 }
 0x204   : > { %v334_v40 = vsel %vm313_vm8, %v330_v43, 0.0  ;;  %v306_v18 = vmul.f32 %v2147_v53, %v300_v49  ;;  %v272_v43 = vmul.f32 %v2271_v13, %v264_v19  ;;  %v333_v58 = vsel %vm312_vm10, %v329_v38, 0.0 }
 0x205   : > { %v340_v59 = vmul.f32 %v2275_v15, %v334_v40  ;;  %v386_v53 = vsel %vm384_vm11, %v2291_v23, %v2367_v63  ;;  %v2464_v19 = vadd.s32 2, %v231_v50  ;;  %v339_v21 = vmul.f32 %v2275_v15, %v333_v58 }
 0x206   : > { %v356_v12 = vpop.permute.xlu1 %355  ;;  %v309_v42 = vadd.f32 %v307_v36, %v272_v43  ;;  %v308_v60 = vadd.f32 %v306_v18, %v271_v55  ;;  %v385_v38 = vsel %vm384_vm11, %v2333_v44, %v2291_v23  ;;  %v390_v36 = vsel %vm371_vm13, %v386_v53, 0.0 }
 0x207   : > { %v361_v49 = vsel %vm359_vm12, %v356_v12, %v2335_v45  ;;  %vm404_vm0 = vcmp.lt.s32.totalorder %v2454_v56, 16  ;;  %v419_v45 = vsel %vm417_vm14, %v2371_v1, %v2293_v24  ;;  %v2479_v63 = vadd.s32 3, %v238_v2 }
 0x208   : > { %v342_v13 = vadd.f32 %v340_v59, %v309_v42  ;;  %v360_v59 = vsel %vm359_vm12, %v2361_v62, %v356_v12  ;;  %v341_v58 = vadd.f32 %v339_v21, %v308_v60  ;;  %vm403_vm1 = vcmp.lt.s32.totalorder %v2464_v19, 16 }
 0x209   : > { %v389_v15 = vsel %vm370_vm15, %v385_v38, 0.0  ;;  %v396_v23 = vmul.f32 %v2213_v61, %v390_v36  ;;  %v2487_v44 = vadd.s32 3, %v231_v50  ;;  %v418_v24 = vsel %vm417_vm14, %v2337_v46, %v2371_v1 }
 0x20a   : > { %v2467_v40 = vpop.permute.xlu1 %540  ;;  %v365_v18 = vadd.f32 %v361_v49, %v342_v13  ;;  %v423_v12 = vsel %vm404_vm0, %v419_v45, 0.0  ;;  %v364_v62 = vadd.f32 %v360_v59, %v341_v58  ;;  %vm437_vm3 = vcmp.lt.s32.totalorder %v2479_v63, 16 }
 0x20b   : > { %v452_v2 = vsel %vm450_vm2, %v2377_v4, %v2297_v26  ;;  %v395_v50 = vmul.f32 %v2213_v61, %v389_v15  ;;  %v422_v53 = vsel %vm403_vm1, %v418_v24, 0.0  ;;  %vm436_vm5 = vcmp.lt.s32.totalorder %v2487_v44, 16 }
 0x20c   : > { %v398_v55 = vadd.f32 %v396_v23, %v365_v18  ;;  %v429_v46 = vmul.f32 %v2279_v17, %v423_v12  ;;  %v451_v1 = vsel %vm450_vm2, %v2261_v7, %v2377_v4  ;;  %vm471_vm11 = vcmask 916480  }
 0x20d   : > { %v456_v42 = vsel %vm437_vm3, %v452_v2, 0.0  ;;  %v397_v60 = vadd.f32 %v395_v50, %v364_v62  ;;  %v473_v26 = vsel %vm471_vm11, %v2381_v9, %v2301_v28  ;;  %v428_v13 = vmul.f32 %v2279_v17, %v422_v53 }
 0x20e   : > { %v431_v49 = vadd.f32 %v429_v46, %v398_v55  ;;  %v455_v21 = vsel %vm436_vm5, %v451_v1, 0.0  ;;  %v462_v38 = vmul.f32 %v2285_v20, %v456_v42  ;;  %v472_v7 = vsel %vm471_vm11, %v2263_v8, %v2381_v9 }
 0x20f   : > { %vm492_vm12 = vcmask 908288   ;;  %v477_v4 = vsel %vm254_vm7, %v473_v26, 0.0  ;;  %v430_v28 = vadd.f32 %v428_v13, %v397_v60  ;;  %v461_v17 = vmul.f32 %v2285_v20, %v455_v21 }
 0x210   : > { %v494_v45 = vsel %vm492_vm12, %v2386_v48, %v2303_v29  ;;  %v464_v59 = vadd.f32 %v462_v38, %v431_v49  ;;  %v476_v18 = vsel %vm253_vm9, %v472_v7, 0.0  ;;  %v483_v58 = vmul.f32 %v2289_v22, %v477_v4 }
 0x211   : > { %v493_v8 = vsel %vm492_vm12, %v2265_v10, %v2386_v48  ;;  %vm513_vm14 = vcmask 900096   ;;  %v498_v9 = vsel %vm278_vm4, %v494_v45, 0.0  ;;  %v463_v23 = vadd.f32 %v461_v17, %v430_v28  ;;  %v3043_v45 = vld [vmem:[#allocation26_spill] sm:$0xff] }
 0x212   : > { %v515_v29 = vsel %vm513_vm14, %v2389_v52, %v2307_v31  ;;  %v485_v24 = vadd.f32 %v483_v58, %v464_v59  ;;  %v482_v12 = vmul.f32 %v2289_v22, %v476_v18  ;;  %v497_v62 = vsel %vm3008_vm6, %v493_v8, 0.0 }
 0x213   : > { %v504_v2 = vmul.f32 %v2295_v25, %v498_v9  ;;  %v514_v10 = vsel %vm513_vm14, %v2267_v11, %v2389_v52  ;;  %v519_v48 = vsel %vm313_vm8, %v515_v29, 0.0  ;;  %v503_v46 = vmul.f32 %v2295_v25, %v497_v62 }
 0x214   : > { %v484_v55 = vadd.f32 %v482_v12, %v463_v23  ;;  %vm557_vm2 = vcmask 883712   ;;  %v518_v22 = vsel %vm312_vm10, %v514_v10, 0.0  ;;  %v525_v1 = vmul.f32 %v2299_v27, %v519_v48 }
 0x215   : > { %v506_v50 = vadd.f32 %v504_v2, %v485_v24  ;;  %v559_v11 = vsel %vm557_vm2, %v2311_v33, %v2393_v0  ;;  %vm544_vm11 = vcmask 891904   ;;  %v524_v26 = vmul.f32 %v2299_v27, %v518_v22  ;;  %v3047_v24 = vld [vmem:[#allocation27_spill] sm:$0xff] }
 0x216   : > { %v505_v42 = vadd.f32 %v503_v46, %v484_v55  ;;  %vm578_vm12 = vcmask 875520   ;;  %v558_v25 = vsel %vm557_vm2, %v2343_v51, %v2311_v33  ;;  %v563_v13 = vsel %vm371_vm13, %v559_v11, 0.0  ;;  %v3048_v55 = vld [vmem:[#allocation19_spill] sm:$0xff]  ;;  %v3050_v11 = vld [vmem:[#allocation24_spill] sm:$0xff] }
 0x217   : > { %v527_v52 = vadd.f32 %v525_v1, %v506_v50  ;;  %v546_v0 = vsel %vm544_vm11, %v2467_v40, %v2339_v47  ;;  %v580_v38 = vsel %vm578_vm12, %v2395_v5, %v2315_v35  ;;  %vm599_vm14 = vcmask 867328   ;;  %v3049_v46 = vld [vmem:[#allocation15_spill] sm:$0xff] }
 0x218   : > { %v526_v21 = vadd.f32 %v524_v26, %v505_v42  ;;  %v562_v27 = vsel %vm370_vm15, %v558_v25, 0.0  ;;  %v569_v33 = vmul.f32 %v2259_v6, %v563_v13  ;;  %v545_v51 = vsel %vm544_vm11, %v2391_v57, %v2467_v40  ;;  %v3044_v40 = vld [vmem:[#allocation18_spill] sm:$0xff] }
 0x219   : > { %v550_v7 = vadd.f32 %v546_v0, %v527_v52  ;;  %v579_v28 = vsel %vm578_vm12, %v2347_v54, %v2395_v5  ;;  %v584_v47 = vsel %vm404_vm0, %v580_v38, 0.0  ;;  %v601_v59 = vsel %vm599_vm14, %v3043_v45, %v2319_v37  ;;  %v3045_v54 = vld [vmem:[#allocation14_spill] sm:$0xff]  ;;  %v3046_v37 = vld [vmem:[#allocation23_spill] sm:$0xff]  ;;  %v3051_v52 = vld [vmem:[#allocation28_spill] sm:$0xff] }
 0x21a   : > { %v549_v35 = vadd.f32 %v545_v51, %v526_v21  ;;  %v568_v8 = vmul.f32 %v2259_v6, %v562_v27  ;;  %vm620_vm2 = vcmask 785408   ;;  %v583_v57 = vsel %vm403_vm1, %v579_v28, 0.0 }
 0x21b   : > { %v571_v17 = vadd.f32 %v569_v33, %v550_v7  ;;  %v590_v9 = vmul.f32 %v3044_v40, %v584_v47  ;;  %v600_v5 = vsel %vm599_vm14, %v3045_v54, %v3043_v45  ;;  %v605_v23 = vsel %vm437_vm3, %v601_v59, 0.0  ;;  %v3052_v7 = vld [vmem:[#allocation20_spill] sm:$0xff]  ;;  %v3055_v45 = vld [vmem:[#allocation29_spill] sm:$0xff] }
 0x21c   : > { %v570_v29 = vadd.f32 %v568_v8, %v549_v35  ;;  %v622_v12 = vsel %vm620_vm2, %v3047_v24, %v3046_v37  ;;  %v589_v10 = vmul.f32 %v3044_v40, %v583_v57  ;;  %vm641_vm11 = vcmask 777216   ;;  %v3053_v33 = vld [vmem:[#allocation16_spill] sm:$0xff]  ;;  %v3054_v35 = vld [vmem:[#allocation25_spill] sm:$0xff] }
 0x21d   : > { %v592_v62 = vadd.f32 %v590_v9, %v571_v17  ;;  %v604_v48 = vsel %vm436_vm5, %v600_v5, 0.0  ;;  %v611_v50 = vmul.f32 %v3048_v55, %v605_v23  ;;  %v621_v22 = vsel %vm620_vm2, %v3049_v46, %v3047_v24  ;;  %v3056_v54 = vld [vmem:[#allocation21_spill] sm:$0xff]  ;;  %v3058_v46 = vld [vmem:[#allocation22_spill] sm:$0xff] }
 0x21e   : > { %v626_v1 = vsel %vm254_vm7, %v622_v12, 0.0  ;;  %v591_v42 = vadd.f32 %v589_v10, %v570_v29  ;;  %v643_v26 = vsel %vm641_vm11, %v3051_v52, %v3050_v11  ;;  %v610_v0 = vmul.f32 %v3048_v55, %v604_v48  ;;  %v3057_v23 = vld [vmem:[#allocation17_spill] sm:$0xff] }
 0x21f   : > { %v613_v25 = vadd.f32 %v611_v50, %v592_v62  ;;  %vm662_vm12 = vcmask 769024   ;;  %v625_v38 = vsel %vm253_vm9, %v621_v22, 0.0  ;;  %v632_v27 = vmul.f32 %v3052_v7, %v626_v1 }
 0x220   : > { %v642_v51 = vsel %vm641_vm11, %v3053_v33, %v3051_v52  ;;  %v647_v28 = vsel %vm278_vm4, %v643_v26, 0.0  ;;  %v612_v47 = vadd.f32 %v610_v0, %v591_v42  ;;  %v664_v59 = vsel %vm662_vm12, %v3055_v45, %v3054_v35 }
 0x221   : > { %v634_v17 = vadd.f32 %v632_v27, %v613_v25  ;;  %v631_v40 = vmul.f32 %v3052_v7, %v625_v38  ;;  %v646_v9 = vsel %vm3008_vm6, %v642_v51, 0.0  ;;  %v653_v5 = vmul.f32 %v3056_v54, %v647_v28 }
 0x222   : > { %v663_v29 = vsel %vm662_vm12, %v3057_v23, %v3055_v45  ;;  %v668_v37 = vsel %vm313_vm8, %v664_v59, 0.0  ;;  %vm706_vm14 = vcmask 752640   ;;  %vm693_vm2 = vcmask 760832  }
 0x223   : > { %v633_v24 = vadd.f32 %v631_v40, %v612_v47  ;;  %v655_v12 = vadd.f32 %v653_v5, %v634_v17  ;;  %v652_v55 = vmul.f32 %v3056_v54, %v646_v9  ;;  %vm727_vm11 = vcmask 744448  }
 0x224   : > { %vm748_vm6 = vcmask 736256   ;;  %v667_v50 = vsel %vm312_vm10, %v663_v29, 0.0  ;;  %v674_v22 = vmul.f32 %v3058_v46, %v668_v37  ;;  %vm769_vm12 = vcmask 654336  }
 0x225   : > { %v654_v42 = vadd.f32 %v652_v55, %v633_v24  ;;  %v673_v7 = vmul.f32 %v3058_v46, %v667_v50  ;;  %v3060_v55 = vld [vmem:[#allocation12_spill] sm:$0xff] }
 0x226   : > { %v676_v52 = vadd.f32 %v674_v22, %v655_v12 }
 0x227   : > { %v675_v51 = vadd.f32 %v673_v7, %v654_v42 }
 0x237   : > { %v2489_v43 = vpop.permute.xlu1 %687  ;;  %v2516_v36 = vpop.permute.xlu0 %691 }
 0x23b   : > { %v2510_v61 = vpop.permute.xlu1 %689  ;;  %v2536_v20 = vpop.permute.xlu0 %702 }
 0x23f   : > { %v2528_v15 = vpop.permute.xlu1 %700 }
 0x240   : > { %v707_v26 = vsel %vm706_vm14, %v2528_v15, %v2536_v20 }
 0x241   : > { %v711_v28 = vsel %vm370_vm15, %v707_v26, 0.0 }
 0x243   : > { %v2546_v53 = vpop.permute.xlu1 %704 }
 0x244   : > { %v708_v62 = vsel %vm706_vm14, %v2536_v20, %v2546_v53  ;;  %v695_v53 = vsel %vm693_vm2, %v2510_v61, %v2516_v36  ;;  %v694_v36 = vsel %vm693_vm2, %v2489_v43, %v2510_v61  ;;  %vm790_vm14 = vcmask 646144  }
 0x245   : > { %v712_v11 = vsel %vm371_vm13, %v708_v62, 0.0  ;;  %v699_v33 = vadd.f32 %v695_v53, %v676_v52  ;;  %v698_v59 = vadd.f32 %v694_v36, %v675_v51  ;;  %vm3061_vm2 = vcmp.ge.s32.totalorder %v2405_v34, 0  ;;  %v2698_v51 = vld [vmem:[#allocation2] sm:$0x3] }
 0x247   : > { %v2559_v49 = vpop.permute.xlu1 %721 }
 0x24b   : > { %v2584_v18 = vpop.permute.xlu1 %723 }
 0x24c   : > { %v2548_v31 = vpop.permute.xlu0 %714  ;;  %v728_v15 = vsel %vm727_vm11, %v2559_v49, %v2584_v18 }
 0x24d   : > { %v718_v25 = vmul.f32 %v2548_v31, %v712_v11  ;;  %v717_v43 = vmul.f32 %v2548_v31, %v711_v28  ;;  %v3062_v11 = vld [vmem:[#allocation13_spill] sm:$0xff]  ;;  %v1910_v28 = vmov 31  }
 0x24f   : > { %v720_v61 = vadd.f32 %v718_v25, %v699_v33 }
 0x250   : > { %v2556_v60 = vpop.permute.xlu0 %725 }
 0x251   : > { %v729_v1 = vsel %vm727_vm11, %v2584_v18, %v2556_v60  ;;  %vm842_vm11 = vcmask 629760  }
 0x252   : > { %v733_v27 = vsel %vm404_vm0, %v729_v1, 0.0 }
 0x254   : > { %v2570_v4 = vpop.permute.xlu0 %742 }
 0x258   : > { %v747_v58 = vpop.permute.xlu0 %746 }
 0x25c   : > { %v2596_v2 = vpop.permute.xlu0 %763  ;;  %v2598_v6 = vpop.permute.xlu1 %735 }
 0x25d   : > { %v739_v20 = vmul.f32 %v2598_v6, %v733_v27 }
 0x25f   : > { %v741_v9 = vadd.f32 %v739_v20, %v720_v61  ;;  %v1916_v61 = vmov 28  }
 0x260   : > { %v768_v13 = vpop.permute.xlu0 %767  ;;  %v745_v21 = vpop.permute.xlu1 %744 }
 0x261   : > { %v750_v0 = vsel %vm748_vm6, %v745_v21, %v747_v58  ;;  %v749_v35 = vsel %vm748_vm6, %v2570_v4, %v745_v21  ;;  %v719_v21 = vadd.f32 %v717_v43, %v698_v59  ;;  %vm811_vm6 = vcmask 637952  }
 0x262   : > { %v754_v47 = vsel %vm437_vm3, %v750_v0, 0.0  ;;  %v753_v5 = vsel %vm436_vm5, %v749_v35, 0.0  ;;  %v1915_v43 = vmov 38   ;;  %v1918_v35 = vmov 45  }
 0x263   : > { %v1922_v59 = vmov 33  }
 0x264   : > { %v2620_v8 = vpop.permute.xlu0 %784  ;;  %v757_v57 = vpop.permute.xlu1 %756 }
 0x265   : > { %v760_v45 = vmul.f32 %v757_v57, %v754_v47  ;;  %v759_v23 = vmul.f32 %v757_v57, %v753_v5  ;;  %v1913_v47 = vmov 27  }
 0x267   : > { %v762_v29 = vadd.f32 %v760_v45, %v741_v9  ;;  %v1919_v45 = vmov 32  }
 0x268   : > { %v789_v10 = vpop.permute.xlu0 %788  ;;  %v766_v48 = vpop.permute.xlu1 %765 }
 0x269   : > { %v771_v58 = vsel %vm769_vm12, %v766_v48, %v768_v13  ;;  %v732_v13 = vsel %vm403_vm1, %v728_v15, 0.0  ;;  %v770_v4 = vsel %vm769_vm12, %v2596_v2, %v766_v48  ;;  %vm855_vm12 = vcmask 621568  }
 0x26a   : > { %v775_v17 = vsel %vm254_vm7, %v771_v58, 0.0  ;;  %v738_v40 = vmul.f32 %v2598_v6, %v732_v13  ;;  %v3059_v6 = vld [vmem:[#allocation11_spill] sm:$0xff]  ;;  %v774_v2 = vsel %vm253_vm9, %v770_v4, 0.0 }
 0x26c   : > { %v806_v38 = vpop.permute.xlu0 %805  ;;  %v778_v60 = vpop.permute.xlu1 %777  ;;  %v740_v46 = vadd.f32 %v738_v40, %v719_v21 }
 0x26d   : > { %v781_v54 = vmul.f32 %v778_v60, %v775_v17  ;;  %v780_v22 = vmul.f32 %v778_v60, %v774_v2 }
 0x26e   : > { %v761_v1 = vadd.f32 %v759_v23, %v740_v46 }
 0x26f   : > { %v783_v48 = vadd.f32 %v781_v54, %v762_v29 }
 0x270   : > { %v810_v49 = vpop.permute.xlu0 %809  ;;  %v787_v18 = vpop.permute.xlu1 %786  ;;  %v782_v7 = vadd.f32 %v780_v22, %v761_v1 }
 0x271   : > { %v792_v31 = vsel %vm790_vm14, %v787_v18, %v789_v10  ;;  %v791_v12 = vsel %vm790_vm14, %v2620_v8, %v787_v18  ;;  %v1921_v18 = vmov 30   ;;  %vm876_vm14 = vcmask 613376  }
 0x272   : > { %v796_v10 = vsel %vm278_vm4, %v792_v31, 0.0  ;;  %v795_v8 = vsel %vm3061_vm2, %v791_v12, 0.0  ;;  %vm918_vm2 = vcmask 523264  }
 0x274   : > { %v828_v37 = vpop.permute.xlu0 %827  ;;  %v799_v24 = vpop.permute.xlu1 %798 }
 0x275   : > { %v830_v62 = vmul.f32 %v828_v37, %v3059_v6  ;;  %v832_v50 = vmul.f32 %v828_v37, %v3060_v55  ;;  %v802_v57 = vmul.f32 %v799_v24, %v796_v10  ;;  %v831_v52 = vmul.f32 %v828_v37, %v3062_v11 }
 0x276   : > { %v801_v26 = vmul.f32 %v799_v24, %v795_v8 }
 0x277   : > { %840 = vrot.lane.b32.xlu0 %v832_v50, %s1907_s3  ;;  %836 = vrot.lane.b32.xlu1 %v830_v62, %s1907_s3  ;;  %v804_v42 = vadd.f32 %v802_v57, %v783_v48 }
 0x278   : > { %v808_v53 = vpop.permute.xlu1 %807  ;;  %v803_v33 = vadd.f32 %v801_v26, %v782_v7 }
 0x279   : > { %v812_v25 = vsel %vm811_vm6, %v806_v38, %v808_v53  ;;  %v813_v0 = vsel %vm811_vm6, %v808_v53, %v810_v49  ;;  %v1920_v49 = vmov 29   ;;  %vm897_vm6 = vcmask 605184  }
 0x27a   : > { %v816_v60 = vsel %vm312_vm10, %v812_v25, 0.0  ;;  %v817_v36 = vsel %vm313_vm8, %v813_v0, 0.0 }
 0x27b   : > { %851 = vrot.lane.b32.xlu0 %v3062_v11, %s1908_s4  ;;  %838 = vrot.lane.b32.xlu1 %v831_v52, %s1907_s3  ;;  %s1941_s3 = smov 43  }
 0x27c   : > { %v820_v27 = vpop.permute.xlu1 %819 }
 0x27d   : > { %v822_v15 = vmul.f32 %v820_v27, %v816_v60  ;;  %v823_v20 = vmul.f32 %v820_v27, %v817_v36 }
 0x27f   : > { %v2696_v58 = vadd.f32 %v822_v15, %v803_v33  ;;  %v825_v38 = vadd.f32 %v823_v20, %v804_v42  ;;  %863 = vperm.xlu0 %1689, %v2698_v51   ;;  %849 = vrot.lane.b32.xlu1 %v3059_v6, %s1908_s4 }
 0x283   : > { %874 = vrot.lane.b32.xlu0 %v3060_v55, %s1909_s5  ;;  %853 = vrot.lane.b32.xlu1 %v3060_v55, %s1908_s4  ;;  %s1943_s4 = smov 42  }
 0x284   : > { %1692 = vset.pattern.permute.xlu0 %v1910_v28 }
 0x287   : > { %891 = vrot.lane.b32.xlu0 %v3059_v6, %s1911_s6  ;;  %870 = vrot.lane.b32.xlu1 %v3059_v6, %s1909_s5 }
 0x28b   : > { %895 = vrot.lane.b32.xlu0 %v3060_v55, %s1911_s6  ;;  %872 = vrot.lane.b32.xlu1 %v3062_v11, %s1909_s5  ;;  %s1944_s5 = smov 32  }
 0x28f   : > { %912 = vrot.lane.b32.xlu0 %v3059_v6, %s1912_s14  ;;  %884 = vperm.xlu1 %1690, %v2698_v51  }
 0x293   : > { %976 = vperm.xlu0 %1692, %v2698_v51   ;;  %893 = vrot.lane.b32.xlu1 %v3062_v11, %s1911_s6  ;;  %s1945_s6 = smov 31  }
 0x294   : > { %1691 = vset.pattern.permute.xlu1 %v1913_v47 }
 0x297   : > { %933 = vrot.lane.b32.xlu0 %v3059_v6, %s1914_s18  ;;  %905 = vperm.xlu1 %1691, %v2698_v51  }
 0x298   : > { %1694 = vset.pattern.permute.xlu0 %v1915_v43 }
 0x29b   : > { %1125 = vperm.xlu0 %1694, %v2698_v51   ;;  %914 = vrot.lane.b32.xlu1 %v3062_v11, %s1912_s14 }
 0x29c   : > { %1693 = vset.pattern.permute.xlu1 %v1916_v61 }
 0x29f   : > { %954 = vrot.lane.b32.xlu0 %v3059_v6, %s1917_s21  ;;  %916 = vrot.lane.b32.xlu1 %v3060_v55, %s1912_s14  ;;  %s1947_s14 = smov 30  }
 0x2a0   : > { %1696 = vset.pattern.permute.xlu0 %v1918_v35 }
 0x2a3   : > { %1274 = vperm.xlu0 %1696, %v2698_v51   ;;  %926 = vperm.xlu1 %1693, %v2698_v51  }
 0x2a7   : > { %935 = vrot.lane.b32.xlu1 %v3062_v11, %s1914_s18  ;;  %1698 = vset.pattern.permute.xlu0 %v1919_v45 }
 0x2a8   : > { %1695 = vset.pattern.permute.xlu1 %v1920_v49 }
 0x2ab   : > { %937 = vrot.lane.b32.xlu1 %v3060_v55, %s1914_s18  ;;  %s1950_s18 = smov 28  }
 0x2af   : > { %947 = vperm.xlu1 %1695, %v2698_v51  }
 0x2b3   : > { %956 = vrot.lane.b32.xlu1 %v3062_v11, %s1917_s21 }
 0x2b4   : > { %1697 = vset.pattern.permute.xlu1 %v1921_v18 }
 0x2b7   : > { %958 = vrot.lane.b32.xlu1 %v3060_v55, %s1917_s21  ;;  %s1951_s21 = smov 29  }
 0x2bb   : > { %968 = vperm.xlu1 %1697, %v2698_v51  }
 0x2bf   : > { %1699 = vset.pattern.permute.xlu1 %v1922_v59 }
 0x2e9   : > { %v837_v13 = vpop.permute.xlu1 %836  ;;  %v841_v17 = vpop.permute.xlu0 %840 }
 0x2ed   : > { %v839_v40 = vpop.permute.xlu1 %838  ;;  %v852_v4 = vpop.permute.xlu0 %851 }
 0x2ee   : > { %v844_v9 = vsel %vm842_vm11, %v839_v40, %v841_v17  ;;  %v843_v29 = vsel %vm842_vm11, %v837_v13, %v839_v40  ;;  %vm939_vm11 = vcmask 515072  }
 0x2ef   : > { %v848_v54 = vadd.f32 %v844_v9, %v825_v38  ;;  %v847_v62 = vadd.f32 %v843_v29, %v2696_v58 }
 0x2f1   : > { %v850_v31 = vpop.permute.xlu1 %849 }
 0x2f2   : > { %v856_v21 = vsel %vm855_vm12, %v850_v31, %v852_v4 }
 0x2f3   : > { %v860_v24 = vsel %vm370_vm15, %v856_v21, 0.0 }
 0x2f5   : > { %v854_v5 = vpop.permute.xlu1 %853 }
 0x2f6   : > { %v857_v23 = vsel %vm855_vm12, %v852_v4, %v854_v5  ;;  %vm3063_vm12 = vcmp.ge.s32.totalorder %v2405_v34, 0 }
 0x2f7   : > { %v861_v12 = vsel %vm371_vm13, %v857_v23, 0.0 }
 0x2f9   : > { %v871_v57 = vpop.permute.xlu1 %870 }
 0x2fd   : > { %v873_v1 = vpop.permute.xlu1 %872 }
 0x2fe   : > { %v864_v37 = vpop.permute.xlu0 %863  ;;  %v877_v25 = vsel %vm876_vm14, %v871_v57, %v873_v1 }
 0x2ff   : > { %v866_v50 = vmul.f32 %v864_v37, %v860_v24  ;;  %v867_v10 = vmul.f32 %v864_v37, %v861_v12  ;;  %v881_v60 = vsel %vm403_vm1, %v877_v25, 0.0  ;;  %v1926_v12 = vmov 35  }
 0x301   : > { %v868_v46 = vadd.f32 %v866_v50, %v847_v62  ;;  %v869_v2 = vadd.f32 %v867_v10, %v848_v54 }
 0x302   : > { %v875_v48 = vpop.permute.xlu0 %874 }
 0x303   : > { %v878_v42 = vsel %vm876_vm14, %v873_v1, %v875_v48  ;;  %vm960_vm14 = vcmask 506880  }
 0x304   : > { %v882_v53 = vsel %vm404_vm0, %v878_v42, 0.0 }
 0x306   : > { %v892_v22 = vpop.permute.xlu0 %891 }
 0x30a   : > { %v896_v8 = vpop.permute.xlu0 %895 }
 0x30e   : > { %v913_v52 = vpop.permute.xlu0 %912  ;;  %v885_v26 = vpop.permute.xlu1 %884 }
 0x30f   : > { %v888_v0 = vmul.f32 %v885_v26, %v882_v53  ;;  %v887_v33 = vmul.f32 %v885_v26, %v881_v60  ;;  %v1929_v26 = vmov 36  }
 0x311   : > { %v890_v7 = vadd.f32 %v888_v0, %v869_v2  ;;  %v889_v61 = vadd.f32 %v887_v33, %v868_v46  ;;  %v1928_v2 = vmov 34   ;;  %v1930_v0 = vmov 39  }
 0x312   : > { %v977_v36 = vpop.permute.xlu0 %976  ;;  %v894_v27 = vpop.permute.xlu1 %893 }
 0x313   : > { %v979_v15 = vmul.f32 %v977_v36, %v3059_v6  ;;  %v980_v20 = vmul.f32 %v977_v36, %v3062_v11  ;;  %v898_v58 = vsel %vm897_vm6, %v892_v22, %v894_v27  ;;  %v899_v38 = vsel %vm897_vm6, %v894_v27, %v896_v8 }
 0x314   : > { %v902_v28 = vsel %vm436_vm5, %v898_v58, 0.0  ;;  %v903_v47 = vsel %vm437_vm3, %v899_v38, 0.0  ;;  %v981_v35 = vmul.f32 %v977_v36, %v3060_v55  ;;  %v1932_v27 = vmov 37  }
 0x315   : > { %985 = vrot.lane.b32.xlu0 %v979_v15, %s1923_s23  ;;  %987 = vrot.lane.b32.xlu1 %v980_v20, %s1923_s23  ;;  %vm991_vm6 = vcmask 498688  }
 0x316   : > { %v906_v43 = vpop.permute.xlu1 %905  ;;  %v934_v29 = vpop.permute.xlu0 %933 }
 0x317   : > { %v908_v45 = vmul.f32 %v906_v43, %v902_v28  ;;  %v909_v49 = vmul.f32 %v906_v43, %v903_v47  ;;  %v1934_v43 = vmov 40  }
 0x319   : > { %v910_v18 = vadd.f32 %v908_v45, %v889_v61  ;;  %v911_v59 = vadd.f32 %v909_v49, %v890_v7  ;;  %989 = vrot.lane.b32.xlu0 %v981_v35, %s1923_s23  ;;  %998 = vrot.lane.b32.xlu1 %v3059_v6, %s1924_s15  ;;  %v1936_v61 = vmov 41   ;;  %v1938_v35 = vmov 42   ;;  %s1952_s23 = smov 27  }
 0x31a   : > { %v915_v13 = vpop.permute.xlu1 %914  ;;  %v2756_v46 = vpop.permute.xlu0 %1125  ;;  %v1940_v49 = vmov 43  }
 0x31b   : > { %v919_v17 = vsel %vm918_vm2, %v913_v52, %v915_v13  ;;  %v1129_v45 = vmul.f32 %v2756_v46, %v3062_v11 }
 0x31c   : > { %v923_v54 = vsel %vm253_vm9, %v919_v17, 0.0  ;;  %v1946_v17 = vmov 44  }
 0x31d   : > { %1000 = vrot.lane.b32.xlu0 %v3062_v11, %s1924_s15  ;;  %1002 = vrot.lane.b32.xlu1 %v3060_v55, %s1924_s15  ;;  %s1953_s15 = smov 26  }
 0x31e   : > { %v917_v40 = vpop.permute.xlu1 %916  ;;  %v955_v52 = vpop.permute.xlu0 %954 }
 0x31f   : > { %v920_v9 = vsel %vm918_vm2, %v915_v13, %v917_v40  ;;  %v1130_v13 = vmul.f32 %v2756_v46, %v3060_v55  ;;  %v1948_v40 = vmov 48   ;;  %vm1004_vm2 = vcmask 490496  }
 0x320   : > { %v924_v5 = vsel %vm254_vm7, %v920_v9, 0.0 }
 0x321   : > { %1012 = vperm.xlu0 %1698, %v2698_v51   ;;  %1019 = vrot.lane.b32.xlu1 %v3059_v6, %s1925_s17 }
 0x322   : > { %v927_v31 = vpop.permute.xlu1 %926  ;;  %v1275_v9 = vpop.permute.xlu0 %1274 }
 0x323   : > { %v929_v4 = vmul.f32 %v927_v31, %v923_v54  ;;  %v930_v21 = vmul.f32 %v927_v31, %v924_v5  ;;  %v1949_v54 = vmov 47   ;;  %v1278_v31 = vmul.f32 %v1275_v9, %v3062_v11 }
 0x325   : > { %v931_v23 = vadd.f32 %v929_v4, %v910_v18  ;;  %1023 = vrot.lane.b32.xlu0 %v3060_v55, %s1925_s17  ;;  %1021 = vrot.lane.b32.xlu1 %v3062_v11, %s1925_s17  ;;  %v932_v37 = vadd.f32 %v930_v21, %v911_v59  ;;  %v1942_v18 = vmov 46   ;;  %v1128_v59 = vmul.f32 %v2756_v46, %v3059_v6  ;;  %s1508_s17 = sshll.u32 %s1991_s13, 7  ;;  %s1954_s13 = smov [#allocation7]  }
 0x326   : > { %v936_v24 = vpop.permute.xlu1 %935  ;;  %1701 = vset.pattern.permute.xlu0 %v1926_v12 }
 0x327   : > { %v940_v62 = vsel %vm939_vm11, %v934_v29, %v936_v24 }
 0x328   : > { %v944_v48 = vsel %vm3063_vm12, %v940_v62, 0.0  ;;  %vm1046_vm12 = vcmask 474112  }
 0x329   : > { %1040 = vrot.lane.b32.xlu0 %v3059_v6, %s1927_s24  ;;  %1033 = vperm.xlu1 %1699, %v2698_v51  }
 0x32a   : > { %v938_v50 = vpop.permute.xlu1 %937 }
 0x32b   : > { %v941_v10 = vsel %vm939_vm11, %v936_v24, %v938_v50  ;;  %vm1025_vm11 = vcmask 482304  }
 0x32c   : > { %v945_v57 = vsel %vm278_vm4, %v941_v10, 0.0 }
 0x32d   : > { %1075 = vperm.xlu0 %1701, %v2698_v51   ;;  %1700 = vset.pattern.permute.xlu1 %v1928_v2 }
 0x32e   : > { %1054 = vperm.xlu1 %1700, %v2698_v51   ;;  %v948_v22 = vpop.permute.xlu1 %947 }
 0x32f   : > { %v950_v1 = vmul.f32 %v948_v22, %v944_v48  ;;  %v951_v8 = vmul.f32 %v948_v22, %v945_v57  ;;  %v1277_v22 = vmul.f32 %v1275_v9, %v3059_v6 }
 0x331   : > { %v952_v42 = vadd.f32 %v950_v1, %v931_v23  ;;  %v953_v53 = vadd.f32 %v951_v8, %v932_v37  ;;  %1044 = vrot.lane.b32.xlu0 %v3060_v55, %s1927_s24 }
 0x332   : > { %1702 = vset.pattern.permute.xlu1 %v1929_v26  ;;  %v957_v25 = vpop.permute.xlu1 %956  ;;  %1704 = vset.pattern.permute.xlu0 %v1930_v0 }
 0x333   : > { %v961_v7 = vsel %vm960_vm14, %v955_v52, %v957_v25  ;;  %1096 = vperm.xlu1 %1702, %v2698_v51  }
 0x334   : > { %v965_v33 = vsel %vm312_vm10, %v961_v7, 0.0 }
 0x335   : > { %1061 = vrot.lane.b32.xlu0 %v3059_v6, %s1931_s26 }
 0x336   : > { %v959_v60 = vpop.permute.xlu1 %958 }
 0x337   : > { %v962_v36 = vsel %vm960_vm14, %v957_v25, %v959_v60  ;;  %1042 = vrot.lane.b32.xlu1 %v3062_v11, %s1927_s24  ;;  %vm1067_vm14 = vcmask 392192   ;;  %s172_s24 = scalar_lea.vmem [#allocation7], %s1498_s25  ;;  %s1786_s25 = sshll.u32 %s1954_s13, 4  ;;  %s1787_s25 = int_to_ptr.vmem [resolvable:$false] %s1786_s25 }
 0x338   : > { %1703 = vset.pattern.permute.xlu1 %v1932_v27  ;;  %v966_v15 = vsel %vm313_vm8, %v962_v36, 0.0 }
 0x339   : > { %1065 = vrot.lane.b32.xlu0 %v3060_v55, %s1931_s26 }
 0x33a   : > { %v969_v20 = vpop.permute.xlu1 %968 }
 0x33b   : > { %v971_v58 = vmul.f32 %v969_v20, %v965_v33  ;;  %v972_v38 = vmul.f32 %v969_v20, %v966_v15  ;;  %1117 = vperm.xlu1 %1703, %v2698_v51  }
 0x33d   : > { %v2776_v28 = vadd.f32 %v971_v58, %v952_v42  ;;  %v2778_v47 = vadd.f32 %v972_v38, %v953_v53  ;;  %1084 = vrot.lane.b32.xlu0 %v3062_v11, %s1933_s27 }
 0x33f   : > { %1063 = vrot.lane.b32.xlu1 %v3062_v11, %s1931_s26  ;;  %s1407_s26 = sshll.u32 %s172_s24, 4  ;;  %s2945_s26 = int_to_ptr.vmem [resolvable:$true] %s1407_s26 }
 0x340   : > { %1705 = vset.pattern.permute.xlu1 %v1934_v43  ;;  %p1789_p13 = scmp.lt.s32.totalorder %s2945_s26, %s1787_s25 }
 0x341   : > { %1161 = vperm.xlu0 %1704, %v2698_v51  }
 0x343   : > { %1082 = vrot.lane.b32.xlu1 %v3059_v6, %s1933_s27 }
 0x345   : > { %1107 = vrot.lane.b32.xlu0 %v3060_v55, %s1935_s28 }
 0x346   : > { %1706 = vset.pattern.permute.xlu0 %v1936_v61 }
 0x347   : > { %1086 = vrot.lane.b32.xlu1 %v3060_v55, %s1933_s27 }
 0x349   : > { %1203 = vperm.xlu0 %1706, %v2698_v51  }
 0x34b   : > { %1103 = vrot.lane.b32.xlu1 %v3059_v6, %s1935_s28 }
 0x34d   : > { %1151 = vrot.lane.b32.xlu0 %v3060_v55, %s1937_s29 }
 0x34e   : > { %1707 = vset.pattern.permute.xlu0 %v1938_v35 }
 0x34f   : > { %1105 = vrot.lane.b32.xlu1 %v3062_v11, %s1935_s28 }
 0x351   : > { %1136 = vrot.lane.b32.xlu0 %v1129_v45, %s1939_s30 }
 0x353   : > { %1182 = vperm.xlu1 %1705, %v2698_v51  }
 0x355   : > { %1224 = vperm.xlu0 %1707, %v2698_v51  }
 0x357   : > { %1147 = vrot.lane.b32.xlu1 %v3059_v6, %s1937_s29 }
 0x358   : > { %1708 = vset.pattern.permute.xlu1 %v1940_v49 }
 0x359   : > { %1172 = vrot.lane.b32.xlu0 %v3060_v55, %s1941_s3 }
 0x35a   : > { %1710 = vset.pattern.permute.xlu0 %v1942_v18 }
 0x35b   : > { %1149 = vrot.lane.b32.xlu1 %v3062_v11, %s1937_s29  ;;  %s2943_s29 = scalar_lea.hbm %s2989_s2, %s1508_s17 }
 0x35d   : > { %1189 = vrot.lane.b32.xlu0 %v3059_v6, %s1943_s4 }
 0x35f   : > { %1134 = vrot.lane.b32.xlu1 %v1128_v59, %s1939_s30 }
 0x361   : > { %1193 = vrot.lane.b32.xlu0 %v3060_v55, %s1943_s4 }
 0x363   : > { %1138 = vrot.lane.b32.xlu1 %v1130_v13, %s1939_s30  ;;  %s1393_s30 = scalar_lea.sflag [#allocation4], %s2115_s22 }
 0x365   : > { %1210 = vrot.lane.b32.xlu0 %v3059_v6, %s1944_s5 }
 0x367   : > { %1168 = vrot.lane.b32.xlu1 %v3059_v6, %s1941_s3 }
 0x369   : > { %1214 = vrot.lane.b32.xlu0 %v3060_v55, %s1944_s5 }
 0x36b   : > { %1170 = vrot.lane.b32.xlu1 %v3062_v11, %s1941_s3  ;;  %s1782_s3 = scalar_lea.vmem %s2945_s26, 128 }
 0x36c   : > { %p1783_p6 = scmp.ne.s32.totalorder %s2945_s26, %s1782_s3 }
 0x36d   : > { %1233 = vrot.lane.b32.xlu0 %v3062_v11, %s1945_s6 }
 0x36e   : > { %p1784_p9 = pnand %p1783_p6, %p2062_p8 }
 0x36f   : > { %1245 = vperm.xlu1 %1708, %v2698_v51  }
 0x370   : > { %p1785_p12 = pneg %p1784_p9 }
 0x371   : > { %1310 = vperm.xlu0 %1710, %v2698_v51  }
 0x373   : > { %1191 = vrot.lane.b32.xlu1 %v3062_v11, %s1943_s4 }
 0x374   : > { %1709 = vset.pattern.permute.xlu1 %v1946_v17 }
 0x375   : > { %1256 = vrot.lane.b32.xlu0 %v3060_v55, %s1947_s14 }
 0x376   : > { %1712 = vset.pattern.permute.xlu0 %v1948_v40 }
 0x377   : > { %1266 = vperm.xlu1 %1709, %v2698_v51  }
 0x379   : > { %1352 = vperm.xlu0 %1712, %v2698_v51  }
 0x37b   : > { %1212 = vrot.lane.b32.xlu1 %v3062_v11, %s1944_s5 }
 0x37c   : > { %1711 = vset.pattern.permute.xlu1 %v1949_v54 }
 0x37d   : > { %1300 = vrot.lane.b32.xlu0 %v3060_v55, %s1950_s18 }
 0x37f   : > { %1231 = vrot.lane.b32.xlu1 %v3059_v6, %s1945_s6 }
 0x381   : > { %1285 = vrot.lane.b32.xlu0 %v1278_v31, %s1951_s21 }
 0x383   : > { %1235 = vrot.lane.b32.xlu1 %v3060_v55, %s1945_s6 }
 0x385   : > { %1317 = vrot.lane.b32.xlu0 %v3059_v6, %s1952_s23 }
 0x387   : > { %v986_v5 = vpop.permute.xlu0 %985  ;;  %1252 = vrot.lane.b32.xlu1 %v3059_v6, %s1947_s14  ;;  %v988_v4 = vpop.permute.xlu1 %987 }
 0x388   : > { %v992_v21 = vsel %vm991_vm6, %v986_v5, %v988_v4 }
 0x389   : > { %v996_v23 = vadd.f32 %v992_v21, %v2776_v28  ;;  %1321 = vrot.lane.b32.xlu0 %v3060_v55, %s1952_s23 }
 0x38b   : > { %v990_v29 = vpop.permute.xlu0 %989  ;;  %1254 = vrot.lane.b32.xlu1 %v3062_v11, %s1947_s14  ;;  %v999_v37 = vpop.permute.xlu1 %998 }
 0x38c   : > { %v993_v24 = vsel %vm991_vm6, %v988_v4, %v990_v29  ;;  %vm1088_vm6 = vcmask 384000  }
 0x38d   : > { %v997_v12 = vadd.f32 %v993_v24, %v2778_v47  ;;  %1340 = vrot.lane.b32.xlu0 %v3062_v11, %s1953_s15 }
 0x38f   : > { %v1001_v62 = vpop.permute.xlu0 %1000  ;;  %1331 = vperm.xlu1 %1711, %v2698_v51   ;;  %v1003_v50 = vpop.permute.xlu1 %1002  ;;  %v1279_v51 = vmul.f32 %v1275_v9, %v3060_v55 }
 0x390   : > { %v1005_v10 = vsel %vm1004_vm2, %v999_v37, %v1001_v62  ;;  %v1006_v46 = vsel %vm1004_vm2, %v1001_v62, %v1003_v50  ;;  %vm3064_vm2 = vcmp.ge.s32.totalorder %v2405_v34, 0 }
 0x391   : > { %v1009_v8 = vsel %vm370_vm15, %v1005_v10, 0.0  ;;  %v1010_v42 = vsel %vm371_vm13, %v1006_v46, 0.0 }
 0x393   : > { %1296 = vrot.lane.b32.xlu1 %v3059_v6, %s1950_s18  ;;  %v1020_v2 = vpop.permute.xlu1 %1019 }
 0x397   : > { %1298 = vrot.lane.b32.xlu1 %v3062_v11, %s1950_s18  ;;  %v1022_v48 = vpop.permute.xlu1 %1021 }
 0x398   : > { %v1026_v57 = vsel %vm1025_vm11, %v1020_v2, %v1022_v48 }
 0x399   : > { %v1030_v36 = vsel %vm403_vm1, %v1026_v57, 0.0 }
 0x39b   : > { %1283 = vrot.lane.b32.xlu1 %v1277_v22, %s1951_s21 }
 0x39f   : > { %1287 = vrot.lane.b32.xlu1 %v1279_v51, %s1951_s21 }
 0x3a0   : > { %v1013_v1 = vpop.permute.xlu0 %1012 }
 0x3a1   : > { %v1015_v53 = vmul.f32 %v1013_v1, %v1009_v8  ;;  %v1016_v52 = vmul.f32 %v1013_v1, %v1010_v42 }
 0x3a3   : > { %v1017_v26 = vadd.f32 %v1015_v53, %v996_v23  ;;  %v1018_v25 = vadd.f32 %v1016_v52, %v997_v12  ;;  %1319 = vrot.lane.b32.xlu1 %v3062_v11, %s1952_s23 }
 0x3a4   : > { %v1024_v0 = vpop.permute.xlu0 %1023 }
 0x3a5   : > { %v1027_v7 = vsel %vm1025_vm11, %v1022_v48, %v1024_v0  ;;  %vm1109_vm11 = vcmask 375808  }
 0x3a6   : > { %v1031_v27 = vsel %vm404_vm0, %v1027_v7, 0.0 }
 0x3a7   : > { %1338 = vrot.lane.b32.xlu1 %v3059_v6, %s1953_s15 }
 0x3a8   : > { %v1041_v60 = vpop.permute.xlu0 %1040  ;;  %v1034_v33 = vpop.permute.xlu1 %1033 }
 0x3a9   : > { %v1036_v15 = vmul.f32 %v1034_v33, %v1030_v36  ;;  %v1037_v20 = vmul.f32 %v1034_v33, %v1031_v27 }
 0x3ab   : > { %v1038_v58 = vadd.f32 %v1036_v15, %v1017_v26  ;;  %v1039_v38 = vadd.f32 %v1037_v20, %v1018_v25  ;;  %1342 = vrot.lane.b32.xlu1 %v3060_v55, %s1953_s15 }
 0x3ac   : > { %v1076_v11 = vpop.permute.xlu0 %1075 }
 0x3ad   : > { %v1055_v28 = vpop.permute.xlu1 %1054 }
 0x3b0   : > { %v1045_v47 = vpop.permute.xlu0 %1044 }
 0x3b2   : > { %v1097_v43 = vpop.permute.xlu1 %1096 }
 0x3b4   : > { %v1062_v6 = vpop.permute.xlu0 %1061 }
 0x3b6   : > { %v1043_v61 = vpop.permute.xlu1 %1042 }
 0x3b7   : > { %v1047_v35 = vsel %vm1046_vm12, %v1041_v60, %v1043_v61  ;;  %v1048_v45 = vsel %vm1046_vm12, %v1043_v61, %v1045_v47  ;;  %vm1153_vm12 = vcmask 359424  }
 0x3b8   : > { %v1051_v49 = vsel %vm436_vm5, %v1047_v35, 0.0  ;;  %v1052_v18 = vsel %vm437_vm3, %v1048_v45, 0.0  ;;  %v1066_v59 = vpop.permute.xlu0 %1065 }
 0x3b9   : > { %v1057_v13 = vmul.f32 %v1055_v28, %v1051_v49  ;;  %v1058_v17 = vmul.f32 %v1055_v28, %v1052_v18 }
 0x3ba   : > { %v1118_v40 = vpop.permute.xlu1 %1117 }
 0x3bb   : > { %v1059_v55 = vadd.f32 %v1057_v13, %v1038_v58  ;;  %v1060_v9 = vadd.f32 %v1058_v17, %v1039_v38 }
 0x3bc   : > { %v1085_v54 = vpop.permute.xlu0 %1084 }
 0x3be   : > { %v1064_v31 = vpop.permute.xlu1 %1063 }
 0x3bf   : > { %v1068_v5 = vsel %vm1067_vm14, %v1062_v6, %v1064_v31  ;;  %v1069_v4 = vsel %vm1067_vm14, %v1064_v31, %v1066_v59  ;;  %vm1140_vm14 = vcmask 367616  }
 0x3c0   : > { %v1072_v21 = vsel %vm253_vm9, %v1068_v5, 0.0  ;;  %v1073_v23 = vsel %vm254_vm7, %v1069_v4, 0.0  ;;  %v1162_v29 = vpop.permute.xlu0 %1161 }
 0x3c1   : > { %v1078_v37 = vmul.f32 %v1076_v11, %v1072_v21  ;;  %v1079_v24 = vmul.f32 %v1076_v11, %v1073_v23 }
 0x3c2   : > { %v1083_v12 = vpop.permute.xlu1 %1082 }
 0x3c3   : > { %v1080_v62 = vadd.f32 %v1078_v37, %v1059_v55  ;;  %v1081_v50 = vadd.f32 %v1079_v24, %v1060_v9  ;;  %v1089_v10 = vsel %vm1088_vm6, %v1083_v12, %v1085_v54 }
 0x3c4   : > { %v1093_v46 = vsel %vm3064_vm2, %v1089_v10, 0.0  ;;  %v1108_v2 = vpop.permute.xlu0 %1107  ;;  %vm1195_vm2 = vcmask 343040  }
 0x3c5   : > { %v1099_v48 = vmul.f32 %v1097_v43, %v1093_v46 }
 0x3c6   : > { %v1087_v57 = vpop.permute.xlu1 %1086 }
 0x3c7   : > { %v1101_v22 = vadd.f32 %v1099_v48, %v1080_v62  ;;  %v1090_v51 = vsel %vm1088_vm6, %v1085_v54, %v1087_v57  ;;  %vm1174_vm6 = vcmask 351232  }
 0x3c8   : > { %v1094_v1 = vsel %vm278_vm4, %v1090_v51, 0.0  ;;  %v2868_v8 = vpop.permute.xlu0 %1203 }
 0x3c9   : > { %v1100_v42 = vmul.f32 %v1097_v43, %v1094_v1 }
 0x3ca   : > { %v1104_v53 = vpop.permute.xlu1 %1103 }
 0x3cb   : > { %v1102_v52 = vadd.f32 %v1100_v42, %v1081_v50 }
 0x3cc   : > { %v1152_v26 = vpop.permute.xlu0 %1151 }
 0x3ce   : > { %v1106_v25 = vpop.permute.xlu1 %1105 }
 0x3cf   : > { %v1110_v0 = vsel %vm1109_vm11, %v1104_v53, %v1106_v25  ;;  %v1111_v7 = vsel %vm1109_vm11, %v1106_v25, %v1108_v2  ;;  %vm1216_vm11 = vcmask 261120  }
 0x3d0   : > { %v1114_v60 = vsel %vm312_vm10, %v1110_v0, 0.0  ;;  %v1115_v36 = vsel %vm313_vm8, %v1111_v7, 0.0  ;;  %v1137_v27 = vpop.permute.xlu0 %1136 }
 0x3d1   : > { %v1120_v33 = vmul.f32 %v1118_v40, %v1114_v60  ;;  %v1121_v15 = vmul.f32 %v1118_v40, %v1115_v36 }
 0x3d2   : > { %v1183_v20 = vpop.permute.xlu1 %1182 }
 0x3d3   : > { %v1122_v58 = vadd.f32 %v1120_v33, %v1101_v22  ;;  %v1123_v38 = vadd.f32 %v1121_v15, %v1102_v52 }
 0x3d4   : > { %v2874_v11 = vpop.permute.xlu0 %1224 }
 0x3d6   : > { %v1148_v28 = vpop.permute.xlu1 %1147 }
 0x3d8   : > { %v1173_v47 = vpop.permute.xlu0 %1172 }
 0x3da   : > { %v1150_v43 = vpop.permute.xlu1 %1149 }
 0x3db   : > { %v1154_v6 = vsel %vm1153_vm12, %v1148_v28, %v1150_v43  ;;  %v1155_v55 = vsel %vm1153_vm12, %v1150_v43, %v1152_v26  ;;  %vm1237_vm12 = vcmask 252928  }
 0x3dc   : > { %v1158_v61 = vsel %vm370_vm15, %v1154_v6, 0.0  ;;  %v1190_v35 = vpop.permute.xlu0 %1189  ;;  %v1159_v31 = vsel %vm371_vm13, %v1155_v55, 0.0 }
 0x3dd   : > { %v1164_v18 = vmul.f32 %v1162_v29, %v1158_v61  ;;  %v1165_v23 = vmul.f32 %v1162_v29, %v1159_v31 }
 0x3de   : > { %v1135_v45 = vpop.permute.xlu1 %1134 }
 0x3df   : > { %v1141_v49 = vsel %vm1140_vm14, %v1135_v45, %v1137_v27 }
 0x3e0   : > { %v1145_v59 = vadd.f32 %v1141_v49, %v1122_v58  ;;  %v1194_v40 = vpop.permute.xlu0 %1193 }
 0x3e2   : > { %v1166_v13 = vadd.f32 %v1164_v18, %v1145_v59  ;;  %v1139_v17 = vpop.permute.xlu1 %1138 }
 0x3e3   : > { %v1142_v9 = vsel %vm1140_vm14, %v1137_v27, %v1139_v17  ;;  %vm1258_vm14 = vcmask 244736  }
 0x3e4   : > { %v1146_v5 = vadd.f32 %v1142_v9, %v1123_v38  ;;  %v1211_v4 = vpop.permute.xlu0 %1210 }
 0x3e6   : > { %v1169_v54 = vpop.permute.xlu1 %1168  ;;  %v1167_v50 = vadd.f32 %v1165_v23, %v1146_v5 }
 0x3e8   : > { %v1215_v22 = vpop.permute.xlu0 %1214 }
 0x3ea   : > { %v1171_v21 = vpop.permute.xlu1 %1170 }
 0x3eb   : > { %v1175_v37 = vsel %vm1174_vm6, %v1169_v54, %v1171_v21  ;;  %v1176_v24 = vsel %vm1174_vm6, %v1171_v21, %v1173_v47  ;;  %vm3065_vm6 = vcmp.ge.s32.totalorder %v2405_v34, 0 }
 0x3ec   : > { %v1179_v12 = vsel %vm403_vm1, %v1175_v37, 0.0  ;;  %v1180_v62 = vsel %vm404_vm0, %v1176_v24, 0.0  ;;  %v1234_v1 = vpop.permute.xlu0 %1233 }
 0x3ed   : > { %v1185_v10 = vmul.f32 %v1183_v20, %v1179_v12  ;;  %v1186_v46 = vmul.f32 %v1183_v20, %v1180_v62 }
 0x3ee   : > { %v1246_v2 = vpop.permute.xlu1 %1245 }
 0x3ef   : > { %v1187_v48 = vadd.f32 %v1185_v10, %v1166_v13  ;;  %v1188_v57 = vadd.f32 %v1186_v46, %v1167_v50 }
 0x3f0   : > { %v2884_v29 = vpop.permute.xlu0 %1310 }
 0x3f2   : > { %v1192_v51 = vpop.permute.xlu1 %1191 }
 0x3f3   : > { %v1196_v33 = vsel %vm1195_vm2, %v1190_v35, %v1192_v51  ;;  %v1197_v58 = vsel %vm1195_vm2, %v1192_v51, %v1194_v40 }
 0x3f4   : > { %v1257_v26 = vpop.permute.xlu0 %1256  ;;  %v1200_v38 = vsel %vm436_vm5, %v1196_v33, 0.0  ;;  %v1201_v45 = vsel %vm437_vm3, %v1197_v58, 0.0 }
 0x3f5   : > { %v1206_v35 = vmul.f32 %v2868_v8, %v1200_v38  ;;  %v1207_v14 = vmul.f32 %v2868_v8, %v1201_v45 }
 0x3f6   : > { %v1267_v42 = vpop.permute.xlu1 %1266 }
 0x3f7   : > { %v1208_v54 = vadd.f32 %v1206_v35, %v1187_v48  ;;  %v1209_v23 = vadd.f32 %v1207_v14, %v1188_v57 }
 0x3f8   : > { %v2886_v7 = vpop.permute.xlu0 %1352 }
 0x3fa   : > { %v1213_v53 = vpop.permute.xlu1 %1212 }
 0x3fb   : > { %v1217_v20 = vsel %vm1216_vm11, %v1211_v4, %v1213_v53  ;;  %v1218_v43 = vsel %vm1216_vm11, %v1213_v53, %v1215_v22 }
 0x3fc   : > { %v1301_v36 = vpop.permute.xlu0 %1300  ;;  %v1221_v6 = vsel %vm253_vm9, %v1217_v20, 0.0  ;;  %v1222_v13 = vsel %vm254_vm7, %v1218_v43, 0.0  ;;  %vm1302_vm9 = vcmask 228352   ;;  %vm1289_vm7 = vcmask 236544  }
 0x3fd   : > { %v1227_v17 = vmul.f32 %v2874_v11, %v1221_v6  ;;  %v1228_v4 = vmul.f32 %v2874_v11, %v1222_v13 }
 0x3fe   : > { %v1232_v52 = vpop.permute.xlu1 %1231 }
 0x3ff   : > { %v1238_v47 = vsel %vm1237_vm12, %v1232_v52, %v1234_v1  ;;  %v1229_v41 = vadd.f32 %v1227_v17, %v1208_v54  ;;  %v1230_v62 = vadd.f32 %v1228_v4, %v1209_v23 }
 0x400   : > { %v1286_v28 = vpop.permute.xlu0 %1285  ;;  %v1242_v18 = vsel %vm3065_vm6, %v1238_v47, 0.0 }
 0x401   : > { %v1248_v31 = vmul.f32 %v1246_v2, %v1242_v18 }
 0x402   : > { %v1236_v25 = vpop.permute.xlu1 %1235 }
 0x403   : > { %v1239_v59 = vsel %vm1237_vm12, %v1234_v1, %v1236_v25  ;;  %v1250_v24 = vadd.f32 %v1248_v31, %v1229_v41 }
 0x404   : > { %v1318_v40 = vpop.permute.xlu0 %1317  ;;  %v1243_v5 = vsel %vm278_vm4, %v1239_v59, 0.0  ;;  %vm1323_vm4 = vcmask 220160  }
 0x405   : > { %v1249_v8 = vmul.f32 %v1246_v2, %v1243_v5 }
 0x406   : > { %v1253_v0 = vpop.permute.xlu1 %1252 }
 0x407   : > { %v1251_v46 = vadd.f32 %v1249_v8, %v1230_v62 }
 0x408   : > { %v1322_v16 = vpop.permute.xlu0 %1321 }
 0x40a   : > { %v1255_v60 = vpop.permute.xlu1 %1254 }
 0x40b   : > { %v1259_v49 = vsel %vm1258_vm14, %v1253_v0, %v1255_v60  ;;  %v1260_v34 = vsel %vm1258_vm14, %v1255_v60, %v1257_v26 }
 0x40c   : > { %v1263_v55 = vsel %vm312_vm10, %v1259_v49, 0.0  ;;  %v1264_v32 = vsel %vm313_vm8, %v1260_v34, 0.0  ;;  %vm1344_vm8 = vcmask 211968   ;;  %v1341_v25 = vpop.permute.xlu0 %1340  ;;  %vm1359_vm10 = vcmask 1041408  }
 0x40d   : > { %v1269_v21 = vmul.f32 %v1267_v42, %v1263_v55  ;;  %v1270_v10 = vmul.f32 %v1267_v42, %v1264_v32  ;;  %v1723_v32 = vld [vmem:[%s2121_s19] sm:$0xff]  ;;  %s1788_s19 = scalar_lea.vmem %s1787_s25, 256 }
 0x40e   : > { %v2888_v27 = vpop.permute.xlu1 %1331  ;;  %p1790_p0 = scmp.lt.s32.totalorder %s1788_s19, %s1782_s3 }
 0x40f   : > { %v1271_v11 = vadd.f32 %v1269_v21, %v1250_v24  ;;  %v1272_v42 = vadd.f32 %v1270_v10, %v1251_v46 }
 0x410   : > { %p1791_p5 = por %p1790_p0, %p1789_p13 }
 0x412   : > { %v1297_v15 = vpop.permute.xlu1 %1296  ;;  %p1792_p10 = pnand %p1791_p5, %p1785_p12 }
 0x416   : > { %v1299_v61 = vpop.permute.xlu1 %1298 }
 0x417   : > { %v1303_v12 = vsel %vm1302_vm9, %v1297_v15, %v1299_v61  ;;  %v1304_v2 = vsel %vm1302_vm9, %v1299_v61, %v1301_v36 }
 0x418   : > { %v1307_v48 = vsel %vm370_vm15, %v1303_v12, 0.0  ;;  %v1308_v30 = vsel %vm371_vm13, %v1304_v2, 0.0 }
 0x419   : > { %v1313_v52 = vmul.f32 %v2884_v29, %v1307_v48  ;;  %v1314_v20 = vmul.f32 %v2884_v29, %v1308_v30 }
 0x41a   : > { %v1284_v9 = vpop.permute.xlu1 %1283 }
 0x41b   : > { %v1290_v50 = vsel %vm1289_vm7, %v1284_v9, %v1286_v28 }
 0x41c   : > { %v1294_v3 = vadd.f32 %v1290_v50, %v1271_v11 }
 0x41e   : > { %v1288_v37 = vpop.permute.xlu1 %1287  ;;  %v1315_v36 = vadd.f32 %v1313_v52, %v1294_v3 }
 0x41f   : > { %v1291_v1 = vsel %vm1289_vm7, %v1286_v28, %v1288_v37 }
 0x420   : > { %v1295_v33 = vadd.f32 %v1291_v1, %v1272_v42 }
 0x422   : > { %v1320_v57 = vpop.permute.xlu1 %1319  ;;  %v1316_v47 = vadd.f32 %v1314_v20, %v1295_v33 }
 0x423   : > { %v1324_v22 = vsel %vm1323_vm4, %v1318_v40, %v1320_v57  ;;  %v1325_v51 = vsel %vm1323_vm4, %v1320_v57, %v1322_v16 }
 0x424   : > { %v1328_v53 = vsel %vm403_vm1, %v1324_v22, 0.0  ;;  %v1329_v0 = vsel %vm404_vm0, %v1325_v51, 0.0 }
 0x425   : > { %v1334_v26 = vmul.f32 %v2888_v27, %v1328_v53  ;;  %v1335_v58 = vmul.f32 %v2888_v27, %v1329_v0 }
 0x426   : > { %v1339_v60 = vpop.permute.xlu1 %1338 }
 0x427   : > { %v1345_v15 = vsel %vm1344_vm8, %v1339_v60, %v1341_v25  ;;  %v1336_v38 = vadd.f32 %v1334_v26, %v1315_v36  ;;  %v1337_v61 = vadd.f32 %v1335_v58, %v1316_v47 }
 0x428   : > { %v1349_v19 = vsel %vm436_vm5, %v1345_v15, 0.0 }
 0x429   : > { %v1355_v28 = vmul.f32 %v2886_v7, %v1349_v19 }
 0x42a   : > { %v1343_v39 = vpop.permute.xlu1 %1342 }
 0x42b   : > { %v1357_v56 = vadd.f32 %v1355_v28, %v1336_v38  ;;  %v1346_v43 = vsel %vm1344_vm8, %v1341_v25, %v1343_v39 }
 0x42c   : > { %v1350_v6 = vsel %vm437_vm3, %v1346_v43, 0.0 }
 0x42d   : > { %v1360_v45 = vsel %vm1359_vm10, %v1357_v56, 0.0  ;;  %v1356_v44 = vmul.f32 %v2886_v7, %v1350_v6 }
 0x42e   : > { %v1361_v35 = vrot.slane %v1360_v45, 4 }
 0x42f   : > { %v1358_v29 = vadd.f32 %v1356_v44, %v1337_v61 }
 0x430   : > { %v1362_v49 = vadd.f32 %v1361_v35, %v1360_v45 }
 0x431   : > { %v1367_v27 = vsel %vm1359_vm10, %v1358_v29, 0.0 }
 0x432   : > { %v1363_v18 = vrot.slane %v1362_v49, 2  ;;  %v1368_v59 = vrot.slane %v1367_v27, 4 }
 0x434   : > { %v1364_v13 = vadd.f32 %v1363_v18, %v1362_v49  ;;  %v1369_v17 = vadd.f32 %v1368_v59, %v1367_v27 }
 0x436   : > { %v1365_v14 = vrot.slane %v1364_v13, 1  ;;  %v1370_v40 = vrot.slane %v1369_v17, 2 }
 0x438   : > { %v1366_v55 = vadd.f32 %v1365_v14, %v1364_v13  ;;  %v1371_v9 = vadd.f32 %v1370_v40, %v1369_v17 }
 0x43a   : > { %v1500_v63 = vmul.f32 -1.442695, %v1366_v55  ;;  %v1372_v54 = vrot.slane %v1371_v9, 1 }
 0x43c   : > { %1714 = vpow2.f32 %v1500_v63  ;;  %v1373_v31 = vadd.f32 %v1372_v54, %v1371_v9 }
 0x43e   : > { %v1501_v7 = vmul.f32 -1.442695, %v1373_v31 }
 0x440   : > { %1716 = vpow2.f32 %v1501_v7 }
 0x446   : > { %v1715_v5 = vpop.eup %1714 }
 0x447   : > { %v1380_v34 = vadd.f32 1.0, %v1715_v5 }
 0x449   : > { %1718 = vrcp.f32 %v1380_v34 }
 0x44a   : > { %v1717_v4 = vpop.eup %1716 }
 0x44b   : > { %v1381_v41 = vadd.f32 1.0, %v1717_v4 }
 0x44d   : > { %1720 = vrcp.f32 %v1381_v41 }
 0x453   : > { %v1719_v21 = vpop.eup %1718 }
 0x457   : > { %v1721_v23 = vpop.eup %1720 }
 0x458   : > { %v1388_v8 = vcombine.low %v1719_v21, %v1721_v23 }
 0x45a   : > { %v1390_v37 = vmul.f32 %v1723_v32, %v1388_v8 }
 0x45c   : > { %1391 = vst [vmem:[%s172_s24] sm:$0xff] %v1390_v37 }
 0x45d   : > { %1795 = shalt.err (!%p1792_p10)
}
 0x45e   : > { %s1796_s22 = scalar_lea.hbm %s2943_s29, 128  ;;  %s1800_s6 = scalar_lea.hbm %s2989_s2, 256 }
 0x45f   : > { %p1797_p1 = scmp.ne.s32.totalorder %s2943_s29, %s1796_s22  ;;  %p1801_p3 = scmp.lt.u32.totalorder %s2943_s29, %s2989_s2 }
 0x460   : > { %p1802_p4 = scmp.lt.u32.totalorder %s1800_s6, %s1796_s22  ;;  %p1804_p6 = scmp.lt.u32.totalorder %s1796_s22, %s2943_s29 }
 0x461   : > { %p1798_p2 = pnand %p1797_p1, %p2062_p8 }
 0x462   : > { %p1803_p11 = por %p1802_p4, %p1801_p3 }
 0x463   : > { %p1799_p7 = pneg %p1798_p2 }
 0x464   : > { %p1805_p9 = por %p1804_p6, %p1803_p11 }
 0x466   : > { %p1806_p12 = pnand %p1805_p9, %p1799_p7 }
 0x468   : > { %1809 = shalt.err (!%p1806_p12)
}
 0x469   : > { %1515 = dma.vmem_to_hbm [thread:$0]  (%p2062_p8), %s2945_s26, 128, %s2943_s29, %s1393_s30  }
 0x46a PF: > { %s1419_s21 = sand.u32 1, %s1840_s9   ;;  %p3066_p13 = scmp.ne.s32.totalorder %s3010_s16, 0 }
 0x46b   : > { %p3067_p0 = scmp.ge.s32.totalorder %s1852_s12, 2  ;;  %s1420_s23 = scalar_lea.sflag [#allocation4], %s1419_s21 }
 0x46d   : > { %p1526_p5 = pnand %p3067_p0, %p3066_p13 }
 0x46f   : > { %1835 = dma.done.wait (!%p1526_p5), %s1420_s23, 128  }
 0x470   : > { %1837 = vsyncadd (!%p1526_p5), %s1420_s23, 4294967168  ;;  %p16_p10 = scmp.ge.s32.totalorder %s2018_s20, 4   ;;  %s3068_s9 = smov %s1844_s10 }
 0x471   : > { %s3069_s10 = smov %s1848_s11  ;;  %s3070_s11 = smov %s2054_s7 }
 0x472   : > { %s3071_s12 = smov %s2018_s20  ;;  %18 = sbr.rel (!%p16_p10) target bundleno = 6 (0x6), region = 78 }
 0x479   :  { %1425 = vsyncpa [#allocation3], 1 }
 0x47a   :  { %1427 = vsyncpa [#allocation3 + $0x1], 1 }
 0x47b   :  { %1428 = vsyncpa [#allocation6], 1 }
 0x47c   :  { %1430 = vsyncpa [#allocation6 + $0x1], 1 }
 0x47d   :  { %1431 = vsyncpa [#allocation4], 1 }
 0x47e   :  { %1433 = vsyncpa [#allocation4 + $0x1], 1 }

</bundles_post_ra>
